<compile_context>
chip_gen: v7x
topology: tpu7x:2x2x1
jax: 0.10.0
libtpu: 0.0.40
codegen_flags: <defaults>
</compile_context>

<pallas_src>
import functools

import jax
import jax.numpy as jnp
import numpy as np
from jax.experimental import pallas as pl
from jax.experimental.pallas import tpu as pltpu

HI = jax.lax.Precision.HIGHEST   # only used by the pure-JAX reference

CPAD = 128    # padded class dim -> lane-dense output stores


# ----------------------------- Pallas kernel -------------------------------
def _eegcnn_kernel(x_ref, w1_ref, b1_ref, w2_ref, b2_ref,
                   fw1_ref, fb1_ref, fw2_ref, fb2_ref, out_ref, *, tb):
    """One batch tile of `tb` samples, laid out t-major on the lane axis.

    Activations are (channels, L*tb) with lane = t*tb + b, so every conv /
    pool / fc stage is ONE batched VPU/MXU op (no per-sample loop).  Max-pools
    keep the full (uncompacted) lane space: pool1 results are valid at even-t
    chunks, pool2 results at 4*t chunks.
    """
    f32 = jnp.float32
    x = x_ref[0]                                   # (1, L*tb), lane = t*tb + b
    n1 = x.shape[1]                                # L*tb

    def shift_left(a, s):      # chunk t gets chunk t+s/tb; zero tail (pad)
        z = jnp.zeros((a.shape[0], s), f32)
        return jnp.concatenate([a[:, s:], z], axis=1)

    def shift_right(a, s):     # chunk t gets chunk t-s/tb; zero head (pad)
        z = jnp.zeros((a.shape[0], s), f32)
        return jnp.concatenate([z, a[:, :n1 - s]], axis=1)

    # ---- conv1 (1->16, k=3, pad=1) on the VPU: 3 broadcast FMAs -------------
    xl = shift_right(x, tb)                        # x[t-1]  (zero at t = 0)
    xr = shift_left(x, tb)                         # x[t+1]  (zero at t = L-1)
    w1 = w1_ref[...]                               # (16, 3), BN folded
    y1 = w1[:, 0:1] * xl + w1[:, 1:2] * x + w1[:, 2:3] * xr + b1_ref[...]
    y1 = jnp.maximum(y1, 0.0)                      # (16, L*tb)

    # ---- maxpool(2) #1: exact pairwise max, stay in full lane space ---------
    # valid pooled values live at even-t lane chunks (stride 2*tb)
    p1 = jnp.maximum(y1, shift_left(y1, tb))       # (16, L*tb)

    # ---- conv2 (16->32, k=3, pad=1): neighbours are 2*tb lanes away ---------
    p1l = shift_right(p1, 2 * tb)                  # zero at pooled t' = 0
    p1r = shift_left(p1, 2 * tb)                   # zero at pooled t' = L1-1
    taps2 = jnp.concatenate([p1l, p1, p1r], axis=0)            # (48, L*tb)
    y2 = jnp.dot(w2_ref[...], taps2, preferred_element_type=f32) + b2_ref[...]
    y2 = jnp.maximum(y2, 0.0)                      # (32, L*tb)

    # ---- maxpool(2) #2: valid values end up at lane chunks 4*t*tb -----------
    p2 = jnp.maximum(y2, shift_left(y2, 2 * tb))   # (32, L*tb)

    # ---- flatten: 32 chunks at stride 4*tb -> (1024, tb), row = t*32 + c ----
    l2 = n1 // (4 * tb)                            # = 32 for L = 128
    flatT = jnp.concatenate(
        [p2[:, 4 * t * tb:4 * t * tb + tb] for t in range(l2)], axis=0)

    # ---- fc1 + ReLU, fc2 (class dim padded to CPAD lanes) -------------------
    hT = jnp.dot(fw1_ref[...], flatT, preferred_element_type=f32) + fb1_ref[...]
    hT = jnp.maximum(hT, 0.0)                      # (64, tb)
    out = jax.lax.dot_general(hT, fw2_ref[...], (((0,), (0,)), ((), ())),
                              preferred_element_type=f32) + fb2_ref[...]
    out_ref[...] = out.astype(out_ref.dtype)       # (tb, CPAD)


# ------------------------------ Wrapper -------------------------------------
def _round_up(n, m):
    return ((n + m - 1) // m) * m


@jax.jit
def eegcnn_forward(x_ncl, params):
    """x_ncl: (B, 1, 128) float32 (NCL, like PyTorch). Returns (B, num_classes)."""
    eps = 1e-5
    x = x_ncl[:, 0, :].astype(jnp.float32)                    # (B, L)
    B, L = x.shape
    assert L == 128, "EEGCNN fc1 expects length 128 (32*32 flatten)"
    L2 = L // 4
    C = params["fc2_w"].shape[0]

    # Batch tile: a multiple of 32 (so flatten slices are 128-lane aligned),
    # capped at 128 (full MXU lane width for fc1/fc2 and a dense output store).
    tb = min(128, max(32, _round_up(B, 32)))
    B_pad = _round_up(B, tb)
    nb = B_pad // tb

    # t-major lane layout per batch tile: lane = t*tb + b
    xp = jnp.pad(x, ((0, B_pad - B), (0, 0)))
    xt = xp.reshape(nb, tb, L).transpose(0, 2, 1).reshape(nb, 1, L * tb)

    # fold BatchNorm (inference: running stats + affine) into conv weight/bias
    s1 = params["bn1_g"] * jax.lax.rsqrt(params["bn1_rv"] + eps)
    t1 = params["bn1_b"] - params["bn1_rm"] * s1
    s2 = params["bn2_g"] * jax.lax.rsqrt(params["bn2_rv"] + eps)
    t2 = params["bn2_b"] - params["bn2_rm"] * s2
    w1f = params["w1"].reshape(16, 3) * s1[:, None]                       # (16, 3)
    b1f = (params["b1"] * s1 + t1).reshape(16, 1)
    w2f = jnp.transpose(params["w2"], (0, 2, 1)).reshape(32, 48) * s2[:, None]  # col = k*16+ci
    b2f = (params["b2"] * s2 + t2).reshape(32, 1)

    # fc1 weights permuted to the kernel's flatten order (row = t*32 + c)
    fw1m = params["fc1_w"].reshape(64, 32, L2).transpose(0, 2, 1).reshape(64, 32 * L2)
    fb1 = params["fc1_b"].reshape(64, 1)
    fw2p = jnp.zeros((64, CPAD), jnp.float32).at[:, :C].set(params["fc2_w"].T)
    fb2 = jnp.zeros((1, CPAD), jnp.float32).at[:, :C].set(params["fc2_b"][None, :])

    inputs = (xt, w1f, b1f, w2f, b2f, fw1m, fb1, fw2p, fb2)

    def _const(shape):
        nd = len(shape)
        return pl.BlockSpec(shape, lambda i, nd=nd: (0,) * nd)

    out = pl.pallas_call(
        functools.partial(_eegcnn_kernel, tb=tb),
        out_shape=jax.ShapeDtypeStruct((B_pad, CPAD), jnp.float32),
        grid=(nb,),
        in_specs=[pl.BlockSpec((1, 1, L * tb), lambda i: (i, 0, 0))]
                + [_const(a.shape) for a in inputs[1:]],
        out_specs=pl.BlockSpec((tb, CPAD), lambda i: (i, 0)),
        compiler_params=pltpu.CompilerParams(dimension_semantics=("parallel",)),
    )(*inputs)
    return out[:B, :C]


# ----------------------- pure-JAX reference (for checking) ------------------
def ref_forward(x_ncl, params):
    eps = 1e-5
    x = x_ncl[:, 0, :].astype(jnp.float32)
    B = x.shape[0]
    s1 = params["bn1_g"] / jnp.sqrt(params["bn1_rv"] + eps)
    t1 = params["bn1_b"] - params["bn1_rm"] * s1
    s2 = params["bn2_g"] / jnp.sqrt(params["bn2_rv"] + eps)
    t2 = params["bn2_b"] - params["bn2_rm"] * s2
    w1 = params["w1"].reshape(16, 3)
    w2f = jnp.transpose(params["w2"], (0, 2, 1)).reshape(32, 48)

    z = jnp.zeros((B, 1), jnp.float32)
    xl = jnp.concatenate([z, x[:, :-1]], axis=1)
    xr = jnp.concatenate([x[:, 1:], z], axis=1)
    taps1 = jnp.stack([xl, x, xr], axis=1)                               # (B,3,128)
    y1 = jnp.einsum("ck,bkt->bct", w1, taps1, precision=HI) + params["b1"][None, :, None]
    y1 = jnp.maximum(y1 * s1[None, :, None] + t1[None, :, None], 0.0)
    p1 = jnp.max(y1.reshape(B, 16, 64, 2), axis=-1)

    z3 = jnp.zeros((B, 16, 1), jnp.float32)
    p1l = jnp.concatenate([z3, p1[..., :-1]], axis=-1)
    p1r = jnp.concatenate([p1[..., 1:], z3], axis=-1)
    taps2 = jnp.concatenate([p1l, p1, p1r], axis=1)                      # (B,48,64)
    y2 = jnp.einsum("of,bft->bot", w2f, taps2, precision=HI) + params["b2"][None, :, None]
    y2 = jnp.maximum(y2 * s2[None, :, None] + t2[None, :, None], 0.0)
    p2 = jnp.max(y2.reshape(B, 32, 32, 2), axis=-1)

    flat = p2.reshape(B, 32 * 32)
    h = jnp.maximum(
        jnp.dot(flat, params["fc1_w"].T, precision=HI) + params["fc1_b"][None, :], 0.0)
    return jnp.dot(h, params["fc2_w"].T, precision=HI) + params["fc2_b"][None, :]


# --------------------------------- main --------------------------------------
if __name__ == "__main__":
    B, L, num_classes = 4, 128, 4      # fc1 expects 32*32 -> input length must be 128

    key = jax.random.PRNGKey(0)
    ks = jax.random.split(key, 17)
    params = {
        "w1": 0.1 * jax.random.normal(ks[0], (16, 1, 3), jnp.float32),
        "b1": 0.1 * jax.random.normal(ks[1], (16,), jnp.float32),
        "bn1_g": 1.0 + 0.1 * jax.random.normal(ks[2], (16,), jnp.float32),
        "bn1_b": 0.1 * jax.random.normal(ks[3], (16,), jnp.float32),
        "bn1_rm": 0.1 * jax.random.normal(ks[4], (16,), jnp.float32),
        "bn1_rv": jax.random.uniform(ks[5], (16,), jnp.float32, 0.5, 1.5),
        "w2": 0.1 * jax.random.normal(ks[6], (32, 16, 3), jnp.float32),
        "b2": 0.1 * jax.random.normal(ks[7], (32,), jnp.float32),
        "bn2_g": 1.0 + 0.1 * jax.random.normal(ks[8], (32,), jnp.float32),
        "bn2_b": 0.1 * jax.random.normal(ks[9], (32,), jnp.float32),
        "bn2_rm": 0.1 * jax.random.normal(ks[10], (32,), jnp.float32),
        "bn2_rv": jax.random.uniform(ks[11], (32,), jnp.float32, 0.5, 1.5),
        "fc1_w": 0.05 * jax.random.normal(ks[12], (64, 32 * 32), jnp.float32),
        "fc1_b": 0.1 * jax.random.normal(ks[13], (64,), jnp.float32),
        "fc2_w": 0.1 * jax.random.normal(ks[14], (num_classes, 64), jnp.float32),
        "fc2_b": 0.1 * jax.random.normal(ks[15], (num_classes,), jnp.float32),
    }
    x = jax.random.normal(ks[16], (B, 1, L), jnp.float32)

    out = jax.block_until_ready(eegcnn_forward(x, params))
    ref = jax.block_until_ready(ref_forward(x, params))

    # kernel uses default MXU precision (single bf16 pass); ref is HIGHEST
    np.testing.assert_allclose(np.asarray(out), np.asarray(ref), rtol=2e-2, atol=2e-2)
    assert out.shape == (B, num_classes)
    print("KERNEL_OK")
</pallas_src>

<mosaic_0001>
module attributes {stable_mosaic.version = 11 : i64} {
  func.func @_eegcnn_kernel(%arg0: i32, %arg1: memref<1x1x4096xf32, #tpu.memory_space<vmem>>, %arg2: memref<16x3xf32, #tpu.memory_space<vmem>>, %arg3: memref<16x1xf32, #tpu.memory_space<vmem>>, %arg4: memref<32x48xf32, #tpu.memory_space<vmem>>, %arg5: memref<32x1xf32, #tpu.memory_space<vmem>>, %arg6: memref<64x1024xf32, #tpu.memory_space<vmem>>, %arg7: memref<64x1xf32, #tpu.memory_space<vmem>>, %arg8: memref<64x128xf32, #tpu.memory_space<vmem>>, %arg9: memref<1x128xf32, #tpu.memory_space<vmem>>, %arg10: memref<32x128xf32, #tpu.memory_space<vmem>>) attributes {dimension_semantics = [#tpu.dimension_semantics<parallel>], iteration_bounds = array<i64: 1>, scalar_prefetch = 0 : i64, scratch_operands = 0 : i64, tpu.core_type = #tpu.core_type<tc>, window_params = [{transform_indices = @transform_0, window_bounds = array<i64: 1, 1, 4096>}, {pipeline_mode = #tpu.pipeline_mode<synchronous>, transform_indices = @transform_1, window_bounds = array<i64: 16, 3>}, {pipeline_mode = #tpu.pipeline_mode<synchronous>, transform_indices = @transform_2, window_bounds = array<i64: 16, 1>}, {pipeline_mode = #tpu.pipeline_mode<synchronous>, transform_indices = @transform_3, window_bounds = array<i64: 32, 48>}, {pipeline_mode = #tpu.pipeline_mode<synchronous>, transform_indices = @transform_4, window_bounds = array<i64: 32, 1>}, {pipeline_mode = #tpu.pipeline_mode<synchronous>, transform_indices = @transform_5, window_bounds = array<i64: 64, 1024>}, {pipeline_mode = #tpu.pipeline_mode<synchronous>, transform_indices = @transform_6, window_bounds = array<i64: 64, 1>}, {pipeline_mode = #tpu.pipeline_mode<synchronous>, transform_indices = @transform_7, window_bounds = array<i64: 64, 128>}, {pipeline_mode = #tpu.pipeline_mode<synchronous>, transform_indices = @transform_8, window_bounds = array<i64: 1, 128>}, {transform_indices = @transform_9, window_bounds = array<i64: 32, 128>}]} {
    %c0 = arith.constant 0 : index
    %c0_0 = arith.constant 0 : index
    %c0_1 = arith.constant 0 : index
    %0 = vector.load %arg1[%c0, %c0_0, %c0_1] : memref<1x1x4096xf32, #tpu.memory_space<vmem>>, vector<1x1x4096xf32>
    %1 = vector.shape_cast %0 : vector<1x1x4096xf32> to vector<1x4096xf32>
    %cst = arith.constant 0.000000e+00 : f32
    %2 = vector.broadcast %cst : f32 to vector<1x32xf32>
    %3 = vector.extract_strided_slice %1 {offsets = [0, 0], sizes = [1, 4064], strides = [1, 1]} : vector<1x4096xf32> to vector<1x4064xf32>
    %4 = tpu.concatenate %2, %3 in 1 : vector<1x32xf32>, vector<1x4064xf32> -> vector<1x4096xf32>
    %cst_2 = arith.constant 0.000000e+00 : f32
    %5 = vector.broadcast %cst_2 : f32 to vector<1x32xf32>
    %6 = vector.extract_strided_slice %1 {offsets = [0, 32], sizes = [1, 4064], strides = [1, 1]} : vector<1x4096xf32> to vector<1x4064xf32>
    %7 = tpu.concatenate %6, %5 in 1 : vector<1x4064xf32>, vector<1x32xf32> -> vector<1x4096xf32>
    %c0_3 = arith.constant 0 : index
    %c0_4 = arith.constant 0 : index
    %8 = vector.load %arg2[%c0_3, %c0_4] : memref<16x3xf32, #tpu.memory_space<vmem>>, vector<16x3xf32>
    %9 = vector.extract_strided_slice %8 {offsets = [0, 0], sizes = [16, 1], strides = [1, 1]} : vector<16x3xf32> to vector<16x1xf32>
    %10 = vector.broadcast %9 : vector<16x1xf32> to vector<16x4096xf32>
    %11 = vector.broadcast %4 : vector<1x4096xf32> to vector<16x4096xf32>
    %12 = arith.mulf %10, %11 : vector<16x4096xf32>
    %13 = vector.extract_strided_slice %8 {offsets = [0, 1], sizes = [16, 1], strides = [1, 1]} : vector<16x3xf32> to vector<16x1xf32>
    %14 = vector.broadcast %13 : vector<16x1xf32> to vector<16x4096xf32>
    %15 = vector.broadcast %1 : vector<1x4096xf32> to vector<16x4096xf32>
    %16 = arith.mulf %14, %15 : vector<16x4096xf32>
    %17 = arith.addf %12, %16 : vector<16x4096xf32>
    %18 = vector.extract_strided_slice %8 {offsets = [0, 2], sizes = [16, 1], strides = [1, 1]} : vector<16x3xf32> to vector<16x1xf32>
    %19 = vector.broadcast %18 : vector<16x1xf32> to vector<16x4096xf32>
    %20 = vector.broadcast %7 : vector<1x4096xf32> to vector<16x4096xf32>
    %21 = arith.mulf %19, %20 : vector<16x4096xf32>
    %22 = arith.addf %17, %21 : vector<16x4096xf32>
    %c0_5 = arith.constant 0 : index
    %c0_6 = arith.constant 0 : index
    %23 = vector.load %arg3[%c0_5, %c0_6] : memref<16x1xf32, #tpu.memory_space<vmem>>, vector<16x1xf32>
    %24 = vector.broadcast %23 : vector<16x1xf32> to vector<16x4096xf32>
    %25 = arith.addf %22, %24 : vector<16x4096xf32>
    %cst_7 = arith.constant 0.000000e+00 : f32
    %26 = vector.broadcast %cst_7 : f32 to vector<16x4096xf32>
    %27 = arith.maximumf %25, %26 : vector<16x4096xf32>
    %cst_8 = arith.constant 0.000000e+00 : f32
    %28 = vector.broadcast %cst_8 : f32 to vector<16x32xf32>
    %29 = vector.extract_strided_slice %27 {offsets = [0, 32], sizes = [16, 4064], strides = [1, 1]} : vector<16x4096xf32> to vector<16x4064xf32>
    %30 = tpu.concatenate %29, %28 in 1 : vector<16x4064xf32>, vector<16x32xf32> -> vector<16x4096xf32>
    %31 = arith.maximumf %27, %30 : vector<16x4096xf32>
    %cst_9 = arith.constant 0.000000e+00 : f32
    %32 = vector.broadcast %cst_9 : f32 to vector<16x64xf32>
    %33 = vector.extract_strided_slice %31 {offsets = [0, 0], sizes = [16, 4032], strides = [1, 1]} : vector<16x4096xf32> to vector<16x4032xf32>
    %34 = tpu.concatenate %32, %33 in 1 : vector<16x64xf32>, vector<16x4032xf32> -> vector<16x4096xf32>
    %cst_10 = arith.constant 0.000000e+00 : f32
    %35 = vector.broadcast %cst_10 : f32 to vector<16x64xf32>
    %36 = vector.extract_strided_slice %31 {offsets = [0, 64], sizes = [16, 4032], strides = [1, 1]} : vector<16x4096xf32> to vector<16x4032xf32>
    %37 = tpu.concatenate %36, %35 in 1 : vector<16x4032xf32>, vector<16x64xf32> -> vector<16x4096xf32>
    %38 = tpu.concatenate %34, %31, %37 in 0 : vector<16x4096xf32>, vector<16x4096xf32>, vector<16x4096xf32> -> vector<48x4096xf32>
    %c0_11 = arith.constant 0 : index
    %c0_12 = arith.constant 0 : index
    %39 = vector.load %arg4[%c0_11, %c0_12] : memref<32x48xf32, #tpu.memory_space<vmem>>, vector<32x48xf32>
    %cst_13 = arith.constant dense<0.000000e+00> : vector<32x4096xf32>
    %40 = tpu.matmul %39, %38, %cst_13 {dimension_numbers = #tpu.dot_dimension_numbers<[1], [0], [0], [1], [0, 0, 1, 1], [], []>} : vector<32x48xf32>, vector<48x4096xf32>, vector<32x4096xf32> -> vector<32x4096xf32>
    %c0_14 = arith.constant 0 : index
    %c0_15 = arith.constant 0 : index
    %41 = vector.load %arg5[%c0_14, %c0_15] : memref<32x1xf32, #tpu.memory_space<vmem>>, vector<32x1xf32>
    %42 = vector.broadcast %41 : vector<32x1xf32> to vector<32x4096xf32>
    %43 = arith.addf %40, %42 : vector<32x4096xf32>
    %cst_16 = arith.constant 0.000000e+00 : f32
    %44 = vector.broadcast %cst_16 : f32 to vector<32x4096xf32>
    %45 = arith.maximumf %43, %44 : vector<32x4096xf32>
    %cst_17 = arith.constant 0.000000e+00 : f32
    %46 = vector.broadcast %cst_17 : f32 to vector<32x64xf32>
    %47 = vector.extract_strided_slice %45 {offsets = [0, 64], sizes = [32, 4032], strides = [1, 1]} : vector<32x4096xf32> to vector<32x4032xf32>
    %48 = tpu.concatenate %47, %46 in 1 : vector<32x4032xf32>, vector<32x64xf32> -> vector<32x4096xf32>
    %49 = arith.maximumf %45, %48 : vector<32x4096xf32>
    %50 = vector.extract_strided_slice %49 {offsets = [0, 0], sizes = [32, 32], strides = [1, 1]} : vector<32x4096xf32> to vector<32x32xf32>
    %51 = vector.extract_strided_slice %49 {offsets = [0, 128], sizes = [32, 32], strides = [1, 1]} : vector<32x4096xf32> to vector<32x32xf32>
    %52 = vector.extract_strided_slice %49 {offsets = [0, 256], sizes = [32, 32], strides = [1, 1]} : vector<32x4096xf32> to vector<32x32xf32>
    %53 = vector.extract_strided_slice %49 {offsets = [0, 384], sizes = [32, 32], strides = [1, 1]} : vector<32x4096xf32> to vector<32x32xf32>
    %54 = vector.extract_strided_slice %49 {offsets = [0, 512], sizes = [32, 32], strides = [1, 1]} : vector<32x4096xf32> to vector<32x32xf32>
    %55 = vector.extract_strided_slice %49 {offsets = [0, 640], sizes = [32, 32], strides = [1, 1]} : vector<32x4096xf32> to vector<32x32xf32>
    %56 = vector.extract_strided_slice %49 {offsets = [0, 768], sizes = [32, 32], strides = [1, 1]} : vector<32x4096xf32> to vector<32x32xf32>
    %57 = vector.extract_strided_slice %49 {offsets = [0, 896], sizes = [32, 32], strides = [1, 1]} : vector<32x4096xf32> to vector<32x32xf32>
    %58 = vector.extract_strided_slice %49 {offsets = [0, 1024], sizes = [32, 32], strides = [1, 1]} : vector<32x4096xf32> to vector<32x32xf32>
    %59 = vector.extract_strided_slice %49 {offsets = [0, 1152], sizes = [32, 32], strides = [1, 1]} : vector<32x4096xf32> to vector<32x32xf32>
    %60 = vector.extract_strided_slice %49 {offsets = [0, 1280], sizes = [32, 32], strides = [1, 1]} : vector<32x4096xf32> to vector<32x32xf32>
    %61 = vector.extract_strided_slice %49 {offsets = [0, 1408], sizes = [32, 32], strides = [1, 1]} : vector<32x4096xf32> to vector<32x32xf32>
    %62 = vector.extract_strided_slice %49 {offsets = [0, 1536], sizes = [32, 32], strides = [1, 1]} : vector<32x4096xf32> to vector<32x32xf32>
    %63 = vector.extract_strided_slice %49 {offsets = [0, 1664], sizes = [32, 32], strides = [1, 1]} : vector<32x4096xf32> to vector<32x32xf32>
    %64 = vector.extract_strided_slice %49 {offsets = [0, 1792], sizes = [32, 32], strides = [1, 1]} : vector<32x4096xf32> to vector<32x32xf32>
    %65 = vector.extract_strided_slice %49 {offsets = [0, 1920], sizes = [32, 32], strides = [1, 1]} : vector<32x4096xf32> to vector<32x32xf32>
    %66 = vector.extract_strided_slice %49 {offsets = [0, 2048], sizes = [32, 32], strides = [1, 1]} : vector<32x4096xf32> to vector<32x32xf32>
    %67 = vector.extract_strided_slice %49 {offsets = [0, 2176], sizes = [32, 32], strides = [1, 1]} : vector<32x4096xf32> to vector<32x32xf32>
    %68 = vector.extract_strided_slice %49 {offsets = [0, 2304], sizes = [32, 32], strides = [1, 1]} : vector<32x4096xf32> to vector<32x32xf32>
    %69 = vector.extract_strided_slice %49 {offsets = [0, 2432], sizes = [32, 32], strides = [1, 1]} : vector<32x4096xf32> to vector<32x32xf32>
    %70 = vector.extract_strided_slice %49 {offsets = [0, 2560], sizes = [32, 32], strides = [1, 1]} : vector<32x4096xf32> to vector<32x32xf32>
    %71 = vector.extract_strided_slice %49 {offsets = [0, 2688], sizes = [32, 32], strides = [1, 1]} : vector<32x4096xf32> to vector<32x32xf32>
    %72 = vector.extract_strided_slice %49 {offsets = [0, 2816], sizes = [32, 32], strides = [1, 1]} : vector<32x4096xf32> to vector<32x32xf32>
    %73 = vector.extract_strided_slice %49 {offsets = [0, 2944], sizes = [32, 32], strides = [1, 1]} : vector<32x4096xf32> to vector<32x32xf32>
    %74 = vector.extract_strided_slice %49 {offsets = [0, 3072], sizes = [32, 32], strides = [1, 1]} : vector<32x4096xf32> to vector<32x32xf32>
    %75 = vector.extract_strided_slice %49 {offsets = [0, 3200], sizes = [32, 32], strides = [1, 1]} : vector<32x4096xf32> to vector<32x32xf32>
    %76 = vector.extract_strided_slice %49 {offsets = [0, 3328], sizes = [32, 32], strides = [1, 1]} : vector<32x4096xf32> to vector<32x32xf32>
    %77 = vector.extract_strided_slice %49 {offsets = [0, 3456], sizes = [32, 32], strides = [1, 1]} : vector<32x4096xf32> to vector<32x32xf32>
    %78 = vector.extract_strided_slice %49 {offsets = [0, 3584], sizes = [32, 32], strides = [1, 1]} : vector<32x4096xf32> to vector<32x32xf32>
    %79 = vector.extract_strided_slice %49 {offsets = [0, 3712], sizes = [32, 32], strides = [1, 1]} : vector<32x4096xf32> to vector<32x32xf32>
    %80 = vector.extract_strided_slice %49 {offsets = [0, 3840], sizes = [32, 32], strides = [1, 1]} : vector<32x4096xf32> to vector<32x32xf32>
    %81 = vector.extract_strided_slice %49 {offsets = [0, 3968], sizes = [32, 32], strides = [1, 1]} : vector<32x4096xf32> to vector<32x32xf32>
    %82 = tpu.concatenate %50, %51, %52, %53, %54, %55, %56, %57, %58, %59, %60, %61, %62, %63, %64, %65 in 0 : vector<32x32xf32>, vector<32x32xf32>, vector<32x32xf32>, vector<32x32xf32>, vector<32x32xf32>, vector<32x32xf32>, vector<32x32xf32>, vector<32x32xf32>, vector<32x32xf32>, vector<32x32xf32>, vector<32x32xf32>, vector<32x32xf32>, vector<32x32xf32>, vector<32x32xf32>, vector<32x32xf32>, vector<32x32xf32> -> vector<512x32xf32>
    %83 = tpu.concatenate %66, %67, %68, %69, %70, %71, %72, %73, %74, %75, %76, %77, %78, %79, %80, %81 in 0 : vector<32x32xf32>, vector<32x32xf32>, vector<32x32xf32>, vector<32x32xf32>, vector<32x32xf32>, vector<32x32xf32>, vector<32x32xf32>, vector<32x32xf32>, vector<32x32xf32>, vector<32x32xf32>, vector<32x32xf32>, vector<32x32xf32>, vector<32x32xf32>, vector<32x32xf32>, vector<32x32xf32>, vector<32x32xf32> -> vector<512x32xf32>
    %84 = tpu.concatenate %82, %83 in 0 : vector<512x32xf32>, vector<512x32xf32> -> vector<1024x32xf32>
    %c0_18 = arith.constant 0 : index
    %c0_19 = arith.constant 0 : index
    %85 = vector.load %arg6[%c0_18, %c0_19] : memref<64x1024xf32, #tpu.memory_space<vmem>>, vector<64x1024xf32>
    %cst_20 = arith.constant dense<0.000000e+00> : vector<64x32xf32>
    %86 = tpu.matmul %85, %84, %cst_20 {dimension_numbers = #tpu.dot_dimension_numbers<[1], [0], [0], [1], [0, 0, 1, 1], [], []>} : vector<64x1024xf32>, vector<1024x32xf32>, vector<64x32xf32> -> vector<64x32xf32>
    %c0_21 = arith.constant 0 : index
    %c0_22 = arith.constant 0 : index
    %87 = vector.load %arg7[%c0_21, %c0_22] : memref<64x1xf32, #tpu.memory_space<vmem>>, vector<64x1xf32>
    %88 = vector.broadcast %87 : vector<64x1xf32> to vector<64x32xf32>
    %89 = arith.addf %86, %88 : vector<64x32xf32>
    %cst_23 = arith.constant 0.000000e+00 : f32
    %90 = vector.broadcast %cst_23 : f32 to vector<64x32xf32>
    %91 = arith.maximumf %89, %90 : vector<64x32xf32>
    %c0_24 = arith.constant 0 : index
    %c0_25 = arith.constant 0 : index
    %92 = vector.load %arg8[%c0_24, %c0_25] : memref<64x128xf32, #tpu.memory_space<vmem>>, vector<64x128xf32>
    %cst_26 = arith.constant dense<0.000000e+00> : vector<32x128xf32>
    %93 = tpu.matmul %91, %92, %cst_26 {dimension_numbers = #tpu.dot_dimension_numbers<[0], [0], [1], [1], [0, 1, 1, 1], [], []>} : vector<64x32xf32>, vector<64x128xf32>, vector<32x128xf32> -> vector<32x128xf32>
    %c0_27 = arith.constant 0 : index
    %c0_28 = arith.constant 0 : index
    %94 = vector.load %arg9[%c0_27, %c0_28] : memref<1x128xf32, #tpu.memory_space<vmem>>, vector<1x128xf32>
    %95 = vector.broadcast %94 : vector<1x128xf32> to vector<32x128xf32>
    %96 = arith.addf %93, %95 : vector<32x128xf32>
    %c0_29 = arith.constant 0 : index
    %c0_30 = arith.constant 0 : index
    %97 = vector.load %arg10[%c0_29, %c0_30] : memref<32x128xf32, #tpu.memory_space<vmem>>, vector<32x128xf32>
    tpu.vector_store %arg10[%c0_29, %c0_30], %96 {strides = array<i32>} : memref<32x128xf32, #tpu.memory_space<vmem>>, vector<32x128xf32>,
    return
  }
  func.func @transform_0(%arg0: i32) -> (i32, i32, i32) {
    %c0_i32 = arith.constant 0 : i32
    %c0_i32_0 = arith.constant 0 : i32
    %c0_i32_1 = arith.constant 0 : i32
    return %arg0, %c0_i32, %c0_i32_0 : i32, i32, i32
  }
  func.func @transform_1(%arg0: i32) -> (i32, i32) {
    %c0_i32 = arith.constant 0 : i32
    %c0_i32_0 = arith.constant 0 : i32
    %c0_i32_1 = arith.constant 0 : i32
    return %c0_i32, %c0_i32_0 : i32, i32
  }
  func.func @transform_2(%arg0: i32) -> (i32, i32) {
    %c0_i32 = arith.constant 0 : i32
    %c0_i32_0 = arith.constant 0 : i32
    %c0_i32_1 = arith.constant 0 : i32
    return %c0_i32, %c0_i32_0 : i32, i32
  }
  func.func @transform_3(%arg0: i32) -> (i32, i32) {
    %c0_i32 = arith.constant 0 : i32
    %c0_i32_0 = arith.constant 0 : i32
    %c0_i32_1 = arith.constant 0 : i32
    return %c0_i32, %c0_i32_0 : i32, i32
  }
  func.func @transform_4(%arg0: i32) -> (i32, i32) {
    %c0_i32 = arith.constant 0 : i32
    %c0_i32_0 = arith.constant 0 : i32
    %c0_i32_1 = arith.constant 0 : i32
    return %c0_i32, %c0_i32_0 : i32, i32
  }
  func.func @transform_5(%arg0: i32) -> (i32, i32) {
    %c0_i32 = arith.constant 0 : i32
    %c0_i32_0 = arith.constant 0 : i32
    %c0_i32_1 = arith.constant 0 : i32
    return %c0_i32, %c0_i32_0 : i32, i32
  }
  func.func @transform_6(%arg0: i32) -> (i32, i32) {
    %c0_i32 = arith.constant 0 : i32
    %c0_i32_0 = arith.constant 0 : i32
    %c0_i32_1 = arith.constant 0 : i32
    return %c0_i32, %c0_i32_0 : i32, i32
  }
  func.func @transform_7(%arg0: i32) -> (i32, i32) {
    %c0_i32 = arith.constant 0 : i32
    %c0_i32_0 = arith.constant 0 : i32
    %c0_i32_1 = arith.constant 0 : i32
    return %c0_i32, %c0_i32_0 : i32, i32
  }
  func.func @transform_8(%arg0: i32) -> (i32, i32) {
    %c0_i32 = arith.constant 0 : i32
    %c0_i32_0 = arith.constant 0 : i32
    %c0_i32_1 = arith.constant 0 : i32
    return %c0_i32, %c0_i32_0 : i32, i32
  }
  func.func @transform_9(%arg0: i32) -> (i32, i32) {
    %c0_i32 = arith.constant 0 : i32
    %c0_i32_0 = arith.constant 0 : i32
    return %arg0, %c0_i32 : i32, i32
  }
}

</mosaic_0001>

<bundles_post_ra>
// kernel: eegcnn_forward.1
= control target key start
LH: loop header
LB: loop body
LE: loop exit
PB: predicated region body
PF: predicated region fallthrough
CT: control target
= control target key end

     0   :  { %v40_v0 = vlaneseq  ;;  %v6296_v1 = vmov 2   ;;  %v6297_v2 = vmov 1   ;;  %v6298_v6 = vmov 0   ;;  %s6299_s18 = smov 32   ;;  %s6300_s19 = smov 96   ;;  %s10685_s1 = inlined_call_operand.vmem [shape: f32[16,3], index: 1, kind: input, shape index: {}]   ;;  %s10686_s0 = inlined_call_operand.vmem [shape: f32[1,1,4096], index: 0, kind: input, shape index: {}]   ;;  %s10687_s2 = inlined_call_operand.vmem [shape: f32[16,1], index: 2, kind: input, shape index: {}]   ;;  %s10688_s3 = inlined_call_operand.vmem [shape: f32[32,48], index: 3, kind: input, shape index: {}]   ;;  %s10689_s4 = inlined_call_operand.vmem [shape: f32[32,1], index: 4, kind: input, shape index: {}]   ;;  %s10690_s5 = inlined_call_operand.vmem [shape: f32[64,1024], index: 5, kind: input, shape index: {}]   ;;  %s10691_s6 = inlined_call_operand.vmem [shape: f32[64,1], index: 6, kind: input, shape index: {}]   ;;  %s10692_s7 = inlined_call_operand.vmem [shape: f32[64,128], index: 7, kind: input, shape index: {}]   ;;  %s10693_s8 = inlined_call_operand.vmem [shape: f32[1,128], index: 8, kind: input, shape index: {}]   ;;  %s10694_s9 = inlined_call_operand.vmem [shape: f32[32,128], index: 9, kind: output, shape index: {}]  }
   0x1   :  { %5651 = vset.pattern.permute.xlu0 %v6296_v1  ;;  %5650 = vset.pattern.permute.xlu1 %v6297_v2  ;;  %v426_v3 = vld [vmem:[%s10685_s1] sm:$0xff]  ;;  %v427_v5 = vld [vmem:[%s10685_s1 + $0x8] sm:$0xff]  ;;  %v6377_v16 = vld [vmem:[%s10686_s0 + $0x10] sm:$0xff]  ;;  %vm232_vm0 = vcmask 261120   ;;  %vm361_vm1 = vcmask 785408   ;;  %vm1778_vm2 = vcmask 523264  }
   0x2   :  { %799 = vperm.xlu0 %5651, %v426_v3   ;;  %631 = vperm.xlu1 %5650, %v426_v3   ;;  %v41_v4 = vshrl.u32 %v40_v0, 7  ;;  %v32_v9 = vld [vmem:[%s10686_s0] sm:$0xff]  ;;  %v6405_v24 = vld [vmem:[%s10686_s0 + $0x18] sm:$0xff]  ;;  %v1063_v38 = vld [vmem:[%s10687_s2 + $0x8] sm:$0xff]  ;;  %vm1939_vm5 = vcmask 392192  }
   0x3   :  { %v1062_v36 = vld [vmem:[%s10687_s2] sm:$0xff]  ;;  %v33_v42 = vld [vmem:[%s10686_s0 + $0x8] sm:$0xff]  ;;  %s6301_s0 = smov 64   ;;  %vm7903_vm3 = vmneg %vm1778_vm2 }
   0x4   :  { %v6359_v7 = vsub.s32 0, %v41_v4  ;;  %v46_v8 = vsub.s32 1, %v41_v4  ;;  %v50_v10 = vsub.s32 2, %v41_v4  ;;  %v6364_v11 = vsub.s32 3, %v41_v4  ;;  %vm5300_vm4 = vmpackc.low %vm7903_vm3, %vm7903_vm3 }
   0x5   :  { %v6366_v12 = vsub.s32 4, %v41_v4  ;;  %v6368_v13 = vsub.s32 5, %v41_v4  ;;  %v6370_v14 = vsub.s32 6, %v41_v4  ;;  %v6372_v15 = vsub.s32 7, %v41_v4  ;;  %vm5487_vm6 = vmpackc.low %vm1778_vm2, %vm1778_vm2 }
   0x6   :  { %5652 = vset.pattern.permute.xlu0 %v6298_v6  ;;  %635 = vperm.xlu1 %5650, %v427_v5   ;;  %v6379_v17 = vrot.slane %v32_v9, %v46_v8  ;;  %v6382_v18 = vrot.slane %v32_v9, %v6359_v7  ;;  %v6385_v19 = vrot.slane %v6377_v16, %v46_v8 }
   0x7   :  { %430 = vperm.xlu0 %5652, %v426_v3   ;;  %v6388_v20 = vrot.slane %v6377_v16, %v50_v10  ;;  %v6392_v21 = vrot.slane %v6377_v16, %v6364_v11  ;;  %v6396_v22 = vrot.slane %v6377_v16, %v6366_v12  ;;  %v6400_v23 = vrot.slane %v6377_v16, %v6370_v14 }
   0x8   :  { %v6409_v25 = vrot.slane %v6377_v16, %v6368_v13  ;;  %v6413_v26 = vrot.slane %v6377_v16, %v6372_v15  ;;  %v6416_v27 = vrot.slane %v6405_v24, %v46_v8  ;;  %v6419_v28 = vrot.slane %v6405_v24, %v50_v10 }
   0x9   :  { %11049 = vst [vmem:[#allocation2_spill] sm:$0xff] %v6400_v23  ;;  %v6423_v29 = vrot.slane %v6405_v24, %v6364_v11  ;;  %v6427_v30 = vrot.slane %v6405_v24, %v6366_v12  ;;  %v6431_v31 = vrot.slane %v6405_v24, %v6368_v13  ;;  %v6435_v32 = vrot.slane %v6405_v24, %v6370_v14 }
   0xa   :  { %5653 = vset.pattern.permute.xlu1 %v6296_v1  ;;  %11050 = vst [vmem:[#allocation3_spill] sm:$0xff] %v6409_v25  ;;  %11051 = vst [vmem:[#allocation4_spill] sm:$0xff] %v6413_v26  ;;  %v6439_v33 = vrot.slane %v6405_v24, %v6372_v15  ;;  %v6445_v34 = vrot.slane %v32_v9, %v50_v10  ;;  %v6456_v35 = vrot.slane %v32_v9, %v6364_v11 }
   0xb   :  { %435 = vperm.xlu0 %5652, %v427_v5   ;;  %803 = vperm.xlu1 %5653, %v427_v5   ;;  %11052 = vst [vmem:[#allocation5_spill] sm:$0xff] %v6435_v32  ;;  %v6464_v37 = vrot.slane %v32_v9, %v6366_v12  ;;  %v6472_v39 = vrot.slane %v32_v9, %v6368_v13 }
   0xc   :  { %11053 = vst [vmem:[#allocation6_spill] sm:$0xff] %v6439_v33  ;;  %v6479_v40 = vrot.slane %v32_v9, %v6370_v14  ;;  %v6486_v41 = vrot.slane %v32_v9, %v6372_v15  ;;  %v6496_v43 = vrot.slane %v33_v42, %v6359_v7  ;;  %v6502_v44 = vrot.slane %v33_v42, %v46_v8 }
   0xd   :  { %v6508_v45 = vrot.slane %v33_v42, %v50_v10  ;;  %v6515_v46 = vrot.slane %v33_v42, %v6364_v11  ;;  %v6522_v47 = vrot.slane %v33_v42, %v6366_v12  ;;  %v6529_v48 = vrot.slane %v33_v42, %v6368_v13 }
   0xe   :  { %v6536_v49 = vrot.slane %v33_v42, %v6370_v14  ;;  %v6543_v50 = vrot.slane %v33_v42, %v6372_v15  ;;  %v6551_v51 = vrot.slane %v6377_v16, %v6359_v7  ;;  %v6591_v52 = vrot.slane %v6405_v24, %v6359_v7 }
   0xf   :  { %170 = vrot.lane.b32.xlu0 %v6379_v17, %s6299_s18  ;;  %168 = vrot.lane.b32.xlu1 %v6382_v18, %s6299_s18 }
  0x10   :  { %5654 = vset.pattern.permute.xlu1 %v6298_v6  ;;  %11054 = vst [vmem:[#allocation7_spill] sm:$0xff] %v6591_v52 }
  0x13   :  { %297 = vrot.lane.b32.xlu0 %v6382_v18, %s6300_s19  ;;  %172 = vrot.lane.b32.xlu1 %v6445_v34, %s6299_s18 }
  0x17   :  { %301 = vrot.lane.b32.xlu0 %v6445_v34, %s6300_s19  ;;  %299 = vrot.lane.b32.xlu1 %v6379_v17, %s6300_s19 }
  0x1b   :  { %1066 = vperm.xlu0 %5652, %v1062_v36   ;;  %303 = vrot.lane.b32.xlu1 %v6456_v35, %s6300_s19 }
  0x1f   :  { %1071 = vperm.xlu1 %5654, %v1063_v38   ;;  %176 = vrot.lane.b32.xlu0 %v6464_v37, %s6299_s18 }
  0x23   :  { %307 = vrot.lane.b32.xlu0 %v6472_v39, %s6300_s19  ;;  %174 = vrot.lane.b32.xlu1 %v6456_v35, %s6299_s18 }
  0x27   :  { %180 = vrot.lane.b32.xlu0 %v6479_v40, %s6299_s18  ;;  %305 = vrot.lane.b32.xlu1 %v6464_v37, %s6300_s19 }
  0x2b   :  { %311 = vrot.lane.b32.xlu0 %v6486_v41, %s6300_s19  ;;  %178 = vrot.lane.b32.xlu1 %v6472_v39, %s6299_s18 }
  0x2f   :  { %184 = vrot.lane.b32.xlu0 %v6496_v43, %s6299_s18  ;;  %309 = vrot.lane.b32.xlu1 %v6479_v40, %s6300_s19 }
  0x33   :  { %315 = vrot.lane.b32.xlu0 %v6502_v44, %s6300_s19  ;;  %182 = vrot.lane.b32.xlu1 %v6486_v41, %s6299_s18 }
  0x37   :  { %188 = vrot.lane.b32.xlu0 %v6508_v45, %s6299_s18  ;;  %313 = vrot.lane.b32.xlu1 %v6496_v43, %s6300_s19 }
  0x3b   :  { %319 = vrot.lane.b32.xlu0 %v6515_v46, %s6300_s19  ;;  %186 = vrot.lane.b32.xlu1 %v6502_v44, %s6299_s18 }
  0x3f   :  { %192 = vrot.lane.b32.xlu0 %v6522_v47, %s6299_s18  ;;  %317 = vrot.lane.b32.xlu1 %v6508_v45, %s6300_s19 }
  0x43   :  { %323 = vrot.lane.b32.xlu0 %v6529_v48, %s6300_s19  ;;  %190 = vrot.lane.b32.xlu1 %v6515_v46, %s6299_s18 }
  0x47   :  { %196 = vrot.lane.b32.xlu0 %v6536_v49, %s6299_s18  ;;  %321 = vrot.lane.b32.xlu1 %v6522_v47, %s6300_s19 }
  0x4b   :  { %327 = vrot.lane.b32.xlu0 %v6543_v50, %s6300_s19  ;;  %194 = vrot.lane.b32.xlu1 %v6529_v48, %s6299_s18 }
  0x4f   :  { %200 = vrot.lane.b32.xlu0 %v6551_v51, %s6299_s18  ;;  %325 = vrot.lane.b32.xlu1 %v6536_v49, %s6300_s19 }
  0x53   :  { %331 = vrot.lane.b32.xlu0 %v6385_v19, %s6300_s19  ;;  %198 = vrot.lane.b32.xlu1 %v6543_v50, %s6299_s18 }
  0x57   :  { %204 = vrot.lane.b32.xlu0 %v6388_v20, %s6299_s18  ;;  %329 = vrot.lane.b32.xlu1 %v6551_v51, %s6300_s19 }
  0x5b   :  { %335 = vrot.lane.b32.xlu0 %v6392_v21, %s6300_s19  ;;  %202 = vrot.lane.b32.xlu1 %v6385_v19, %s6299_s18 }
  0x5f   :  { %206 = vrot.lane.b32.xlu0 %v6392_v21, %s6299_s18  ;;  %333 = vrot.lane.b32.xlu1 %v6388_v20, %s6300_s19 }
  0x63   :  { %337 = vrot.lane.b32.xlu0 %v6396_v22, %s6300_s19  ;;  %208 = vrot.lane.b32.xlu1 %v6396_v22, %s6299_s18 }
  0x67   :  { %212 = vrot.lane.b32.xlu0 %v6400_v23, %s6299_s18  ;;  %339 = vrot.lane.b32.xlu1 %v6409_v25, %s6300_s19 }
  0x6b   :  { %341 = vrot.lane.b32.xlu0 %v6400_v23, %s6300_s19  ;;  %210 = vrot.lane.b32.xlu1 %v6409_v25, %s6299_s18 }
  0x6f   :  { %214 = vrot.lane.b32.xlu0 %v6413_v26, %s6299_s18  ;;  %343 = vrot.lane.b32.xlu1 %v6413_v26, %s6300_s19 }
  0x73   :  { %345 = vrot.lane.b32.xlu0 %v6591_v52, %s6300_s19  ;;  %216 = vrot.lane.b32.xlu1 %v6591_v52, %s6299_s18 }
  0x77   :  { %347 = vrot.lane.b32.xlu1 %v6416_v27, %s6300_s19 }
  0x81   :  { %v6599_v53 = vpop.permute.xlu1 %631  ;;  %v6601_v54 = vpop.permute.xlu0 %799 }
  0x82   :  { %v671_v8 = vmul.f32 %v6599_v53, %v6379_v17  ;;  %v670_v9 = vmul.f32 %v6599_v53, %v6382_v18  ;;  %v672_v10 = vmul.f32 %v6599_v53, %v6445_v34 }
  0x85   :  { %v6603_v55 = vpop.permute.xlu1 %635 }
  0x86   :  { %v6605_v56 = vpop.permute.xlu0 %430  ;;  %v703_v24 = vmul.f32 %v6603_v55, %v6379_v17  ;;  %v702_v36 = vmul.f32 %v6603_v55, %v6382_v18 }
  0x8a   :  { %v6607_v57 = vpop.permute.xlu0 %435  ;;  %v6609_v58 = vpop.permute.xlu1 %803 }
  0x8e   :  { %v171_v59 = vpop.permute.xlu0 %170  ;;  %v169_v60 = vpop.permute.xlu1 %168 }
  0x8f   :  { %v233_v61 = vsel %vm232_vm0, %v169_v60, %v171_v59  ;;  %v296_v62 = vsel %vm232_vm0, 0.0, %v169_v60 }
  0x90   :  { %v441_v63 = vrot.slane %v296_v62, %v6359_v7  ;;  %v445_v0 = vrot.slane %v233_v61, %v6359_v7 }
  0x92   :  { %v298_v1 = vpop.permute.xlu0 %297  ;;  %v173_v2 = vpop.permute.xlu1 %172  ;;  %v566_v4 = vmul.f32 %v441_v63, %v6605_v56  ;;  %v567_v5 = vmul.f32 %v445_v0, %v6605_v56  ;;  %v598_v13 = vmul.f32 %v441_v63, %v6607_v57  ;;  %v599_v14 = vmul.f32 %v445_v0, %v6607_v57 }
  0x93   :  { %v234_v3 = vsel %vm232_vm0, %v171_v59, %v173_v2 }
  0x94   :  { %v449_v6 = vrot.slane %v234_v3, %v6359_v7  ;;  %v734_v59 = vadd.f32 %v670_v9, %v566_v4  ;;  %v735_v60 = vadd.f32 %v671_v8, %v567_v5  ;;  %v704_v4 = vmul.f32 %v6603_v55, %v6445_v34 }
  0x96   :  { %v302_v11 = vpop.permute.xlu0 %301  ;;  %v300_v12 = vpop.permute.xlu1 %299  ;;  %v568_v61 = vmul.f32 %v449_v6, %v6605_v56  ;;  %v600_v62 = vmul.f32 %v449_v6, %v6607_v57 }
  0x97   :  { %v362_v15 = vsel %vm361_vm1, %v298_v1, %v300_v12  ;;  %v363_v16 = vsel %vm361_vm1, %v300_v12, %v302_v11  ;;  %v766_v12 = vadd.f32 %v702_v36, %v598_v13 }
  0x98   :  { %v809_v38 = vrot.slane %v362_v15, %v6359_v7  ;;  %v813_v42 = vrot.slane %v363_v16, %v6359_v7  ;;  %v767_v15 = vadd.f32 %v703_v24, %v599_v14  ;;  %v736_v16 = vadd.f32 %v672_v10, %v568_v61 }
  0x99   :  { %v768_v52 = vadd.f32 %v704_v4, %v600_v62 }
  0x9a   :  { %v934_v63 = vmul.f32 %v809_v38, %v6601_v54  ;;  %v935_v0 = vmul.f32 %v813_v42, %v6601_v54  ;;  %v966_v1 = vmul.f32 %v809_v38, %v6609_v58  ;;  %v967_v17 = vmul.f32 %v813_v42, %v6609_v58  ;;  %v6641_v3 = vpop.permute.xlu0 %1066  ;;  %v304_v18 = vpop.permute.xlu1 %303 }
  0x9b   :  { %v364_v5 = vsel %vm361_vm1, %v302_v11, %v304_v18 }
  0x9c   :  { %v817_v6 = vrot.slane %v364_v5, %v6359_v7  ;;  %v998_v8 = vadd.f32 %v934_v63, %v734_v59  ;;  %v999_v9 = vadd.f32 %v935_v0, %v735_v60  ;;  %v1030_v26 = vadd.f32 %v966_v1, %v766_v12 }
  0x9d   :  { %v1031_v38 = vadd.f32 %v967_v17, %v767_v15 }
  0x9e   :  { %v936_v42 = vmul.f32 %v817_v6, %v6601_v54  ;;  %v968_v23 = vmul.f32 %v817_v6, %v6609_v58  ;;  %v177_v25 = vpop.permute.xlu0 %176  ;;  %v6649_v13 = vpop.permute.xlu1 %1071  ;;  %v6652_v14 = vadd.f32 %v6641_v3, %v998_v8  ;;  %v6655_v34 = vadd.f32 %v6641_v3, %v999_v9 }
  0x9f   :  { %v6660_v59 = vadd.f32 %v6649_v13, %v1030_v26  ;;  %v6663_v60 = vadd.f32 %v6649_v13, %v1031_v38  ;;  %v673_v6 = vmul.f32 %v6599_v53, %v6456_v35 }
  0xa0   :  { %11055 = vst [vmem:[#allocation8_spill] sm:$0xff] %v6652_v14  ;;  %11056 = vst [vmem:[#allocation9_spill] sm:$0xff] %v6655_v34  ;;  %v10706_v11 = vmax.f32 %v6652_v14, 0.0  ;;  %v10703_v10 = vmax.f32 %v6655_v34, 0.0  ;;  %v1000_v24 = vadd.f32 %v936_v42, %v736_v16  ;;  %v1032_v36 = vadd.f32 %v968_v23, %v768_v52 }
  0xa1   :  { %v10708_v4 = vmax.f32 %v6660_v59, 0.0  ;;  %v10707_v5 = vmax.f32 %v6663_v60, 0.0 }
  0xa2   :  { %v6665_v61 = vpop.permute.xlu0 %307  ;;  %v175_v62 = vpop.permute.xlu1 %174  ;;  %v5655_v63 = vpack.i.bf16 %v10703_v10, %v10706_v11  ;;  %v6672_v0 = vadd.f32 %v6641_v3, %v1000_v24  ;;  %v6675_v1 = vadd.f32 %v6649_v13, %v1032_v36 }
  0xa3   :  { %v235_v23 = vsel %vm232_vm0, %v173_v2, %v175_v62  ;;  %v236_v26 = vsel %vm232_vm0, %v175_v62, %v177_v25  ;;  %v674_v2 = vmul.f32 %v6599_v53, %v6464_v37 }
  0xa4   :  { %11057 = vst [vmem:[#allocation10_spill] sm:$0xff] %v6672_v0  ;;  %11058 = vst [vmem:[#allocation11_spill] sm:$0xff] %v6675_v1  ;;  %v453_v52 = vrot.slane %v235_v23, %v6359_v7  ;;  %v457_v17 = vrot.slane %v236_v26, %v6359_v7  ;;  %5656 = vrot.lane.b32.xlu1 %v5655_v63, %s6300_s19  ;;  %v10705_v12 = vmax.f32 %v6672_v0, 0.0  ;;  %v10704_v15 = vmax.f32 %v6675_v1, 0.0 }
  0xa5   :  { %v676_v26 = vmul.f32 %v6599_v53, %v6479_v40 }
  0xa6   :  { %v569_v8 = vmul.f32 %v453_v52, %v6605_v56  ;;  %v570_v9 = vmul.f32 %v457_v17, %v6605_v56  ;;  %v181_v16 = vpop.permute.xlu0 %180  ;;  %v306_v38 = vpop.permute.xlu1 %305  ;;  %v5660_v36 = vpack.i.bf16 %v10708_v4, %v10705_v12  ;;  %v5665_v62 = vpack.i.bf16 %v10704_v15, %v10707_v5 }
  0xa7   :  { %v365_v42 = vsel %vm361_vm1, %v304_v18, %v306_v38  ;;  %v366_v24 = vsel %vm361_vm1, %v306_v38, %v6665_v61  ;;  %v601_v63 = vmul.f32 %v453_v52, %v6607_v57  ;;  %v602_v23 = vmul.f32 %v457_v17, %v6607_v57 }
  0xa8   :  { %v675_v18 = vmul.f32 %v6599_v53, %v6472_v39  ;;  %v821_v38 = vrot.slane %v365_v42, %v6359_v7  ;;  %v825_v10 = vrot.slane %v366_v24, %v6359_v7  ;;  %5661 = vrot.lane.b32.xlu0 %v5660_v36, %s6300_s19  ;;  %5666 = vrot.lane.b32.xlu1 %v5665_v62, %s6300_s19 }
  0xa9   :  { %v6715_v15 = vmul.f32 %v6599_v53, %v6486_v41  ;;  %v705_v52 = vmul.f32 %v6603_v55, %v6456_v35  ;;  %v706_v17 = vmul.f32 %v6603_v55, %v6464_v37  ;;  %v737_v12 = vadd.f32 %v673_v6, %v569_v8 }
  0xaa   :  { %v738_v11 = vadd.f32 %v674_v2, %v570_v9  ;;  %v6721_v5 = vpop.permute.xlu0 %311  ;;  %v179_v42 = vpop.permute.xlu1 %178  ;;  %v937_v24 = vmul.f32 %v821_v38, %v6601_v54  ;;  %v938_v36 = vmul.f32 %v825_v10, %v6601_v54  ;;  %v969_v62 = vmul.f32 %v821_v38, %v6609_v58 }
  0xab   :  { %v970_v4 = vmul.f32 %v825_v10, %v6609_v58  ;;  %v769_v1 = vadd.f32 %v705_v52, %v601_v63  ;;  %v770_v0 = vadd.f32 %v706_v17, %v602_v23  ;;  %v237_v35 = vsel %vm232_vm0, %v177_v25, %v179_v42 }
  0xac   :  { %v238_v34 = vsel %vm232_vm0, %v179_v42, %v181_v16  ;;  %v461_v37 = vrot.slane %v237_v35, %v6359_v7  ;;  %220 = vrot.lane.b32.xlu0 %v6419_v28, %s6299_s18  ;;  %218 = vrot.lane.b32.xlu1 %v6416_v27, %s6299_s18  ;;  %v1001_v2 = vadd.f32 %v937_v24, %v737_v12 }
  0xad   :  { %v465_v6 = vrot.slane %v238_v34, %v6359_v7  ;;  %v707_v10 = vmul.f32 %v6603_v55, %v6472_v39  ;;  %v6739_v25 = vmul.f32 %v6599_v53, %v6496_v43  ;;  %v1033_v63 = vadd.f32 %v969_v62, %v769_v1 }
  0xae   :  { %v185_v8 = vpop.permute.xlu0 %184  ;;  %v310_v9 = vpop.permute.xlu1 %309  ;;  %v1002_v23 = vadd.f32 %v938_v36, %v738_v11  ;;  %v571_v34 = vmul.f32 %v461_v37, %v6605_v56  ;;  %v603_v52 = vmul.f32 %v461_v37, %v6607_v57  ;;  %v1034_v17 = vadd.f32 %v970_v4, %v770_v0 }
  0xaf   :  { %v572_v38 = vmul.f32 %v465_v6, %v6605_v56  ;;  %v367_v12 = vsel %vm361_vm1, %v6665_v61, %v310_v9  ;;  %v368_v39 = vsel %vm361_vm1, %v310_v9, %v6721_v5  ;;  %v6749_v42 = vadd.f32 %v6641_v3, %v1001_v2 }
  0xb0   :  { %v6752_v24 = vadd.f32 %v6649_v13, %v1033_v63  ;;  %v708_v11 = vmul.f32 %v6603_v55, %v6479_v40  ;;  %v604_v1 = vmul.f32 %v465_v6, %v6607_v57  ;;  %v739_v36 = vadd.f32 %v675_v18, %v571_v34 }
  0xb1   :  { %11059 = vst [vmem:[#allocation12_spill] sm:$0xff] %v6749_v42  ;;  %v740_v62 = vadd.f32 %v676_v26, %v572_v38  ;;  %v829_v0 = vrot.slane %v367_v12, %v6359_v7  ;;  %v833_v61 = vrot.slane %v368_v39, %v6359_v7  ;;  %v10715_v37 = vmax.f32 %v6749_v42, 0.0 }
  0xb2   :  { %v6759_v4 = vpop.permute.xlu0 %315  ;;  %v183_v35 = vpop.permute.xlu1 %182  ;;  %v10714_v2 = vmax.f32 %v6752_v24, 0.0  ;;  %v6766_v40 = vadd.f32 %v6641_v3, %v1002_v23  ;;  %v6769_v18 = vadd.f32 %v6649_v13, %v1034_v17  ;;  %v771_v26 = vadd.f32 %v707_v10, %v603_v52 }
  0xb3   :  { %v239_v9 = vsel %vm232_vm0, %v181_v16, %v183_v35  ;;  %v240_v63 = vsel %vm232_vm0, %v183_v35, %v185_v8  ;;  %v939_v6 = vmul.f32 %v829_v0, %v6601_v54  ;;  %v940_v34 = vmul.f32 %v833_v61, %v6601_v54 }
  0xb4   :  { %11060 = vst [vmem:[#allocation13_spill] sm:$0xff] %v6766_v40  ;;  %11061 = vst [vmem:[#allocation14_spill] sm:$0xff] %v6769_v18  ;;  %v971_v38 = vmul.f32 %v829_v0, %v6609_v58  ;;  %v469_v12 = vrot.slane %v239_v9, %v6359_v7  ;;  %v473_v39 = vrot.slane %v240_v63, %v6359_v7  ;;  %v10717_v23 = vmax.f32 %v6766_v40, 0.0 }
  0xb5   :  { %v5670_v16 = vpack.i.bf16 %v10714_v2, %v10715_v37  ;;  %v709_v10 = vmul.f32 %v6603_v55, %v6486_v41  ;;  %v10716_v52 = vmax.f32 %v6769_v18, 0.0  ;;  %v1003_v0 = vadd.f32 %v939_v6, %v739_v36 }
  0xb6   :  { %v6784_v17 = vpop.permute.xlu0 %188  ;;  %v314_v35 = vpop.permute.xlu1 %313  ;;  %v1004_v14 = vadd.f32 %v940_v34, %v740_v62  ;;  %v972_v9 = vmul.f32 %v833_v61, %v6609_v58  ;;  %v573_v63 = vmul.f32 %v469_v12, %v6605_v56  ;;  %v605_v42 = vmul.f32 %v469_v12, %v6607_v57 }
  0xb7   :  { %5671 = vrot.lane.b32.xlu0 %v5670_v16, %s6300_s19  ;;  %v1035_v2 = vadd.f32 %v971_v38, %v771_v26  ;;  %v5675_v41 = vpack.i.bf16 %v10716_v52, %v10717_v23  ;;  %v369_v37 = vsel %vm361_vm1, %v6721_v5, %v314_v35  ;;  %v370_v36 = vsel %vm361_vm1, %v314_v35, %v6759_v4 }
  0xb8   :  { %v6799_v62 = vadd.f32 %v6641_v3, %v1003_v0  ;;  %v772_v61 = vadd.f32 %v708_v11, %v604_v1  ;;  %v574_v6 = vmul.f32 %v473_v39, %v6605_v56  ;;  %v606_v34 = vmul.f32 %v473_v39, %v6607_v57 }
  0xb9   :  { %v741_v26 = vadd.f32 %v6715_v15, %v573_v63  ;;  %v773_v38 = vadd.f32 %v709_v10, %v605_v42  ;;  %5676 = vrot.lane.b32.xlu1 %v5675_v41, %s6300_s19  ;;  %v837_v12 = vrot.slane %v369_v37, %v6359_v7  ;;  %v841_v5 = vrot.slane %v370_v36, %v6359_v7 }
  0xba   :  { %11062 = vst [vmem:[#allocation15_spill] sm:$0xff] %v6799_v62  ;;  %v320_v16 = vpop.permute.xlu0 %319  ;;  %v187_v52 = vpop.permute.xlu1 %186  ;;  %v6808_v35 = vadd.f32 %v6641_v3, %v1004_v14  ;;  %v1036_v39 = vadd.f32 %v972_v9, %v772_v61  ;;  %v6814_v15 = vadd.f32 %v6649_v13, %v1035_v2  ;;  %v10721_v0 = vmax.f32 %v6799_v62, 0.0 }
  0xbb   :  { %v241_v11 = vsel %vm232_vm0, %v185_v8, %v187_v52  ;;  %v242_v1 = vsel %vm232_vm0, %v187_v52, %v6784_v17  ;;  %v941_v42 = vmul.f32 %v837_v12, %v6601_v54  ;;  %v942_v37 = vmul.f32 %v841_v5, %v6601_v54 }
  0xbc   :  { %11063 = vst [vmem:[#allocation16_spill] sm:$0xff] %v6808_v35  ;;  %11064 = vst [vmem:[#allocation17_spill] sm:$0xff] %v6814_v15  ;;  %v973_v10 = vmul.f32 %v837_v12, %v6609_v58  ;;  %v477_v14 = vrot.slane %v241_v11, %v6359_v7  ;;  %v481_v63 = vrot.slane %v242_v1, %v6359_v7  ;;  %v10719_v8 = vmax.f32 %v6808_v35, 0.0 }
  0xbd   :  { %v6824_v52 = vadd.f32 %v6649_v13, %v1036_v39  ;;  %v710_v2 = vmul.f32 %v6603_v55, %v6496_v43  ;;  %v1005_v61 = vadd.f32 %v941_v42, %v741_v26  ;;  %v742_v12 = vadd.f32 %v6739_v25, %v574_v6 }
  0xbe   :  { %v6829_v41 = vpop.permute.xlu0 %192  ;;  %v318_v36 = vpop.permute.xlu1 %317  ;;  %v974_v11 = vmul.f32 %v841_v5, %v6609_v58  ;;  %v575_v1 = vmul.f32 %v477_v14, %v6605_v56  ;;  %v1037_v23 = vadd.f32 %v973_v10, %v773_v38  ;;  %v5680_v39 = vpack.i.bf16 %v10719_v8, %v10721_v0 }
  0xbf   :  { %11065 = vst [vmem:[#allocation18_spill] sm:$0xff] %v6824_v52  ;;  %v10720_v43 = vmax.f32 %v6824_v52, 0.0  ;;  %v371_v9 = vsel %vm361_vm1, %v6759_v4, %v318_v36  ;;  %v372_v18 = vsel %vm361_vm1, %v318_v36, %v320_v16  ;;  %v774_v26 = vadd.f32 %v710_v2, %v606_v34 }
  0xc0   :  { %v679_v25 = vmul.f32 %v6599_v53, %v6502_v44  ;;  %v576_v6 = vmul.f32 %v481_v63, %v6605_v56  ;;  %v1006_v5 = vadd.f32 %v942_v37, %v742_v12  ;;  %5681 = vrot.lane.b32.xlu0 %v5680_v39, %s6300_s19  ;;  %v11066_v38 = vmax.f32 %v6814_v15, 0.0 }
  0xc1   :  { %v845_v10 = vrot.slane %v371_v9, %v6359_v7  ;;  %v849_v4 = vrot.slane %v372_v18, %v6359_v7  ;;  %v6853_v34 = vadd.f32 %v6641_v3, %v1005_v61  ;;  %v680_v2 = vmul.f32 %v6599_v53, %v6508_v45 }
  0xc2   :  { %v5685_v42 = vpack.i.bf16 %v10720_v43, %v11066_v38  ;;  %v191_v8 = vpop.permute.xlu1 %190  ;;  %v6858_v37 = vadd.f32 %v6649_v13, %v1037_v23  ;;  %v1038_v36 = vadd.f32 %v974_v11, %v774_v26  ;;  %v743_v12 = vadd.f32 %v679_v25, %v575_v1  ;;  %v324_v38 = vpop.permute.xlu0 %323 }
  0xc3   :  { %11067 = vst [vmem:[#allocation19_spill] sm:$0xff] %v6853_v34  ;;  %v943_v39 = vmul.f32 %v845_v10, %v6601_v54  ;;  %v944_v9 = vmul.f32 %v849_v4, %v6601_v54  ;;  %v243_v18 = vsel %vm232_vm0, %v6784_v17, %v191_v8  ;;  %v744_v61 = vadd.f32 %v680_v2, %v576_v6 }
  0xc4   :  { %11068 = vst [vmem:[#allocation20_spill] sm:$0xff] %v6858_v37  ;;  %5686 = vrot.lane.b32.xlu1 %v5685_v42, %s6300_s19  ;;  %v10723_v43 = vmax.f32 %v6853_v34, 0.0  ;;  %v10726_v0 = vmax.f32 %v6858_v37, 0.0  ;;  %v6868_v23 = vadd.f32 %v6641_v3, %v1006_v5  ;;  %v6871_v11 = vadd.f32 %v6649_v13, %v1038_v36 }
  0xc5   :  { %v1007_v26 = vadd.f32 %v943_v39, %v743_v12  ;;  %v485_v25 = vrot.slane %v243_v18, %v6359_v7  ;;  %v1008_v42 = vadd.f32 %v944_v9, %v744_v61  ;;  %v607_v52 = vmul.f32 %v477_v14, %v6607_v57 }
  0xc6   :  { %11069 = vst [vmem:[#allocation21_spill] sm:$0xff] %v6868_v23  ;;  %11070 = vst [vmem:[#allocation22_spill] sm:$0xff] %v6871_v11  ;;  %v322_v1 = vpop.permute.xlu1 %321  ;;  %v5690_v17 = vpack.i.bf16 %v10726_v0, %v10723_v43  ;;  %v10725_v6 = vmax.f32 %v6868_v23, 0.0  ;;  %v10724_v2 = vmax.f32 %v6871_v11, 0.0  ;;  %v608_v36 = vmul.f32 %v481_v63, %v6607_v57  ;;  %v6894_v18 = vpop.permute.xlu0 %196 }
  0xc7   :  { %v373_v5 = vsel %vm361_vm1, %v320_v16, %v322_v1  ;;  %v681_v12 = vmul.f32 %v6599_v53, %v6515_v46  ;;  %v244_v39 = vsel %vm232_vm0, %v191_v8, %v6829_v41  ;;  %v711_v9 = vmul.f32 %v6603_v55, %v6502_v44 }
  0xc8   :  { %5691 = vrot.lane.b32.xlu0 %v5690_v17, %s6300_s19  ;;  %v5695_v16 = vpack.i.bf16 %v10724_v2, %v10725_v6  ;;  %v853_v14 = vrot.slane %v373_v5, %v6359_v7  ;;  %v6898_v61 = vadd.f32 %v6641_v3, %v1007_v26  ;;  %v712_v8 = vmul.f32 %v6603_v55, %v6508_v45 }
  0xc9   :  { %v975_v44 = vmul.f32 %v845_v10, %v6609_v58  ;;  %v976_v17 = vmul.f32 %v849_v4, %v6609_v58  ;;  %v6905_v43 = vadd.f32 %v6641_v3, %v1008_v42  ;;  %v713_v2 = vmul.f32 %v6603_v55, %v6515_v46 }
  0xca   :  { %v195_v63 = vpop.permute.xlu1 %194  ;;  %11071 = vst [vmem:[#allocation23_spill] sm:$0xff] %v6898_v61  ;;  %v489_v6 = vrot.slane %v244_v39, %v6359_v7  ;;  %v577_v5 = vmul.f32 %v485_v25, %v6605_v56  ;;  %v609_v26 = vmul.f32 %v485_v25, %v6607_v57  ;;  %5696 = vrot.lane.b32.xlu1 %v5695_v16, %s6300_s19  ;;  %v10734_v10 = vmax.f32 %v6898_v61, 0.0  ;;  %v328_v23 = vpop.permute.xlu0 %327 }
  0xcb   :  { %11072 = vst [vmem:[#allocation24_spill] sm:$0xff] %v6905_v43  ;;  %v775_v0 = vadd.f32 %v711_v9, %v607_v52  ;;  %v776_v45 = vadd.f32 %v712_v8, %v608_v36  ;;  %v10732_v4 = vmax.f32 %v6905_v43, 0.0  ;;  %v374_v42 = vsel %vm361_vm1, %v322_v1, %v324_v38 }
  0xcc   :  { %v945_v11 = vmul.f32 %v853_v14, %v6601_v54  ;;  %v977_v46 = vmul.f32 %v853_v14, %v6609_v58  ;;  %349 = vrot.lane.b32.xlu0 %v6419_v28, %s6300_s19  ;;  %v245_v25 = vsel %vm232_vm0, %v6829_v41, %v195_v63  ;;  %v246_v52 = vsel %vm232_vm0, %v195_v63, %v6894_v18 }
  0xcd   :  { %v5700_v36 = vpack.i.bf16 %v10732_v4, %v10734_v10  ;;  %v1039_v1 = vadd.f32 %v975_v44, %v775_v0  ;;  %v1040_v9 = vadd.f32 %v976_v17, %v776_v45  ;;  %v578_v16 = vmul.f32 %v489_v6, %v6605_v56 }
  0xce   :  { %v326_v39 = vpop.permute.xlu1 %325  ;;  %v745_v14 = vadd.f32 %v681_v12, %v577_v5  ;;  %v777_v8 = vadd.f32 %v713_v2, %v609_v26  ;;  %351 = vrot.lane.b32.xlu1 %v6423_v29, %s6300_s19  ;;  %v857_v34 = vrot.slane %v374_v42, %v6359_v7  ;;  %v493_v44 = vrot.slane %v245_v25, %v6359_v7 }
  0xcf   :  { %v375_v41 = vsel %vm361_vm1, %v324_v38, %v326_v39  ;;  %v6934_v63 = vadd.f32 %v6649_v13, %v1039_v1  ;;  %v6937_v43 = vadd.f32 %v6649_v13, %v1040_v9  ;;  %v376_v0 = vsel %vm361_vm1, %v326_v39, %v328_v23 }
  0xd0   :  { %v497_v2 = vrot.slane %v246_v52, %v6359_v7  ;;  %5701 = vrot.lane.b32.xlu0 %v5700_v36, %s6300_s19  ;;  %v1009_v17 = vadd.f32 %v945_v11, %v745_v14  ;;  %v1041_v5 = vadd.f32 %v977_v46, %v777_v8  ;;  %v610_v38 = vmul.f32 %v489_v6, %v6607_v57 }
  0xd1   :  { %11073 = vst [vmem:[#allocation25_spill] sm:$0xff] %v6934_v63  ;;  %11074 = vst [vmem:[#allocation26_spill] sm:$0xff] %v6937_v43  ;;  %v10733_v26 = vmax.f32 %v6934_v63, 0.0  ;;  %v10731_v45 = vmax.f32 %v6937_v43, 0.0  ;;  %v861_v42 = vrot.slane %v375_v41, %v6359_v7  ;;  %v682_v39 = vmul.f32 %v6599_v53, %v6522_v47 }
  0xd2   :  { %v199_v12 = vpop.permute.xlu1 %198  ;;  %v714_v25 = vmul.f32 %v6603_v55, %v6522_v47  ;;  %v865_v52 = vrot.slane %v376_v0, %v6359_v7  ;;  %v946_v36 = vmul.f32 %v857_v34, %v6601_v54  ;;  %v978_v11 = vmul.f32 %v857_v34, %v6609_v58 }
  0xd3   :  { %v5705_v6 = vpack.i.bf16 %v10731_v45, %v10733_v26  ;;  %v6959_v46 = vadd.f32 %v6641_v3, %v1009_v17  ;;  %v683_v1 = vmul.f32 %v6599_v53, %v6529_v48  ;;  %v579_v9 = vmul.f32 %v493_v44, %v6605_v56  ;;  %v6974_v45 = vpop.permute.xlu0 %200 }
  0xd4   :  { %v580_v47 = vmul.f32 %v497_v2, %v6605_v56  ;;  %222 = vrot.lane.b32.xlu0 %v6423_v29, %s6299_s18  ;;  %v6968_v34 = vadd.f32 %v6649_v13, %v1041_v5  ;;  %v746_v14 = vadd.f32 %v682_v39, %v578_v16  ;;  %v778_v8 = vadd.f32 %v714_v25, %v610_v38 }
  0xd5   :  { %11075 = vst [vmem:[#allocation27_spill] sm:$0xff] %v6959_v46  ;;  %v684_v41 = vmul.f32 %v6599_v53, %v6536_v49  ;;  %5706 = vrot.lane.b32.xlu1 %v5705_v6, %s6300_s19  ;;  %v947_v0 = vmul.f32 %v861_v42, %v6601_v54  ;;  %v948_v4 = vmul.f32 %v865_v52, %v6601_v54 }
  0xd6   :  { %11076 = vst [vmem:[#allocation28_spill] sm:$0xff] %v6968_v34  ;;  %v330_v17 = vpop.permute.xlu1 %329  ;;  %v247_v26 = vsel %vm232_vm0, %v6894_v18, %v199_v12  ;;  %v10747_v16 = vmax.f32 %v6968_v34, 0.0  ;;  %v1010_v38 = vadd.f32 %v946_v36, %v746_v14  ;;  %v1042_v39 = vadd.f32 %v978_v11, %v778_v8 }
  0xd7   :  { %v611_v25 = vmul.f32 %v493_v44, %v6607_v57  ;;  %v747_v10 = vadd.f32 %v683_v1, %v579_v9  ;;  %v748_v6 = vadd.f32 %v684_v41, %v580_v47  ;;  %v377_v43 = vsel %vm361_vm1, %v328_v23, %v330_v17  ;;  %v7008_v14 = vpop.permute.xlu0 %331 }
  0xd8   :  { %353 = vrot.lane.b32.xlu0 %v6427_v30, %s6300_s19  ;;  %v715_v63 = vmul.f32 %v6603_v55, %v6529_v48  ;;  %v612_v18 = vmul.f32 %v497_v2, %v6607_v57  ;;  %v979_v5 = vmul.f32 %v861_v42, %v6609_v58  ;;  %v501_v36 = vrot.slane %v247_v26, %v6359_v7 }
  0xd9   :  { %224 = vrot.lane.b32.xlu1 %v6427_v30, %s6299_s18  ;;  %v248_v44 = vsel %vm232_vm0, %v199_v12, %v6974_v45  ;;  %v11077_v11 = vmax.f32 %v6959_v46, 0.0  ;;  %v1011_v1 = vadd.f32 %v947_v0, %v747_v10  ;;  %v1012_v9 = vadd.f32 %v948_v4, %v748_v6 }
  0xda   :  { %v869_v48 = vrot.slane %v377_v43, %v6359_v7  ;;  %v7000_v2 = vadd.f32 %v6641_v3, %v1010_v38  ;;  %v7003_v42 = vadd.f32 %v6649_v13, %v1042_v39  ;;  %v716_v26 = vmul.f32 %v6603_v55, %v6536_v49 }
  0xdb   :  { %v5710_v23 = vpack.i.bf16 %v10747_v16, %v11077_v11  ;;  %v779_v47 = vadd.f32 %v715_v63, %v611_v25  ;;  %v980_v12 = vmul.f32 %v865_v52, %v6609_v58  ;;  %v505_v10 = vrot.slane %v248_v44, %v6359_v7 }
  0xdc   :  { %11078 = vst [vmem:[#allocation29_spill] sm:$0xff] %v7000_v2  ;;  %11079 = vst [vmem:[#allocation30_spill] sm:$0xff] %v7003_v42  ;;  %v581_v43 = vmul.f32 %v501_v36, %v6605_v56  ;;  %v378_v4 = vsel %vm361_vm1, %v330_v17, %v7008_v14  ;;  %v780_v8 = vadd.f32 %v716_v26, %v612_v18  ;;  %v10746_v38 = vmax.f32 %v7000_v2, 0.0 }
  0xdd   :  { %5711 = vrot.lane.b32.xlu0 %v5710_v23, %s6300_s19  ;;  %355 = vrot.lane.b32.xlu1 %v6431_v31, %s6300_s19  ;;  %v7018_v49 = vadd.f32 %v6641_v3, %v1011_v1  ;;  %v7021_v63 = vadd.f32 %v6641_v3, %v1012_v9  ;;  %v1043_v52 = vadd.f32 %v979_v5, %v779_v47  ;;  %v10744_v39 = vmax.f32 %v7003_v42, 0.0 }
  0xde   :  { %v685_v41 = vmul.f32 %v6599_v53, %v6543_v50  ;;  %v949_v0 = vmul.f32 %v869_v48, %v6601_v54  ;;  %v613_v25 = vmul.f32 %v501_v36, %v6607_v57  ;;  %v873_v17 = vrot.slane %v378_v4, %v6359_v7 }
  0xdf   :  { %11080 = vst [vmem:[#allocation31_spill] sm:$0xff] %v7018_v49  ;;  %11081 = vst [vmem:[#allocation32_spill] sm:$0xff] %v7021_v63  ;;  %v1044_v6 = vadd.f32 %v980_v12, %v780_v8  ;;  %v717_v5 = vmul.f32 %v6603_v55, %v6543_v50  ;;  %v582_v18 = vmul.f32 %v505_v10, %v6605_v56  ;;  %v10745_v36 = vmax.f32 %v7018_v49, 0.0 }
  0xe0   :  { %v614_v44 = vmul.f32 %v505_v10, %v6607_v57  ;;  %v749_v11 = vadd.f32 %v685_v41, %v581_v43  ;;  %v981_v23 = vmul.f32 %v869_v48, %v6609_v58  ;;  %v10738_v1 = vmax.f32 %v7021_v63, 0.0 }
  0xe1   :  { %228 = vrot.lane.b32.xlu0 %v6435_v32, %s6299_s18  ;;  %226 = vrot.lane.b32.xlu1 %v6431_v31, %s6299_s18  ;;  %v7042_v9 = vadd.f32 %v6649_v13, %v1043_v52  ;;  %v686_v50 = vmul.f32 %v6599_v53, %v6551_v51  ;;  %v718_v26 = vmul.f32 %v6603_v55, %v6551_v51  ;;  %v203_v51 = vpop.permute.xlu1 %202 }
  0xe2   :  { %v5715_v47 = vpack.i.bf16 %v10744_v39, %v10746_v38  ;;  %v1013_v12 = vadd.f32 %v949_v0, %v749_v11  ;;  %v781_v48 = vadd.f32 %v717_v5, %v613_v25  ;;  %v950_v10 = vmul.f32 %v873_v17, %v6601_v54 }
  0xe3   :  { %11082 = vst [vmem:[#allocation33_spill] sm:$0xff] %v7042_v9  ;;  %v982_v43 = vmul.f32 %v873_v17, %v6609_v58  ;;  %v7057_v4 = vadd.f32 %v6649_v13, %v1044_v6  ;;  %v750_v8 = vadd.f32 %v686_v50, %v582_v18  ;;  %v782_v52 = vadd.f32 %v718_v26, %v614_v44  ;;  %v205_v50 = vpop.permute.xlu0 %204 }
  0xe4   :  { %v5720_v41 = vpack.i.bf16 %v10738_v1, %v10745_v36  ;;  %v10743_v0 = vmax.f32 %v7042_v9, 0.0  ;;  %v1045_v17 = vadd.f32 %v981_v23, %v781_v48  ;;  %v7067_v5 = vadd.f32 %v6641_v3, %v1013_v12 }
  0xe5   :  { %357 = vrot.lane.b32.xlu0 %v6435_v32, %s6300_s19  ;;  %11083 = vst [vmem:[#allocation34_spill] sm:$0xff] %v7057_v4  ;;  %5716 = vrot.lane.b32.xlu1 %v5715_v47, %s6300_s19  ;;  %v10737_v25 = vmax.f32 %v7057_v4, 0.0  ;;  %v1014_v18 = vadd.f32 %v950_v10, %v750_v8  ;;  %v1046_v44 = vadd.f32 %v982_v43, %v782_v52  ;;  %v334_v48 = vpop.permute.xlu1 %333 }
  0xe6   :  { %11084 = vst [vmem:[#allocation35_spill] sm:$0xff] %v7067_v5  ;;  %v7071_v6 = vadd.f32 %v6649_v13, %v1045_v17  ;;  %v10740_v23 = vmax.f32 %v7067_v5, 0.0  ;;  %v689_v39 = vmul.f32 %v6599_v53, %v6392_v21  ;;  %v7127_v36 = vmul.f32 %v6599_v53, %v6396_v22  ;;  %v11090_v5 = vld [vmem:[#allocation4_spill] sm:$0xff] }
  0xe7   :  { %v5725_v11 = vpack.i.bf16 %v10737_v25, %v10743_v0  ;;  %v7082_v47 = vadd.f32 %v6641_v3, %v1014_v18  ;;  %v7085_v12 = vadd.f32 %v6649_v13, %v1046_v44  ;;  %v720_v0 = vmul.f32 %v6603_v55, %v6388_v20 }
  0xe8   :  { %11085 = vst [vmem:[#allocation36_spill] sm:$0xff] %v7071_v6  ;;  %v10739_v26 = vmax.f32 %v7071_v6, 0.0  ;;  %v7156_v4 = vmul.f32 %v6599_v53, %v11090_v5  ;;  %v7160_v63 = vmul.f32 %v6603_v55, %v11090_v5  ;;  %v7176_v42 = vmul.f32 %v6599_v53, %v6416_v27 }
  0xe9   :  { %5721 = vrot.lane.b32.xlu0 %v5720_v41, %s6300_s19  ;;  %359 = vrot.lane.b32.xlu1 %v6439_v33, %s6300_s19  ;;  %11086 = vst [vmem:[#allocation37_spill] sm:$0xff] %v7082_v47  ;;  %11087 = vst [vmem:[#allocation38_spill] sm:$0xff] %v7085_v12  ;;  %v10741_v10 = vmax.f32 %v7082_v47, 0.0  ;;  %v10742_v43 = vmax.f32 %v7085_v12, 0.0  ;;  %v336_v41 = vpop.permute.xlu0 %335  ;;  %v7101_v17 = vpop.permute.xlu1 %208  ;;  %v7180_v5 = vmul.f32 %v6599_v53, %v6419_v28 }
  0xea   :  { %v5730_v8 = vpack.i.bf16 %v10739_v26, %v10740_v23  ;;  %v249_v23 = vsel %vm232_vm0, %v6974_v45, %v203_v51  ;;  %v721_v45 = vmul.f32 %v6603_v55, %v6392_v21  ;;  %v7184_v49 = vmul.f32 %v6603_v55, %v6416_v27 }
  0xeb   :  { %v5735_v52 = vpack.i.bf16 %v10742_v43, %v10741_v10  ;;  %v687_v10 = vmul.f32 %v6599_v53, %v6385_v19  ;;  %v250_v43 = vsel %vm232_vm0, %v203_v51, %v205_v50  ;;  %v509_v38 = vrot.slane %v249_v23, %v6359_v7  ;;  %v11088_v51 = vld [vmem:[#allocation3_spill] sm:$0xff] }
  0xec   :  { %v7136_v16 = vmul.f32 %v6599_v53, %v11088_v51  ;;  %v513_v21 = vrot.slane %v250_v43, %v6359_v7  ;;  %v7148_v23 = vmul.f32 %v6603_v55, %v11088_v51  ;;  %v11091_v43 = vld [vmem:[#allocation7_spill] sm:$0xff]  ;;  %11092 = vst [vmem:[#allocation3_spill] sm:$0xff] %v7176_v42  ;;  %11094 = vst [vmem:[#allocation4_spill] sm:$0xff] %v7184_v49 }
  0xed   :  { %230 = vrot.lane.b32.xlu0 %v6439_v33, %s6299_s18  ;;  %5726 = vrot.lane.b32.xlu1 %v5725_v11, %s6300_s19  ;;  %v207_v18 = vpop.permute.xlu0 %206  ;;  %v340_v44 = vpop.permute.xlu1 %339  ;;  %v7168_v51 = vmul.f32 %v6603_v55, %v11091_v43  ;;  %v379_v46 = vsel %vm361_vm1, %v7008_v14, %v334_v48  ;;  %v615_v33 = vmul.f32 %v509_v38, %v6607_v57 }
  0xee   :  { %v251_v12 = vsel %vm232_vm0, %v205_v50, %v207_v18  ;;  %v7164_v50 = vmul.f32 %v6599_v53, %v11091_v43  ;;  %v583_v43 = vmul.f32 %v509_v38, %v6605_v56  ;;  %v584_v34 = vmul.f32 %v513_v21, %v6605_v56 }
  0xef   :  { %v517_v2 = vrot.slane %v251_v12, %v6359_v7  ;;  %v616_v61 = vmul.f32 %v513_v21, %v6607_v57  ;;  %v7196_v32 = vmul.f32 %v6603_v55, %v6419_v28  ;;  %v7201_v12 = vmul.f32 %v6599_v53, %v6423_v29 }
  0xf0   :  { %v7205_v14 = vmul.f32 %v6603_v55, %v6423_v29  ;;  %v877_v38 = vrot.slane %v379_v46, %v6359_v7 }
  0xf1   :  { %5731 = vrot.lane.b32.xlu1 %v5730_v8, %s6300_s19  ;;  %5736 = vrot.lane.b32.xlu0 %v5735_v52, %s6300_s19  ;;  %v338_v11 = vpop.permute.xlu0 %337  ;;  %v7104_v25 = vpop.permute.xlu1 %210  ;;  %v688_v8 = vmul.f32 %v6599_v53, %v6388_v20  ;;  %v719_v52 = vmul.f32 %v6603_v55, %v6385_v19  ;;  %v7132_v19 = vmul.f32 %v6603_v55, %v6396_v22  ;;  %v11089_v20 = vld [vmem:[#allocation2_spill] sm:$0xff] }
  0xf2   :  { %v7140_v47 = vmul.f32 %v6599_v53, %v11089_v20  ;;  %v7152_v22 = vmul.f32 %v6603_v55, %v11089_v20  ;;  %v252_v20 = vsel %vm232_vm0, %v207_v18, %v7101_v17  ;;  %11093 = vst [vmem:[#allocation2_spill] sm:$0xff] %v7180_v5  ;;  %v380_v18 = vsel %vm361_vm1, %v334_v48, %v336_v41 }
  0xf3   :  { %11095 = vst [vmem:[#allocation7_spill] sm:$0xff] %v7196_v32  ;;  %v521_v27 = vrot.slane %v252_v20, %v6359_v7  ;;  %11096 = vst [vmem:[#allocation39_spill] sm:$0xff] %v7201_v12  ;;  %v7209_v48 = vmul.f32 %v6599_v53, %v6427_v30  ;;  %v881_v21 = vrot.slane %v380_v18, %v6359_v7 }
  0xf4   :  { %11097 = vst [vmem:[#allocation40_spill] sm:$0xff] %v7205_v14  ;;  %v381_v28 = vsel %vm361_vm1, %v336_v41, %v338_v11  ;;  %v7218_v20 = vmul.f32 %v6603_v55, %v6427_v30  ;;  %v751_v12 = vadd.f32 %v687_v10, %v583_v43  ;;  %v585_v29 = vmul.f32 %v517_v2, %v6605_v56 }
  0xf5   :  { %v7106_v1 = vpop.permute.xlu0 %212  ;;  %v7108_v26 = vpop.permute.xlu1 %343  ;;  %11098 = vst [vmem:[#allocation41_spill] sm:$0xff] %v7209_v48  ;;  %v617_v14 = vmul.f32 %v517_v2, %v6607_v57  ;;  %v382_v49 = vsel %vm361_vm1, %v338_v11, %v340_v44  ;;  %v752_v46 = vadd.f32 %v688_v8, %v584_v34  ;;  %v783_v5 = vadd.f32 %v719_v52, %v615_v33 }
  0xf6   :  { %11099 = vst [vmem:[#allocation42_spill] sm:$0xff] %v7218_v20  ;;  %v784_v18 = vadd.f32 %v720_v0, %v616_v61  ;;  %v885_v37 = vrot.slane %v381_v28, %v6359_v7  ;;  %v586_v30 = vmul.f32 %v521_v27, %v6605_v56  ;;  %v618_v10 = vmul.f32 %v521_v27, %v6607_v57 }
  0xf7   :  { %v253_v2 = vsel %vm232_vm0, %v7101_v17, %v7104_v25  ;;  %v951_v11 = vmul.f32 %v877_v38, %v6601_v54  ;;  %v983_v43 = vmul.f32 %v877_v38, %v6609_v58  ;;  %v984_v33 = vmul.f32 %v881_v21, %v6609_v58 }
  0xf8   :  { %v889_v61 = vrot.slane %v382_v49, %v6359_v7  ;;  %v7237_v34 = vadd.f32 %v689_v39, %v585_v29  ;;  %v7239_v0 = vadd.f32 %v721_v45, %v617_v14  ;;  %v254_v17 = vsel %vm232_vm0, %v7104_v25, %v7106_v1 }
  0xf9   :  { %v7144_v6 = vpop.permute.xlu0 %341  ;;  %v7170_v9 = vpop.permute.xlu1 %216  ;;  %v525_v27 = vrot.slane %v253_v2, %v6359_v7  ;;  %v7248_v49 = vmul.f32 %v885_v37, %v6601_v54  ;;  %v7251_v39 = vmul.f32 %v885_v37, %v6609_v58  ;;  %v7254_v45 = vadd.f32 %v7127_v36, %v586_v30 }
  0xfa   :  { %v383_v41 = vsel %vm361_vm1, %v340_v44, %v7144_v6  ;;  %v952_v44 = vmul.f32 %v881_v21, %v6601_v54  ;;  %v7257_v14 = vadd.f32 %v7132_v19, %v618_v10  ;;  %v7260_v21 = vmul.f32 %v889_v61, %v6601_v54 }
  0xfb   :  { %v893_v8 = vrot.slane %v383_v41, %v6359_v7  ;;  %v1047_v25 = vadd.f32 %v983_v43, %v783_v5  ;;  %v1048_v29 = vadd.f32 %v984_v33, %v784_v18  ;;  %v1015_v41 = vadd.f32 %v951_v11, %v751_v12 }
  0xfc   :  { %v7263_v2 = vmul.f32 %v889_v61, %v6609_v58  ;;  %v529_v37 = vrot.slane %v254_v17, %v6359_v7  ;;  %v1016_v42 = vadd.f32 %v952_v44, %v752_v46  ;;  %v587_v36 = vmul.f32 %v525_v27, %v6605_v56 }
  0xfd   :  { %v7214_v32 = vpop.permute.xlu0 %214  ;;  %v7223_v48 = vpop.permute.xlu1 %347  ;;  %v619_v30 = vmul.f32 %v525_v27, %v6607_v57  ;;  %v384_v33 = vsel %vm361_vm1, %v7144_v6, %v7108_v26  ;;  %v7288_v61 = vadd.f32 %v6649_v13, %v1048_v29 }
  0xfe   :  { %v255_v19 = vsel %vm232_vm0, %v7106_v1, %v7214_v32  ;;  %v7285_v1 = vadd.f32 %v6649_v13, %v1047_v25  ;;  %v7301_v6 = vadd.f32 %v6641_v3, %v1016_v42  ;;  %v11100_v25 = vmax.f32 %v6660_v59, 0.0 }
  0xff   :  { %v533_v42 = vrot.slane %v255_v19, %v6359_v7  ;;  %v897_v59 = vrot.slane %v384_v33, %v6359_v7 }
 0x100   :  { %v10772_v19 = vmax.f32 %v7301_v6, 0.0 }
 0x101   :  { %v346_v38 = vpop.permute.xlu0 %345 }
 0x102   :  { %v385_v33 = vsel %vm361_vm1, %v7108_v26, %v346_v38 }
 0x116   :  { %v5657_v52 = vpop.permute.xlu1 %5656 }
 0x117   :  { %v5659_v28 = vunpack.i.h.bf16 %v5657_v52  ;;  %v5658_v20 = vunpack.i.l.bf16 %v5657_v52  ;;  %v955_v52 = vmul.f32 %v893_v8, %v6601_v54 }
 0x119   :  { %v1394_v12 = vsel %vm361_vm1, %v5658_v20, %v5659_v28  ;;  %v7291_v20 = vadd.f32 %v6641_v3, %v1015_v41  ;;  %v11101_v41 = vmax.f32 %v6663_v60, 0.0  ;;  %v256_v60 = vsel %vm232_vm0, %v7214_v32, %v7170_v9 }
 0x11a   :  { %v7272_v10 = vpop.permute.xlu0 %5661  ;;  %v7274_v5 = vpop.permute.xlu1 %5666  ;;  %v386_v32 = vsel %vm361_vm1, %v346_v38, %v7223_v48 }
 0x11b   :  { %v5664_v18 = vunpack.i.h.bf16 %v7272_v10  ;;  %v10771_v11 = vunpack.i.l.bf16 %v7272_v10  ;;  %v10769_v46 = vunpack.i.h.bf16 %v7274_v5  ;;  %v5668_v43 = vunpack.i.l.bf16 %v7274_v5 }
 0x11d   :  { %v1425_v44 = vsel %vm361_vm1, %v5664_v18, %v5668_v43  ;;  %v1426_v17 = vsel %vm361_vm1, %v5668_v43, %v10769_v46  ;;  %v1395_v27 = vsel %vm361_vm1, %v5659_v28, %v10771_v11  ;;  %v11102_v18 = vld [vmem:[#allocation8_spill] sm:$0xff]  ;;  %v11104_v43 = vld [vmem:[#allocation9_spill] sm:$0xff]  ;;  %v588_v28 = vmul.f32 %v529_v37, %v6605_v56 }
 0x11e   :  { %v7305_v29 = vmax.f32 %v11100_v25, %v1425_v44  ;;  %v7309_v35 = vmax.f32 %v11101_v41, %v1426_v17  ;;  %v11103_v15 = vmax.f32 %v11102_v18, 0.0  ;;  %v11105_v46 = vmax.f32 %v11104_v43, 0.0 }
 0x11f   :  { %v10780_v17 = vmax.f32 %v7291_v20, 0.0  ;;  %v620_v25 = vmul.f32 %v529_v37, %v6607_v57  ;;  %v755_v41 = vadd.f32 %v7136_v16, %v587_v36  ;;  %v787_v18 = vadd.f32 %v7148_v23, %v619_v30  ;;  %v7352_v37 = vpop.permute.xlu0 %220 }
 0x120   :  { %v7313_v62 = vmax.f32 %v11103_v15, %v1394_v12  ;;  %v7317_v40 = vmax.f32 %v11105_v46, %v1395_v27  ;;  %v5750_v44 = vpack.i.bf16 %v7309_v35, %v7305_v29  ;;  %v10781_v12 = vmax.f32 %v7285_v1, 0.0 }
 0x121   :  { %v10779_v46 = vmax.f32 %v7288_v61, 0.0  ;;  %v987_v27 = vmul.f32 %v893_v8, %v6609_v58  ;;  %v589_v43 = vmul.f32 %v533_v42, %v6605_v56  ;;  %v621_v11 = vmul.f32 %v533_v42, %v6607_v57 }
 0x122   :  { %v5740_v15 = vpack.i.bf16 %v7317_v40, %v7313_v62  ;;  %5751 = vrot.lane.b32.xlu0 %v5750_v44, %s6301_s0  ;;  %v956_v8 = vmul.f32 %v897_v59, %v6601_v54  ;;  %v988_v16 = vmul.f32 %v897_v59, %v6609_v58  ;;  %v537_v23 = vrot.slane %v256_v60, %v6359_v7 }
 0x123   :  { %v5755_v36 = vpack.i.bf16 %v10779_v46, %v10781_v12  ;;  %v756_v26 = vadd.f32 %v7140_v47, %v588_v28  ;;  %v5745_v38 = vpack.i.bf16 %v10772_v19, %v10780_v17  ;;  %v1017_v30 = vadd.f32 %v7248_v49, %v7237_v34  ;;  %v7374_v19 = vpop.permute.xlu1 %218 }
 0x124   :  { %5741 = vrot.lane.b32.xlu1 %v5740_v15, %s6301_s0  ;;  %v1049_v42 = vadd.f32 %v7251_v39, %v7239_v0  ;;  %v788_v59 = vadd.f32 %v7152_v22, %v620_v25  ;;  %v7368_v60 = vadd.f32 %v955_v52, %v755_v41  ;;  %v901_v44 = vrot.slane %v385_v33, %v6359_v7 }
 0x125   :  { %v905_v15 = vrot.slane %v386_v32, %v6359_v7  ;;  %v1051_v47 = vadd.f32 %v987_v27, %v787_v18  ;;  %v757_v28 = vadd.f32 %v7156_v4, %v589_v43  ;;  %v1018_v34 = vadd.f32 %v7260_v21, %v7254_v45 }
 0x126   :  { %5756 = vrot.lane.b32.xlu0 %v5755_v36, %s6300_s19  ;;  %v1050_v22 = vadd.f32 %v7263_v2, %v7257_v14  ;;  %v789_v0 = vadd.f32 %v7160_v63, %v621_v11  ;;  %v1020_v49 = vadd.f32 %v956_v8, %v756_v26  ;;  %v1052_v39 = vadd.f32 %v988_v16, %v788_v59  ;;  %v11108_v26 = vld [vmem:[#allocation10_spill] sm:$0xff] }
 0x127   :  { %v590_v52 = vmul.f32 %v537_v23, %v6605_v56  ;;  %v7384_v4 = vadd.f32 %v6641_v3, %v1017_v30  ;;  %v7387_v25 = vadd.f32 %v6649_v13, %v1049_v42  ;;  %v957_v45 = vmul.f32 %v901_v44, %v6601_v54 }
 0x128   :  { %5746 = vrot.lane.b32.xlu1 %v5745_v38, %s6300_s19  ;;  %v989_v21 = vmul.f32 %v901_v44, %v6609_v58  ;;  %v622_v14 = vmul.f32 %v537_v23, %v6607_v57  ;;  %v958_v63 = vmul.f32 %v905_v15, %v6601_v54  ;;  %v11106_v11 = vunpack.i.l.bf16 %v7272_v10  ;;  %v11110_v10 = vld [vmem:[#allocation11_spill] sm:$0xff] }
 0x129   :  { %v5672_v33 = vpop.permute.xlu0 %5671  ;;  %v11107_v18 = vunpack.i.h.bf16 %v7274_v5  ;;  %v7402_v8 = vadd.f32 %v6641_v3, %v1018_v34  ;;  %v7405_v16 = vadd.f32 %v6649_v13, %v1050_v22  ;;  %v11109_v38 = vmax.f32 %v11108_v26, 0.0 }
 0x12a   :  { %v5674_v32 = vunpack.i.h.bf16 %v5672_v33  ;;  %v5673_v27 = vunpack.i.l.bf16 %v5672_v33  ;;  %v11111_v42 = vmax.f32 %v11110_v10, 0.0  ;;  %v758_v5 = vadd.f32 %v7164_v50, %v590_v52 }
 0x12b   :  { %v7393_v2 = vpop.permute.xlu1 %5676  ;;  %v990_v44 = vmul.f32 %v905_v15, %v6609_v58  ;;  %v10777_v34 = vmax.f32 %v7384_v4, 0.0  ;;  %v10778_v22 = vmax.f32 %v7387_v25, 0.0  ;;  %v11114_v50 = vmax.f32 %v6752_v24, 0.0  ;;  %v11134_v24 = vld [vmem:[#allocation18_spill] sm:$0xff] }
 0x12c   :  { %v1396_v41 = vsel %vm361_vm1, %v11106_v11, %v5673_v27  ;;  %v1427_v43 = vsel %vm361_vm1, %v11107_v18, %v5674_v32  ;;  %v5679_v23 = vunpack.i.h.bf16 %v7393_v2  ;;  %v5678_v36 = vunpack.i.l.bf16 %v7393_v2  ;;  %v11112_v18 = vld [vmem:[#allocation12_spill] sm:$0xff] }
 0x12d   :  { %v7411_v30 = vmax.f32 %v11109_v38, %v1396_v41  ;;  %v7415_v59 = vmax.f32 %v11111_v42, %v1427_v43  ;;  %v11113_v43 = vmax.f32 %v11112_v18, 0.0  ;;  %v10774_v52 = vmax.f32 %v7402_v8, 0.0 }
 0x12e   :  { %v1397_v33 = vsel %vm361_vm1, %v5673_v27, %v5678_v36  ;;  %v1428_v2 = vsel %vm361_vm1, %v5674_v32, %v5679_v23  ;;  %v10773_v27 = vmax.f32 %v7405_v16, 0.0  ;;  %v1021_v38 = vadd.f32 %v957_v45, %v757_v28 }
 0x12f   :  { %v5760_v11 = vpack.i.bf16 %v7415_v59, %v7411_v30  ;;  %v7429_v26 = vmax.f32 %v11113_v43, %v1397_v33  ;;  %v7433_v15 = vmax.f32 %v11114_v50, %v1428_v2  ;;  %v790_v32 = vadd.f32 %v7168_v51, %v622_v14 }
 0x130   :  { %v1022_v10 = vadd.f32 %v958_v63, %v758_v5  ;;  %v7442_v33 = vadd.f32 %v6649_v13, %v1052_v39  ;;  %v10775_v2 = vmov 0.0   ;;  %v1053_v28 = vadd.f32 %v989_v21, %v789_v0 }
 0x131   :  { %5761 = vrot.lane.b32.xlu1 %v5760_v11, %s6301_s0  ;;  %v5770_v42 = vpack.i.bf16 %v7433_v15, %v7429_v26  ;;  %2016 = vmatprep.mubr.f32.mxu0 %v10775_v2  ;;  %v5765_v51 = vpack.i.bf16 %v10778_v22, %v10777_v34  ;;  %v7454_v45 = vmul.f32 %v6599_v53, %v6431_v31 }
 0x132   :  { %11115 = vst [vmem:[#allocation8_spill] sm:$0xff] %v7442_v33  ;;  %2105 = vmatprep.mubr.f32.mxu1 %v10775_v2  ;;  %v7458_v39 = vmul.f32 %v6603_v55, %v6431_v31  ;;  %v1054_v14 = vadd.f32 %v990_v44, %v790_v32  ;;  %v5682_v63 = vpop.permute.xlu0 %5681  ;;  %v5775_v0 = vpack.i.bf16 %v10773_v27, %v10774_v52  ;;  %v10782_v50 = vmax.f32 %v7442_v33, 0.0 }
 0x133   :  { %5771 = vrot.lane.b32.xlu0 %v5770_v42, %s6301_s0  ;;  %v7466_v21 = vadd.f32 %v6649_v13, %v1051_v47  ;;  %v7470_v5 = vadd.f32 %v6641_v3, %v7368_v60  ;;  %v5684_v11 = vunpack.i.h.bf16 %v5682_v63  ;;  %v5683_v18 = vunpack.i.l.bf16 %v5682_v63  ;;  %v11119_v63 = vld [vmem:[#allocation13_spill] sm:$0xff] }
 0x134   :  { %v7474_v31 = vadd.f32 %v6641_v3, %v1020_v49  ;;  %v7477_v44 = vadd.f32 %v6641_v3, %v1022_v10  ;;  %v257_v43 = vsel %vm232_vm0, %v7170_v9, %v7374_v19  ;;  %v258_v47 = vsel %vm232_vm0, %v7374_v19, %v7352_v37  ;;  %v11122_v9 = vld [vmem:[#allocation15_spill] sm:$0xff] }
 0x135   :  { %5766 = vrot.lane.b32.xlu1 %v5765_v51, %s6300_s19  ;;  %v7487_v32 = vadd.f32 %v6641_v3, %v1021_v38  ;;  %v1398_v49 = vsel %vm361_vm1, %v5678_v36, %v5683_v18  ;;  %v1399_v42 = vsel %vm361_vm1, %v5683_v18, %v5684_v11  ;;  %v11120_v27 = vmax.f32 %v11119_v63, 0.0 }
 0x136   :  { %11116 = vst [vmem:[#allocation9_spill] sm:$0xff] %v7474_v31  ;;  %11117 = vst [vmem:[#allocation10_spill] sm:$0xff] %v7477_v44  ;;  %v5687_v60 = vpop.permute.xlu1 %5686  ;;  %v11123_v41 = vmax.f32 %v11122_v9, 0.0  ;;  %v7501_v19 = vadd.f32 %v6649_v13, %v1054_v14  ;;  %v7504_v38 = vadd.f32 %v6649_v13, %v1053_v28  ;;  %v541_v36 = vrot.slane %v257_v43, %v6359_v7 }
 0x137   :  { %11118 = vst [vmem:[#allocation11_spill] sm:$0xff] %v7487_v32  ;;  %v5689_v10 = vunpack.i.h.bf16 %v5687_v60  ;;  %v5688_v51 = vunpack.i.l.bf16 %v5687_v60  ;;  %v7493_v52 = vmax.f32 %v11120_v27, %v1398_v49  ;;  %5776 = vrot.lane.b32.xlu0 %v5775_v0, %s6300_s19  ;;  %v10786_v27 = vmax.f32 %v7474_v31, 0.0  ;;  %v11129_v0 = vld [vmem:[#allocation17_spill] sm:$0xff] }
 0x138   :  { %v7497_v2 = vmax.f32 %v11123_v41, %v1399_v42  ;;  %11124 = vst [vmem:[#allocation13_spill] sm:$0xff] %v7501_v19  ;;  %11125 = vst [vmem:[#allocation15_spill] sm:$0xff] %v7504_v38  ;;  %v545_v49 = vrot.slane %v258_v47, %v6359_v7  ;;  %v11126_v41 = vld [vmem:[#allocation14_spill] sm:$0xff]  ;;  %v11130_v14 = vmax.f32 %v11129_v0, 0.0  ;;  %v10783_v43 = vmax.f32 %v7466_v21, 0.0 }
 0x139   :  { %11121 = vst [vmem:[#allocation12_spill] sm:$0xff] %v7493_v52  ;;  %v1429_v18 = vsel %vm361_vm1, %v5679_v23, %v5688_v51  ;;  %v1430_v60 = vsel %vm361_vm1, %v5688_v51, %v5689_v10  ;;  %v11127_v42 = vmax.f32 %v11126_v41, 0.0  ;;  %v10787_v23 = vmax.f32 %v7470_v5, 0.0  ;;  %v11131_v51 = vld [vmem:[#allocation16_spill] sm:$0xff] }
 0x13a   :  { %v7517_v9 = vmax.f32 %v11130_v14, %v1430_v60  ;;  %v5780_v28 = vpack.i.bf16 %v7497_v2, %v7493_v52  ;;  %v5692_v47 = vpop.permute.xlu0 %5691  ;;  %v591_v0 = vmul.f32 %v541_v36, %v6605_v56  ;;  %v5795_v22 = vpack.i.bf16 %v10782_v50, %v10783_v43 }
 0x13b   :  { %v7513_v63 = vmax.f32 %v11127_v42, %v1429_v18  ;;  %v5694_v14 = vunpack.i.h.bf16 %v5692_v47  ;;  %v5693_v34 = vunpack.i.l.bf16 %v5692_v47  ;;  %v592_v46 = vmul.f32 %v545_v49, %v6605_v56  ;;  %v11139_v47 = vld [vmem:[#allocation3_spill] sm:$0xff] }
 0x13c   :  { %5781 = vrot.lane.b32.xlu1 %v5780_v28, %s6301_s0  ;;  %v623_v28 = vmul.f32 %v541_v36, %v6607_v57  ;;  %v7540_v17 = vpop.permute.xlu1 %5696  ;;  %v5785_v42 = vpack.i.bf16 %v10786_v27, %v10787_v23  ;;  %v624_v36 = vmul.f32 %v545_v49, %v6607_v57  ;;  %v11132_v60 = vmax.f32 %v11131_v51, 0.0 }
 0x13d   :  { %11128 = vst [vmem:[#allocation14_spill] sm:$0xff] %v7513_v63  ;;  %v5790_v18 = vpack.i.bf16 %v7517_v9, %v7513_v63  ;;  %v1400_v41 = vsel %vm361_vm1, %v5684_v11, %v5693_v34  ;;  %v1431_v12 = vsel %vm361_vm1, %v5689_v10, %v5694_v14  ;;  %v5699_v50 = vunpack.i.h.bf16 %v7540_v17 }
 0x13e   :  { %v5698_v43 = vunpack.i.l.bf16 %v7540_v17  ;;  %v11135_v33 = vmax.f32 %v11134_v24, 0.0  ;;  %v350_v27 = vpop.permute.xlu0 %349  ;;  %v11137_v11 = vmax.f32 %v7487_v32, 0.0  ;;  %v11138_v10 = vmax.f32 %v7504_v38, 0.0  ;;  %v11140_v24 = vld [vmem:[#allocation20_spill] sm:$0xff] }
 0x13f   :  { %5791 = vrot.lane.b32.xlu0 %v5790_v18, %s6301_s0  ;;  %v7555_v18 = vmax.f32 %v11132_v60, %v1400_v41  ;;  %v759_v17 = vadd.f32 %v11139_v47, %v591_v0  ;;  %v1432_v49 = vsel %vm361_vm1, %v5694_v14, %v5699_v50  ;;  %v387_v60 = vsel %vm361_vm1, %v7223_v48, %v350_v27  ;;  %v11143_v41 = vld [vmem:[#allocation19_spill] sm:$0xff]  ;;  %v11147_v47 = vld [vmem:[#allocation4_spill] sm:$0xff] }
 0x140   :  { %v7559_v31 = vmax.f32 %v11135_v33, %v1431_v12  ;;  %5786 = vrot.lane.b32.xlu1 %v5785_v42, %s6300_s19  ;;  %v5805_v23 = vpack.i.bf16 %v11138_v10, %v11137_v11  ;;  %v1401_v51 = vsel %vm361_vm1, %v5693_v34, %v5698_v43  ;;  %v11141_v12 = vmax.f32 %v11140_v24, 0.0  ;;  %v352_v11 = vpop.permute.xlu1 %351  ;;  %v11146_v34 = vld [vmem:[#allocation2_spill] sm:$0xff] }
 0x141   :  { %11133 = vst [vmem:[#allocation17_spill] sm:$0xff] %v7555_v18  ;;  %v11144_v42 = vmax.f32 %v11143_v41, 0.0  ;;  %v909_v32 = vrot.slane %v387_v60, %v6359_v7  ;;  %v760_v14 = vadd.f32 %v11146_v34, %v592_v46  ;;  %v791_v48 = vadd.f32 %v11147_v47, %v623_v28  ;;  %v11148_v46 = vld [vmem:[#allocation7_spill] sm:$0xff] }
 0x142   :  { %11136 = vst [vmem:[#allocation16_spill] sm:$0xff] %v7559_v31  ;;  %v7573_v33 = vmax.f32 %v11141_v12, %v1432_v49  ;;  %v5800_v0 = vpack.i.bf16 %v7559_v31, %v7555_v18  ;;  %v388_v10 = vsel %vm361_vm1, %v350_v27, %v352_v11  ;;  %v7591_v12 = vpop.permute.xlu0 %5701  ;;  %v792_v28 = vadd.f32 %v11148_v46, %v624_v36 }
 0x143   :  { %v7577_v52 = vmax.f32 %v11144_v42, %v1401_v51  ;;  %5796 = vrot.lane.b32.xlu0 %v5795_v22, %s6300_s19  ;;  %v959_v51 = vmul.f32 %v909_v32, %v6601_v54  ;;  %v991_v24 = vmul.f32 %v909_v32, %v6609_v58  ;;  %v913_v60 = vrot.slane %v388_v10, %v6359_v7  ;;  %v11151_v42 = vld [vmem:[#allocation5_spill] sm:$0xff] }
 0x144   :  { %11142 = vst [vmem:[#allocation18_spill] sm:$0xff] %v7573_v33  ;;  %5801 = vrot.lane.b32.xlu1 %v5800_v0, %s6301_s0  ;;  %v10793_v27 = vunpack.i.h.bf16 %v7591_v12  ;;  %v5703_v41 = vunpack.i.l.bf16 %v7591_v12  ;;  %v11149_v0 = vmax.f32 %v7477_v44, 0.0  ;;  %v11150_v46 = vmax.f32 %v7501_v19, 0.0  ;;  %v11165_v44 = vld [vmem:[#allocation39_spill] sm:$0xff] }
 0x145   :  { %11145 = vst [vmem:[#allocation3_spill] sm:$0xff] %v7577_v52  ;;  %v5810_v22 = vpack.i.bf16 %v7573_v33, %v7577_v52  ;;  %v1023_v34 = vadd.f32 %v959_v51, %v759_v17  ;;  %v1055_v32 = vadd.f32 %v991_v24, %v791_v48  ;;  %v960_v47 = vmul.f32 %v913_v60, %v6601_v54  ;;  %v11152_v24 = vld [vmem:[#allocation21_spill] sm:$0xff] }
 0x146   :  { %v992_v10 = vmul.f32 %v913_v60, %v6609_v58  ;;  %v1402_v49 = vsel %vm361_vm1, %v5698_v43, %v5703_v41  ;;  %v1403_v36 = vsel %vm361_vm1, %v5703_v41, %v10793_v27  ;;  %v5815_v18 = vpack.i.bf16 %v11150_v46, %v11149_v0  ;;  %v11155_v43 = vld [vmem:[#allocation23_spill] sm:$0xff]  ;;  %v223_v41 = vpop.permute.xlu0 %222 }
 0x147   :  { %5811 = vrot.lane.b32.xlu0 %v5810_v22, %s6301_s0  ;;  %v7614_v17 = vmul.f32 %v6599_v53, %v11151_v42  ;;  %v1024_v48 = vadd.f32 %v960_v47, %v760_v14  ;;  %v11153_v60 = vmax.f32 %v11152_v24, 0.0  ;;  %v11156_v31 = vmax.f32 %v11155_v43, 0.0  ;;  %v5707_v27 = vpop.permute.xlu1 %5706 }
 0x148   :  { %v1056_v51 = vadd.f32 %v992_v10, %v792_v28  ;;  %5806 = vrot.lane.b32.xlu1 %v5805_v23, %s6300_s19  ;;  %v259_v0 = vsel %vm232_vm0, %v7352_v37, %v223_v41  ;;  %v7628_v46 = vadd.f32 %v6649_v13, %v1055_v32  ;;  %v7631_v14 = vadd.f32 %v6641_v3, %v1023_v34  ;;  %v11158_v10 = vld [vmem:[#allocation6_spill] sm:$0xff] }
 0x149   :  { %v7618_v22 = vmax.f32 %v11153_v60, %v1402_v49  ;;  %v7622_v52 = vmax.f32 %v11156_v31, %v1403_v36  ;;  %v7635_v49 = vmul.f32 %v6603_v55, %v11151_v42  ;;  %v5709_v28 = vunpack.i.h.bf16 %v5707_v27 }
 0x14a   :  { %v5708_v31 = vunpack.i.l.bf16 %v5707_v27  ;;  %v549_v47 = vrot.slane %v259_v0, %v6359_v7  ;;  %v7642_v37 = vadd.f32 %v6649_v13, %v1056_v51  ;;  %v7646_v34 = vadd.f32 %v6641_v3, %v1024_v48  ;;  %v354_v60 = vpop.permute.xlu0 %353  ;;  %v11159_v51 = vld [vmem:[#allocation22_spill] sm:$0xff]  ;;  %v11162_v48 = vld [vmem:[#allocation25_spill] sm:$0xff] }
 0x14b   :  { %11154 = vst [vmem:[#allocation20_spill] sm:$0xff] %v7618_v22  ;;  %11157 = vst [vmem:[#allocation19_spill] sm:$0xff] %v7622_v52  ;;  %5816 = vrot.lane.b32.xlu0 %v5815_v18, %s6300_s19  ;;  %v5820_v23 = vpack.i.bf16 %v7622_v52, %v7618_v22  ;;  %v7650_v42 = vmul.f32 %v6599_v53, %v11158_v10  ;;  %v11160_v43 = vmax.f32 %v11159_v51, 0.0  ;;  %v11163_v32 = vmax.f32 %v11162_v48, 0.0  ;;  %v225_v53 = vpop.permute.xlu1 %224  ;;  %v11166_v51 = vld [vmem:[#allocation40_spill] sm:$0xff] }
 0x14c   :  { %v1433_v27 = vsel %vm361_vm1, %v5699_v50, %v5708_v31  ;;  %v1434_v36 = vsel %vm361_vm1, %v5708_v31, %v5709_v28  ;;  %v593_v18 = vmul.f32 %v549_v47, %v6605_v56  ;;  %v625_v24 = vmul.f32 %v549_v47, %v6607_v57 }
 0x14d   :  { %5821 = vrot.lane.b32.xlu1 %v5820_v23, %s6301_s0  ;;  %v7659_v0 = vmax.f32 %v11160_v43, %v1433_v27  ;;  %v7663_v19 = vmax.f32 %v11163_v32, %v1434_v36  ;;  %v389_v50 = vsel %vm361_vm1, %v352_v11, %v354_v60  ;;  %v260_v47 = vsel %vm232_vm0, %v223_v41, %v225_v53 }
 0x14e   :  { %v761_v33 = vadd.f32 %v11165_v44, %v593_v18  ;;  %v917_v38 = vrot.slane %v389_v50, %v6359_v7  ;;  %v793_v27 = vadd.f32 %v11166_v51, %v625_v24  ;;  %v553_v43 = vrot.slane %v260_v47, %v6359_v7 }
 0x14f   :  { %11161 = vst [vmem:[#allocation2_spill] sm:$0xff] %v7659_v0  ;;  %11164 = vst [vmem:[#allocation4_spill] sm:$0xff] %v7663_v19  ;;  %v5830_v32 = vpack.i.bf16 %v7663_v19, %v7659_v0  ;;  %v5712_v44 = vpop.permute.xlu0 %5711  ;;  %v356_v47 = vpop.permute.xlu1 %355  ;;  %v11167_v63 = vmax.f32 %v7631_v14, 0.0  ;;  %v11168_v41 = vmax.f32 %v7646_v34, 0.0  ;;  %v11169_v19 = vld [vmem:[#allocation41_spill] sm:$0xff] }
 0x150   :  { %v961_v11 = vmul.f32 %v917_v38, %v6601_v54  ;;  %v993_v48 = vmul.f32 %v917_v38, %v6609_v58  ;;  %v594_v24 = vmul.f32 %v553_v43, %v6605_v56  ;;  %v626_v50 = vmul.f32 %v553_v43, %v6607_v57 }
 0x151   :  { %5831 = vrot.lane.b32.xlu0 %v5830_v32, %s6301_s0  ;;  %v5714_v51 = vunpack.i.h.bf16 %v5712_v44  ;;  %v5713_v23 = vunpack.i.l.bf16 %v5712_v44  ;;  %v390_v38 = vsel %vm361_vm1, %v354_v60, %v356_v47  ;;  %v5825_v52 = vpack.i.bf16 %v11168_v41, %v11167_v63  ;;  %v11178_v41 = vld [vmem:[#allocation42_spill] sm:$0xff] }
 0x152   :  { %v1025_v36 = vadd.f32 %v961_v11, %v761_v33  ;;  %v1057_v31 = vadd.f32 %v993_v48, %v793_v27  ;;  %v762_v18 = vadd.f32 %v11169_v19, %v594_v24  ;;  %v921_v22 = vrot.slane %v390_v38, %v6359_v7  ;;  %v11173_v11 = vld [vmem:[#allocation24_spill] sm:$0xff] }
 0x153   :  { %v11170_v43 = vunpack.i.h.bf16 %v7591_v12  ;;  %v11171_v32 = vmax.f32 %v7628_v46, 0.0  ;;  %v11172_v33 = vmax.f32 %v7642_v37, 0.0  ;;  %v1435_v60 = vsel %vm361_vm1, %v5709_v28, %v5714_v51  ;;  %5826 = vrot.lane.b32.xlu1 %v5825_v52, %s6300_s19  ;;  %v7705_v19 = vpop.permute.xlu0 %228 }
 0x154   :  { %v11174_v48 = vmax.f32 %v11173_v11, 0.0  ;;  %v7708_v63 = vadd.f32 %v6641_v3, %v1025_v36  ;;  %v7711_v12 = vadd.f32 %v6649_v13, %v1057_v31  ;;  %v794_v24 = vadd.f32 %v11178_v41, %v626_v50 }
 0x155   :  { %v1404_v0 = vsel %vm361_vm1, %v11170_v43, %v5713_v23  ;;  %v5835_v27 = vpack.i.bf16 %v11172_v33, %v11171_v32  ;;  %v962_v38 = vmul.f32 %v921_v22, %v6601_v54  ;;  %v994_v28 = vmul.f32 %v921_v22, %v6609_v58  ;;  %v11179_v43 = vld [vmem:[#allocation26_spill] sm:$0xff]  ;;  %v227_v33 = vpop.permute.xlu1 %226 }
 0x156   :  { %v7702_v44 = vmax.f32 %v11174_v48, %v1404_v0  ;;  %11176 = vst [vmem:[#allocation5_spill] sm:$0xff] %v7708_v63  ;;  %11177 = vst [vmem:[#allocation21_spill] sm:$0xff] %v7711_v12  ;;  %v11180_v32 = vmax.f32 %v11179_v43, 0.0  ;;  %v261_v52 = vsel %vm232_vm0, %v225_v53, %v227_v33  ;;  %v262_v36 = vsel %vm232_vm0, %v227_v33, %v7705_v19 }
 0x157   :  { %5836 = vrot.lane.b32.xlu0 %v5835_v27, %s6300_s19  ;;  %v10804_v31 = vmax.f32 %v7708_v63, 0.0  ;;  %v10803_v50 = vmax.f32 %v7711_v12, 0.0  ;;  %v1026_v11 = vadd.f32 %v962_v38, %v762_v18  ;;  %v557_v48 = vrot.slane %v261_v52, %v6359_v7  ;;  %v358_v27 = vpop.permute.xlu0 %357 }
 0x158   :  { %11175 = vst [vmem:[#allocation7_spill] sm:$0xff] %v7702_v44  ;;  %v7718_v0 = vmax.f32 %v11180_v32, %v1435_v60  ;;  %v561_v22 = vrot.slane %v262_v36, %v6359_v7  ;;  %v7730_v60 = vmul.f32 %v6603_v55, %v11158_v10  ;;  %v1058_v41 = vadd.f32 %v994_v28, %v794_v24 }
 0x159   :  { %v5845_v43 = vpack.i.bf16 %v10803_v50, %v10804_v31  ;;  %v595_v38 = vmul.f32 %v557_v48, %v6605_v56  ;;  %v627_v32 = vmul.f32 %v557_v48, %v6607_v57  ;;  %v5717_v24 = vpop.permute.xlu1 %5716  ;;  %v391_v52 = vsel %vm361_vm1, %v356_v47, %v358_v27 }
 0x15a   :  { %11181 = vst [vmem:[#allocation23_spill] sm:$0xff] %v7718_v0  ;;  %v5840_v53 = vpack.i.bf16 %v7718_v0, %v7702_v44  ;;  %v596_v55 = vmul.f32 %v561_v22, %v6605_v56  ;;  %v628_v10 = vmul.f32 %v561_v22, %v6607_v57  ;;  %v5719_v28 = vunpack.i.h.bf16 %v5717_v24 }
 0x15b   :  { %v5718_v33 = vunpack.i.l.bf16 %v5717_v24  ;;  %v7747_v36 = vadd.f32 %v6641_v3, %v1026_v11  ;;  %v763_v18 = vadd.f32 %v7454_v45, %v595_v38  ;;  %v795_v50 = vadd.f32 %v7458_v39, %v627_v32  ;;  %v5722_v47 = vpop.permute.xlu0 %5721  ;;  %v11182_v11 = vld [vmem:[#allocation28_spill] sm:$0xff]  ;;  %v11184_v45 = vld [vmem:[#allocation27_spill] sm:$0xff] }
 0x15c   :  { %5841 = vrot.lane.b32.xlu1 %v5840_v53, %s6301_s0  ;;  %v764_v48 = vadd.f32 %v7614_v17, %v596_v55  ;;  %v796_v31 = vadd.f32 %v7635_v49, %v628_v10  ;;  %v1436_v22 = vsel %vm361_vm1, %v5714_v51, %v5719_v28  ;;  %v925_v24 = vrot.slane %v391_v52, %v6359_v7 }
 0x15d   :  { %v1405_v44 = vsel %vm361_vm1, %v5713_v23, %v5718_v33  ;;  %v7757_v53 = vadd.f32 %v6649_v13, %v1058_v41  ;;  %v11183_v0 = vmax.f32 %v11182_v11, 0.0  ;;  %v11185_v39 = vmax.f32 %v11184_v45, 0.0  ;;  %v360_v17 = vpop.permute.xlu1 %359  ;;  %v11186_v11 = vld [vmem:[#allocation29_spill] sm:$0xff] }
 0x15e   :  { %v5724_v49 = vunpack.i.h.bf16 %v5722_v47  ;;  %v5723_v32 = vunpack.i.l.bf16 %v5722_v47  ;;  %v963_v51 = vmul.f32 %v925_v24, %v6601_v54  ;;  %v995_v23 = vmul.f32 %v925_v24, %v6609_v58  ;;  %v11188_v24 = vld [vmem:[#allocation31_spill] sm:$0xff] }
 0x15f   :  { %v7761_v12 = vmax.f32 %v11183_v0, %v1436_v22  ;;  %v7765_v38 = vmax.f32 %v11185_v39, %v1405_v44  ;;  %v392_v55 = vsel %vm361_vm1, %v358_v27, %v360_v17  ;;  %v425_v41 = vsel %vm361_vm1, %v360_v17, 0.0  ;;  %v231_v17 = vpop.permute.xlu0 %230 }
 0x160   :  { %5846 = vrot.lane.b32.xlu1 %v5845_v43, %s6300_s19  ;;  %v929_v0 = vrot.slane %v392_v55, %v6359_v7  ;;  %v933_v10 = vrot.slane %v425_v41, %v6359_v7  ;;  %v1406_v44 = vsel %vm361_vm1, %v5718_v33, %v5723_v32  ;;  %v1407_v52 = vsel %vm361_vm1, %v5723_v32, %v5724_v49 }
 0x161   :  { %v1027_v22 = vadd.f32 %v963_v51, %v763_v18  ;;  %v1059_v47 = vadd.f32 %v995_v23, %v795_v50  ;;  %v11187_v45 = vmax.f32 %v11186_v11, 0.0  ;;  %v11189_v27 = vmax.f32 %v11188_v24, 0.0  ;;  %v5727_v32 = vpop.permute.xlu1 %5726  ;;  %v11190_v24 = vld [vmem:[#allocation30_spill] sm:$0xff] }
 0x162   :  { %v964_v43 = vmul.f32 %v929_v0, %v6601_v54  ;;  %v965_v55 = vmul.f32 %v933_v10, %v6601_v54  ;;  %v996_v41 = vmul.f32 %v929_v0, %v6609_v58  ;;  %v997_v33 = vmul.f32 %v933_v10, %v6609_v58 }
 0x163   :  { %v7778_v39 = vmax.f32 %v11187_v45, %v1406_v44  ;;  %v7782_v63 = vmax.f32 %v11189_v27, %v1407_v52  ;;  %v5729_v18 = vunpack.i.h.bf16 %v5727_v32  ;;  %v5728_v50 = vunpack.i.l.bf16 %v5727_v32 }
 0x164   :  { %v5850_v51 = vpack.i.bf16 %v7761_v12, %v7765_v38  ;;  %v263_v23 = vsel %vm232_vm0, %v7705_v19, %v231_v17  ;;  %v1028_v44 = vadd.f32 %v964_v43, %v764_v48  ;;  %v1060_v52 = vadd.f32 %v996_v41, %v796_v31  ;;  %v11192_v31 = vld [vmem:[#allocation33_spill] sm:$0xff] }
 0x165   :  { %v565_v11 = vrot.slane %v263_v23, %v6359_v7  ;;  %v10814_v45 = vmax.f32 %v7747_v36, 0.0  ;;  %v1437_v54 = vsel %vm361_vm1, %v5719_v28, %v5728_v50  ;;  %v1438_v0 = vsel %vm361_vm1, %v5728_v50, %v5729_v18  ;;  %v5732_v43 = vpop.permute.xlu1 %5731 }
 0x166   :  { %5851 = vrot.lane.b32.xlu0 %v5850_v51, %s6301_s0  ;;  %v10816_v58 = vmax.f32 %v7757_v53, 0.0  ;;  %v5860_v10 = vpack.i.bf16 %v7782_v63, %v7778_v39  ;;  %v11191_v27 = vmax.f32 %v11190_v24, 0.0  ;;  %v11193_v48 = vmax.f32 %v11192_v31, 0.0  ;;  %v7814_v51 = vpop.permute.xlu0 %5736  ;;  %v11194_v31 = vld [vmem:[#allocation32_spill] sm:$0xff] }
 0x167   :  { %v597_v17 = vmul.f32 %v565_v11, %v6605_v56  ;;  %v629_v28 = vmul.f32 %v565_v11, %v6607_v57  ;;  %v5734_v41 = vunpack.i.h.bf16 %v5732_v43  ;;  %v5733_v32 = vunpack.i.l.bf16 %v5732_v43 }
 0x168   :  { %v7802_v19 = vmax.f32 %v11191_v27, %v1437_v54  ;;  %v7806_v7 = vmax.f32 %v11193_v48, %v1438_v0  ;;  %v5855_v50 = vpack.i.bf16 %v10816_v58, %v10814_v45  ;;  %5861 = vrot.lane.b32.xlu1 %v5860_v10, %s6301_s0  ;;  %v7818_v23 = vadd.f32 %v6649_v13, %v1059_v47  ;;  %v11205_v58 = vld [vmem:[#allocation38_spill] sm:$0xff] }
 0x169   :  { %v765_v54 = vadd.f32 %v7650_v42, %v597_v17  ;;  %v797_v56 = vadd.f32 %v7730_v60, %v629_v28  ;;  %v5739_v57 = vunpack.i.h.bf16 %v7814_v51  ;;  %v10817_v11 = vunpack.i.l.bf16 %v7814_v51  ;;  %v11197_v17 = vld [vmem:[#allocation34_spill] sm:$0xff] }
 0x16a   :  { %v1408_v0 = vsel %vm361_vm1, %v5724_v49, %v5733_v32  ;;  %v1439_v24 = vsel %vm361_vm1, %v5729_v18, %v5734_v41  ;;  %5856 = vrot.lane.b32.xlu0 %v5855_v50, %s6300_s19  ;;  %v5870_v10 = vpack.i.bf16 %v7806_v7, %v7802_v19  ;;  %v7830_v47 = vadd.f32 %v6649_v13, %v1060_v52 }
 0x16b   :  { %v1029_v27 = vadd.f32 %v965_v55, %v765_v54  ;;  %v1061_v42 = vadd.f32 %v997_v33, %v797_v56  ;;  %v11195_v60 = vmax.f32 %v11194_v31, 0.0  ;;  %v11198_v28 = vmax.f32 %v11197_v17, 0.0  ;;  %v11199_v55 = vld [vmem:[#allocation35_spill] sm:$0xff]  ;;  %v11201_v56 = vld [vmem:[#allocation36_spill] sm:$0xff] }
 0x16c   :  { %v1409_v49 = vsel %vm361_vm1, %v5733_v32, %v10817_v11  ;;  %v1440_v18 = vsel %vm361_vm1, %v5734_v41, %v5739_v57  ;;  %v10815_v50 = vmax.f32 %v7818_v23, 0.0  ;;  %v10810_v52 = vmax.f32 %v7830_v47, 0.0 }
 0x16d   :  { %v7834_v48 = vmax.f32 %v11195_v60, %v1408_v0  ;;  %v7838_v43 = vmax.f32 %v11198_v28, %v1439_v24  ;;  %v11200_v33 = vmax.f32 %v11199_v55, 0.0  ;;  %v11202_v0 = vmax.f32 %v11201_v56, 0.0 }
 0x16e   :  { %v7855_v24 = vadd.f32 %v6641_v3, %v1027_v22  ;;  %v7858_v60 = vadd.f32 %v6641_v3, %v1028_v44  ;;  %5871 = vrot.lane.b32.xlu0 %v5870_v10, %s6301_s0  ;;  %v7862_v41 = vadd.f32 %v6641_v3, %v1029_v27  ;;  %v7867_v28 = vadd.f32 %v6649_v13, %v1061_v42 }
 0x16f   :  { %11196 = vst [vmem:[#allocation6_spill] sm:$0xff] %v7834_v48  ;;  %v7848_v54 = vmax.f32 %v11200_v33, %v1409_v49  ;;  %v7852_v31 = vmax.f32 %v11202_v0, %v1440_v18  ;;  %v5875_v22 = vpack.i.bf16 %v10810_v52, %v10815_v50  ;;  %v5880_v33 = vpack.i.bf16 %v7838_v43, %v7834_v48 }
 0x170   :  { %v10813_v32 = vmax.f32 %v7855_v24, 0.0  ;;  %v10809_v17 = vmax.f32 %v7858_v60, 0.0  ;;  %v10811_v18 = vmax.f32 %v7862_v41, 0.0  ;;  %v10812_v55 = vmax.f32 %v7867_v28, 0.0 }
 0x171   :  { %v5885_v42 = vpack.i.bf16 %v7852_v31, %v7848_v54  ;;  %v11206_v49 = vmax.f32 %v11205_v58, 0.0  ;;  %v11208_v52 = vunpack.i.l.bf16 %v7814_v51 }
 0x172   :  { %v5865_v13 = vpack.i.bf16 %v10809_v17, %v10813_v32  ;;  %5876 = vrot.lane.b32.xlu0 %v5875_v22, %s6300_s19  ;;  %v5890_v56 = vpack.i.bf16 %v10812_v55, %v10811_v18 }
 0x174   :  { %5866 = vrot.lane.b32.xlu1 %v5865_v13, %s6300_s19 }
 0x176   :  { %5886 = vrot.lane.b32.xlu0 %v5885_v42, %s6301_s0 }
 0x178   :  { %5881 = vrot.lane.b32.xlu1 %v5880_v33, %s6301_s0 }
 0x17c   :  { %5891 = vrot.lane.b32.xlu1 %v5890_v56, %s6300_s19 }
 0x194   :  { %v5752_v0 = vpop.permute.xlu0 %5751 }
 0x195   :  { %v5754_v22 = vunpack.i.h.bf16 %v5752_v0  ;;  %v5753_v13 = vunpack.i.l.bf16 %v5752_v0 }
 0x196   :  { %v5742_v27 = vpop.permute.xlu1 %5741 }
 0x197   :  { %v5744_v10 = vunpack.i.h.bf16 %v5742_v27  ;;  %v5743_v17 = vunpack.i.l.bf16 %v5742_v27  ;;  %v1810_v42 = vsel %vm1778_vm2, %v5753_v13, %v5754_v22 }
 0x198   :  { %v5757_v33 = vpop.permute.xlu0 %5756 }
 0x199   :  { %v1779_v3 = vsel %vm1778_vm2, %v5743_v17, %v5744_v10  ;;  %v5759_v18 = vunpack.i.h.bf16 %v5757_v33  ;;  %v5758_v55 = vunpack.i.l.bf16 %v5757_v33  ;;  %v5299_v45 = vpack.c.bf16 %v5753_v13, %v5743_v17  ;;  %v11209_v17 = vld [vmem:[#allocation37_spill] sm:$0xff] }
 0x19a   :  { %v5747_v56 = vpop.permute.xlu1 %5746  ;;  %v5297_v32 = vpack.c.bf16 %v1810_v42, %v1779_v3  ;;  %v11207_v33 = vmax.f32 %v7285_v1, 0.0  ;;  %v11212_v1 = vpack.c.bf16 %v7309_v35, %v7317_v40 }
 0x19b   :  { %v5749_v0 = vunpack.i.h.bf16 %v5747_v56  ;;  %v5748_v27 = vunpack.i.l.bf16 %v5747_v56  ;;  %v1441_v44 = vsel %vm361_vm1, %v5739_v57, %v5758_v55  ;;  %v1442_v50 = vsel %vm361_vm1, %v5758_v55, %v5759_v18 }
 0x19c   :  { %5298 = vmatprep.subr.bf16.mxu0 %v5297_v32  ;;  %v7916_v11 = vmax.f32 %v11206_v49, %v1441_v44  ;;  %v7920_v48 = vmax.f32 %v11207_v33, %v1442_v50  ;;  %v11210_v57 = vmax.f32 %v11209_v17, 0.0  ;;  %v11211_v55 = vmax.f32 %v7291_v20, 0.0 }
 0x19d   :  { %v1410_v3 = vsel %vm361_vm1, %v11208_v52, %v5748_v27  ;;  %v1411_v42 = vsel %vm361_vm1, %v5748_v27, %v5749_v0  ;;  %5301 = vmatpush1.bf16.msk.msra.mxu0 %vm5300_vm4, %v5299_v45  ;;  %v11213_v20 = vpack.c.bf16 %v7305_v29, %v7313_v62 }
 0x19e   :  { %v7928_v13 = vmax.f32 %v11210_v57, %v1410_v3  ;;  %v7932_v58 = vmax.f32 %v11211_v55, %v1411_v42  ;;  %5303 = vmatprep.subr.bf16.mxu0 %v11212_v1  ;;  %v5900_v51 = vpack.i.bf16 %v7920_v48, %v7916_v11 }
 0x1a0   :  { %v5895_v50 = vpack.i.bf16 %v7932_v58, %v7928_v13  ;;  %5901 = vrot.lane.b32.xlu1 %v5900_v51, %s6301_s0 }
 0x1a1   :  { %5305 = vmatpush1.bf16.msra.mxu0 %v11213_v20 }
 0x1a2   :  { %5896 = vrot.lane.b32.xlu0 %v5895_v50, %s6301_s0 }
 0x1a3   :  { %v5762_v40 = vpop.permute.xlu1 %5761 }
 0x1a4   :  { %v5764_v35 = vunpack.i.h.bf16 %v5762_v40  ;;  %v5763_v44 = vunpack.i.l.bf16 %v5762_v40 }
 0x1a5   :  { %v5772_v56 = vpop.permute.xlu0 %5771 }
 0x1a6   :  { %v1780_v27 = vsel %vm1778_vm2, %v5744_v10, %v5763_v44  ;;  %v1811_v33 = vsel %vm1778_vm2, %v5754_v22, %v5764_v35  ;;  %v5774_v52 = vunpack.i.h.bf16 %v5772_v56  ;;  %v5773_v3 = vunpack.i.l.bf16 %v5772_v56  ;;  %v7959_v10 = vld [vmem:[%s10688_s3] sm:$0xff] }
 0x1a7   :  { %v5767_v42 = vpop.permute.xlu1 %5766  ;;  %v5306_v17 = vpack.c.bf16 %v1811_v33, %v1780_v27  ;;  %v11214_v56 = vmax.f32 %v7288_v61, 0.0  ;;  %v11216_v61 = vmax.f32 %v7387_v25, 0.0  ;;  %v11221_v25 = vmax.f32 %v7402_v8, 0.0 }
 0x1a8   :  { %v5769_v57 = vunpack.i.h.bf16 %v5767_v42  ;;  %v5768_v55 = vunpack.i.l.bf16 %v5767_v42  ;;  %v1781_v62 = vsel %vm1778_vm2, %v5763_v44, %v5773_v3  ;;  %v1812_v29 = vsel %vm1778_vm2, %v5764_v35, %v5774_v52 }
 0x1a9   :  { %5307 = vmatprep.subr.bf16.mxu0 %v5306_v17  ;;  %v5777_v1 = vpop.permute.xlu0 %5776  ;;  %v5310_v20 = vpack.c.bf16 %v1812_v29, %v1781_v62  ;;  %v11215_v35 = vmax.f32 %v7301_v6, 0.0  ;;  %v11217_v6 = vmax.f32 %v7384_v4, 0.0 }
 0x1aa   :  { %v1443_v51 = vsel %vm361_vm1, %v5759_v18, %v5769_v57  ;;  %v1412_v50 = vsel %vm361_vm1, %v5749_v0, %v5768_v55  ;;  %5309 = vmatpush1.bf16.msra.mxu0 %v5297_v32  ;;  %v5779_v22 = vunpack.i.h.bf16 %v5777_v1  ;;  %v5778_v40 = vunpack.i.l.bf16 %v5777_v1 }
 0x1ab   :  { %v7963_v44 = vmax.f32 %v11214_v56, %v1443_v51  ;;  %v7967_v27 = vmax.f32 %v11215_v35, %v1412_v50  ;;  %5311 = vmatprep.subr.bf16.mxu1 %v5310_v20  ;;  %v11220_v56 = vpack.c.bf16 %v7415_v59, %v7411_v30 }
 0x1ac   :  { %v1444_v18 = vsel %vm361_vm1, %v5769_v57, %v5779_v22  ;;  %v1413_v32 = vsel %vm361_vm1, %v5768_v55, %v5778_v40  ;;  %5313 = vmatpush1.bf16.msra.mxu1 %v5306_v17  ;;  %v11218_v57 = vpack.c.bf16 %v7433_v15, %v7429_v26  ;;  %v11219_v17 = vmov 0.0   ;;  %v7990_v55 = vld [vmem:[%s10688_s3 + $0x8] sm:$0xff] }
 0x1ad   :  { %4968 = vmatmul.mubr.msk.f32.vlgmr.msra.gmra.mrb[0].mxu0 %vm1939_vm5, %v7959_v10  ;;  %v5905_v0 = vpack.i.bf16 %v7963_v44, %v7967_v27  ;;  %v7977_v33 = vmax.f32 %v11216_v61, %v1444_v18  ;;  %v7981_v42 = vmax.f32 %v11217_v6, %v1413_v32 }
 0x1ae   :  { %v5782_v62 = vpop.permute.xlu1 %5781  ;;  %5315 = vmatprep.subr.bf16.mxu1 %v11218_v57  ;;  %2022 = vmatprep.mubr.f32.mxu0 %v11219_v17 }
 0x1af   :  { %v5784_v29 = vunpack.i.h.bf16 %v5782_v62  ;;  %v5783_v1 = vunpack.i.l.bf16 %v5782_v62  ;;  %5906 = vrot.lane.b32.xlu0 %v5905_v0, %s6301_s0  ;;  %v5910_v51 = vpack.i.bf16 %v7977_v33, %v7981_v42  ;;  %v8011_v0 = vld [vmem:[%s10688_s3 + $0x10] sm:$0xff] }
 0x1b0   :  { %5317 = vmatpush1.bf16.msra.mxu1 %v11220_v56 }
 0x1b1   :  { %v5792_v4 = vpop.permute.xlu0 %5791  ;;  %4969 = vmatmul.mubr.msk.f32.gmra.mrb[2].mxu0 %vm1939_vm5, %v7990_v55  ;;  %v1782_v35 = vsel %vm1778_vm2, %v5773_v3, %v5783_v1  ;;  %v1783_v18 = vsel %vm1778_vm2, %v5783_v1, %v5784_v29  ;;  %5911 = vrot.lane.b32.xlu1 %v5910_v51, %s6301_s0 }
 0x1b2   :  { %v5794_v15 = vunpack.i.h.bf16 %v5792_v4  ;;  %v5793_v50 = vunpack.i.l.bf16 %v5792_v4  ;;  %v5787_v32 = vpop.permute.xlu1 %5786  ;;  %2028 = vmatprep.mubr.f32.mxu0 %v11219_v17 }
 0x1b3   :  { %v5789_v61 = vunpack.i.h.bf16 %v5787_v32  ;;  %v5788_v30 = vunpack.i.l.bf16 %v5787_v32 }
 0x1b4   :  { %v1813_v59 = vsel %vm1778_vm2, %v5774_v52, %v5793_v50  ;;  %v1814_v6 = vsel %vm1778_vm2, %v5793_v50, %v5794_v15  ;;  %v11222_v52 = vmax.f32 %v7470_v5, 0.0  ;;  %v11223_v5 = vmax.f32 %v7405_v16, 0.0 }
 0x1b5   :  { %v5797_v62 = vpop.permute.xlu0 %5796  ;;  %v5318_v3 = vpack.c.bf16 %v1813_v59, %v1782_v35  ;;  %v5322_v57 = vpack.c.bf16 %v1814_v6, %v1783_v18  ;;  %v1414_v51 = vsel %vm361_vm1, %v5778_v40, %v5788_v30  ;;  %v1415_v56 = vsel %vm361_vm1, %v5788_v30, %v5789_v61  ;;  %4970 = vmatmul.mubr.msk.f32.gmra.mrb[4].mxu0 %vm1939_vm5, %v8011_v0  ;;  %v8030_v40 = vld [vmem:[%s10688_s3 + $0x18] sm:$0xff] }
 0x1b6   :  { %v5799_v1 = vunpack.i.h.bf16 %v5797_v62  ;;  %v5798_v4 = vunpack.i.l.bf16 %v5797_v62  ;;  %v8021_v26 = vmax.f32 %v11221_v25, %v1414_v51  ;;  %v8025_v32 = vmax.f32 %v11222_v52, %v1415_v56  ;;  %v5802_v50 = vpop.permute.xlu1 %5801  ;;  %2034 = vmatprep.mubr.f32.mxu0 %v11219_v17  ;;  %v11226_v52 = vld [vmem:[#allocation14_spill] sm:$0xff]  ;;  %v11240_v56 = vld [vmem:[#allocation3_spill] sm:$0xff] }
 0x1b7   :  { %5319 = vmatprep.subr.bf16.mxu1 %v5318_v3  ;;  %5323 = vmatprep.subr.bf16.mxu0 %v5322_v57  ;;  %v5804_v8 = vunpack.i.h.bf16 %v5802_v50  ;;  %v5803_v25 = vunpack.i.l.bf16 %v5802_v50  ;;  %v11224_v59 = vmax.f32 %v7466_v21, 0.0  ;;  %v11225_v51 = vpack.c.bf16 %v7517_v9, %v7497_v2  ;;  %v11227_v50 = vld [vmem:[#allocation12_spill] sm:$0xff] }
 0x1b8   :  { %v1445_v35 = vsel %vm361_vm1, %v5779_v22, %v5798_v4  ;;  %v1446_v18 = vsel %vm361_vm1, %v5798_v4, %v5799_v1  ;;  %5321 = vmatpush1.bf16.msra.mxu1 %v5310_v20  ;;  %5325 = vmatpush1.bf16.msra.mxu0 %v5318_v3  ;;  %v5915_v20 = vpack.i.bf16 %v8025_v32, %v8021_v26 }
 0x1b9   :  { %v8036_v30 = vmax.f32 %v11223_v5, %v1445_v35  ;;  %v8040_v6 = vmax.f32 %v11224_v59, %v1446_v18  ;;  %v8042_v62 = vpop.permute.xlu0 %5811  ;;  %5327 = vmatprep.subr.bf16.mxu0 %v11225_v51  ;;  %4971 = vmatmul.mubr.msk.f32.gmra.mrb[6].mxu0 %vm1939_vm5, %v8030_v40  ;;  %v1784_v21 = vsel %vm1778_vm2, %v5784_v29, %v5803_v25  ;;  %v11239_v51 = vld [vmem:[#allocation18_spill] sm:$0xff] }
 0x1ba   :  { %v5814_v22 = vunpack.i.h.bf16 %v8042_v62  ;;  %v5813_v16 = vunpack.i.l.bf16 %v8042_v62  ;;  %v1815_v3 = vsel %vm1778_vm2, %v5794_v15, %v5804_v8  ;;  %v5807_v2 = vpop.permute.xlu1 %5806  ;;  %5916 = vrot.lane.b32.xlu0 %v5915_v20, %s6301_s0  ;;  %v11228_v35 = vpack.c.bf16 %v11226_v52, %v11227_v50  ;;  %2194 = vmatprep.mubr.f32.mxu0 %v11219_v17  ;;  %v11229_v52 = vld [vmem:[#allocation8_spill] sm:$0xff] }
 0x1bb   :  { %4972 = vmatmul.mubr.msk.f32.vlgmr.msra.gmra.mrb[0].mxu1 %vm1939_vm5, %v7959_v10  ;;  %v5920_v9 = vpack.i.bf16 %v8040_v6, %v8036_v30  ;;  %v5330_v4 = vpack.c.bf16 %v1815_v3, %v1784_v21  ;;  %v5809_v29 = vunpack.i.h.bf16 %v5807_v2  ;;  %v5808_v18 = vunpack.i.l.bf16 %v5807_v2 }
 0x1bc   :  { %5329 = vmatpush1.bf16.msra.mxu0 %v11228_v35  ;;  %2111 = vmatprep.mubr.f32.mxu1 %v11219_v17  ;;  %v1785_v15 = vsel %vm1778_vm2, %v5803_v25, %v5813_v16  ;;  %v1816_v5 = vsel %vm1778_vm2, %v5804_v8, %v5814_v22  ;;  %v11230_v25 = vmax.f32 %v11229_v52, 0.0  ;;  %v11232_v8 = vld [vmem:[#allocation9_spill] sm:$0xff]  ;;  %v11241_v49 = vpack.c.bf16 %v11239_v51, %v11240_v56 }
 0x1bd   :  { %v5817_v59 = vpop.permute.xlu0 %5816  ;;  %5921 = vrot.lane.b32.xlu1 %v5920_v9, %s6301_s0  ;;  %5331 = vmatprep.subr.bf16.mxu0 %v5330_v4  ;;  %v5334_v62 = vpack.c.bf16 %v1816_v5, %v1785_v15  ;;  %v1447_v3 = vsel %vm361_vm1, %v5799_v1, %v5809_v29  ;;  %v1416_v2 = vsel %vm361_vm1, %v5789_v61, %v5808_v18  ;;  %v11233_v35 = vmax.f32 %v11232_v8, 0.0  ;;  %v11243_v51 = vld [vmem:[#allocation17_spill] sm:$0xff] }
 0x1be   :  { %v5819_v20 = vunpack.i.h.bf16 %v5817_v59  ;;  %v5818_v21 = vunpack.i.l.bf16 %v5817_v59  ;;  %v8077_v50 = vmax.f32 %v11230_v25, %v1447_v3  ;;  %v11235_v59 = vld [vmem:[#allocation15_spill] sm:$0xff] }
 0x1bf   :  { %v8081_v9 = vmax.f32 %v11233_v35, %v1416_v2  ;;  %4973 = vmatmul.mubr.msk.f32.gmra.mrb[2].mxu1 %vm1939_vm5, %v7990_v55  ;;  %5335 = vmatprep.subr.bf16.mxu1 %v5334_v62  ;;  %v8085_v15 = vpop.permute.xlu1 %5821  ;;  %v11236_v3 = vmax.f32 %v11235_v59, 0.0  ;;  %v11237_v2 = vld [vmem:[#allocation11_spill] sm:$0xff] }
 0x1c0   :  { %11231 = vst [vmem:[#allocation22_spill] sm:$0xff] %v8077_v50  ;;  %v1448_v1 = vsel %vm361_vm1, %v5809_v29, %v5819_v20  ;;  %v1417_v61 = vsel %vm361_vm1, %v5808_v18, %v5818_v21  ;;  %5333 = vmatpush1.bf16.msra.mxu0 %v5322_v57  ;;  %5337 = vmatpush1.bf16.msra.mxu1 %v5330_v4  ;;  %v10819_v5 = vunpack.i.h.bf16 %v8085_v15  ;;  %v11238_v25 = vmax.f32 %v11237_v2, 0.0  ;;  %v11242_v18 = vld [vmem:[#allocation16_spill] sm:$0xff] }
 0x1c1   :  { %11234 = vst [vmem:[#allocation25_spill] sm:$0xff] %v8081_v9  ;;  %v8092_v52 = vmax.f32 %v11236_v3, %v1448_v1  ;;  %v5823_v35 = vunpack.i.l.bf16 %v8085_v15  ;;  %5339 = vmatprep.subr.bf16.mxu1 %v11241_v49  ;;  %2117 = vmatprep.mubr.f32.mxu1 %v11219_v17  ;;  %v5925_v57 = vpack.i.bf16 %v8077_v50, %v8081_v9 }
 0x1c2   :  { %v8096_v8 = vmax.f32 %v11238_v25, %v1417_v61  ;;  %v11244_v1 = vpack.c.bf16 %v11242_v18, %v11243_v51 }
 0x1c3   :  { %4974 = vmatmul.mubr.msk.f32.gmra.mrb[4].mxu1 %vm1939_vm5, %v8011_v0  ;;  %4976 = vmatmul.mubr.msk.f32.vlgmr.msra.gmra.mrb[8].mxu0 %vm1939_vm5, %v7959_v10  ;;  %v5832_v56 = vpop.permute.xlu0 %5831  ;;  %v1786_v3 = vsel %vm1778_vm2, %v5813_v16, %v5823_v35  ;;  %v1787_v2 = vsel %vm1778_vm2, %v5823_v35, %v10819_v5  ;;  %v11245_v5 = vld [vmem:[#allocation10_spill] sm:$0xff] }
 0x1c4   :  { %v5930_v29 = vpack.i.bf16 %v8092_v52, %v8096_v8  ;;  %5341 = vmatpush1.bf16.msra.mxu1 %v11244_v1  ;;  %5926 = vrot.lane.b32.xlu0 %v5925_v57, %s6301_s0  ;;  %v5834_v61 = vunpack.i.h.bf16 %v5832_v56  ;;  %v5833_v59 = vunpack.i.l.bf16 %v5832_v56 }
 0x1c5   :  { %2123 = vmatprep.mubr.f32.mxu1 %v11219_v17  ;;  %2200 = vmatprep.mubr.f32.mxu0 %v11219_v17  ;;  %v5827_v25 = vpop.permute.xlu1 %5826 }
 0x1c6   :  { %5931 = vrot.lane.b32.xlu1 %v5930_v29, %s6301_s0  ;;  %v1817_v57 = vsel %vm1778_vm2, %v5814_v22, %v5833_v59  ;;  %v1818_v29 = vsel %vm1778_vm2, %v5833_v59, %v5834_v61  ;;  %v5829_v18 = vunpack.i.h.bf16 %v5827_v25  ;;  %v5828_v16 = vunpack.i.l.bf16 %v5827_v25 }
 0x1c7   :  { %4975 = vmatmul.mubr.msk.f32.gmra.mrb[6].mxu1 %vm1939_vm5, %v8030_v40  ;;  %4977 = vmatmul.mubr.msk.f32.gmra.mrb[10].mxu0 %vm1939_vm5, %v7990_v55  ;;  %v5342_v51 = vpack.c.bf16 %v1817_v57, %v1786_v3  ;;  %v5346_v1 = vpack.c.bf16 %v1818_v29, %v1787_v2  ;;  %v11246_v25 = vmax.f32 %v11245_v5, 0.0  ;;  %v11247_v2 = vmax.f32 %v7631_v14, 0.0  ;;  %v11248_v29 = vld [vmem:[#allocation13_spill] sm:$0xff] }
 0x1c8   :  { %2206 = vmatprep.mubr.f32.mxu0 %v11219_v17  ;;  %2283 = vmatprep.mubr.f32.mxu1 %v11219_v17  ;;  %v1418_v49 = vsel %vm361_vm1, %v5818_v21, %v5828_v16  ;;  %v1419_v45 = vsel %vm361_vm1, %v5828_v16, %v5829_v18  ;;  %v11250_v16 = vmax.f32 %v7628_v46, 0.0 }
 0x1c9   :  { %v5837_v56 = vpop.permute.xlu0 %5836  ;;  %5343 = vmatprep.subr.bf16.mxu1 %v5342_v51  ;;  %5347 = vmatprep.subr.bf16.mxu0 %v5346_v1  ;;  %v8140_v3 = vmax.f32 %v11246_v25, %v1418_v49  ;;  %v8144_v57 = vmax.f32 %v11247_v2, %v1419_v45  ;;  %v11257_v25 = vunpack.i.h.bf16 %v8085_v15 }
 0x1ca   :  { %v5839_v35 = vunpack.i.h.bf16 %v5837_v56  ;;  %v5838_v4 = vunpack.i.l.bf16 %v5837_v56  ;;  %5345 = vmatpush1.bf16.msra.mxu1 %v5334_v62  ;;  %v11249_v56 = vmax.f32 %v11248_v29, 0.0  ;;  %5349 = vmatpush1.bf16.msra.mxu0 %v5342_v51  ;;  %v11254_v51 = vld [vmem:[#allocation2_spill] sm:$0xff] }
 0x1cb   :  { %4978 = vmatmul.mubr.msk.f32.gmra.mrb[12].mxu0 %vm1939_vm5, %v8011_v0  ;;  %v5935_v45 = vpack.i.bf16 %v8144_v57, %v8140_v3 }
 0x1cc   :  { %v1449_v22 = vsel %vm361_vm1, %v5819_v20, %v5838_v4  ;;  %v1450_v59 = vsel %vm361_vm1, %v5838_v4, %v5839_v35  ;;  %v11251_v20 = vld [vmem:[#allocation4_spill] sm:$0xff]  ;;  %v11252_v4 = vld [vmem:[#allocation19_spill] sm:$0xff]  ;;  %2212 = vmatprep.mubr.f32.mxu0 %v11219_v17 }
 0x1cd   :  { %v8148_v21 = vmax.f32 %v11249_v56, %v1449_v22  ;;  %v8152_v9 = vmax.f32 %v11250_v16, %v1450_v59  ;;  %v11253_v50 = vpack.c.bf16 %v11251_v20, %v11252_v4  ;;  %4980 = vmatmul.mubr.msk.f32.vlgmr.msra.gmra.mrb[8].mxu1 %vm1939_vm5, %v7959_v10  ;;  %5936 = vrot.lane.b32.xlu0 %v5935_v45, %s6301_s0  ;;  %v11255_v22 = vld [vmem:[#allocation20_spill] sm:$0xff] }
 0x1ce   :  { %v5842_v14 = vpop.permute.xlu1 %5841  ;;  %2289 = vmatprep.mubr.f32.mxu1 %v11219_v17  ;;  %v11256_v59 = vpack.c.bf16 %v11254_v51, %v11255_v22 }
 0x1cf   :  { %5351 = vmatprep.subr.bf16.mxu0 %v11253_v50  ;;  %v5844_v62 = vunpack.i.h.bf16 %v5842_v14  ;;  %v5843_v5 = vunpack.i.l.bf16 %v5842_v14  ;;  %v5940_v46 = vpack.i.bf16 %v8152_v9, %v8148_v21  ;;  %4979 = vmatmul.mubr.msk.f32.gmra.mrb[14].mxu0 %vm1939_vm5, %v8030_v40 }
 0x1d0   :  { %5353 = vmatpush1.bf16.msra.mxu0 %v11256_v59  ;;  %2372 = vmatprep.mubr.f32.mxu0 %v11219_v17 }
 0x1d1   :  { %5941 = vrot.lane.b32.xlu1 %v5940_v46, %s6301_s0  ;;  %v1788_v2 = vsel %vm1778_vm2, %v11257_v25, %v5843_v5  ;;  %v1819_v29 = vsel %vm1778_vm2, %v5834_v61, %v5844_v62  ;;  %4981 = vmatmul.mubr.msk.f32.gmra.mrb[10].mxu1 %vm1939_vm5, %v7990_v55  ;;  %v11258_v61 = vmax.f32 %v7642_v37, 0.0  ;;  %v11259_v46 = vmax.f32 %v7646_v34, 0.0 }
 0x1d2   :  { %v5847_v56 = vpop.permute.xlu1 %5846  ;;  %v5354_v16 = vpack.c.bf16 %v1819_v29, %v1788_v2  ;;  %2295 = vmatprep.mubr.f32.mxu1 %v11219_v17 }
 0x1d3   :  { %v5849_v20 = vunpack.i.h.bf16 %v5847_v56  ;;  %v5848_v4 = vunpack.i.l.bf16 %v5847_v56 }
 0x1d4   :  { %5355 = vmatprep.subr.bf16.mxu0 %v5354_v16 }
 0x1d5   :  { %v1451_v15 = vsel %vm361_vm1, %v5839_v35, %v5849_v20  ;;  %v1420_v14 = vsel %vm361_vm1, %v5829_v18, %v5848_v4  ;;  %5357 = vmatpush1.bf16.msra.mxu0 %v5346_v1  ;;  %4982 = vmatmul.mubr.msk.f32.gmra.mrb[12].mxu1 %vm1939_vm5, %v8011_v0 }
 0x1d6   :  { %v8190_v45 = vmax.f32 %v11258_v61, %v1451_v15  ;;  %v8194_v51 = vmax.f32 %v11259_v46, %v1420_v14  ;;  %2301 = vmatprep.mubr.f32.mxu1 %v11219_v17  ;;  %v11260_v46 = vld [vmem:[#allocation5_spill] sm:$0xff] }
 0x1d8   :  { %v5852_v22 = vpop.permute.xlu0 %5851  ;;  %4984 = vmatmul.mubr.msk.f32.vlgmr.msra.gmra.mrb[16].mxu0 %vm1939_vm5, %v7959_v10  ;;  %v5945_v18 = vpack.i.bf16 %v8190_v45, %v8194_v51 }
 0x1d9   :  { %v5854_v1 = vunpack.i.h.bf16 %v5852_v22  ;;  %v5853_v35 = vunpack.i.l.bf16 %v5852_v22  ;;  %2378 = vmatprep.mubr.f32.mxu0 %v11219_v17  ;;  %4983 = vmatmul.mubr.msk.f32.gmra.mrb[14].mxu1 %vm1939_vm5, %v8030_v40  ;;  %v11261_v22 = vmax.f32 %v11260_v46, 0.0  ;;  %v11265_v46 = vld [vmem:[#allocation23_spill] sm:$0xff] }
 0x1da   :  { %v8206_v34 = vpop.permute.xlu1 %5861  ;;  %5946 = vrot.lane.b32.xlu0 %v5945_v18, %s6301_s0  ;;  %2461 = vmatprep.mubr.f32.mxu1 %v11219_v17 }
 0x1db   :  { %v1789_v59 = vsel %vm1778_vm2, %v5843_v5, %v5853_v35  ;;  %v1820_v25 = vsel %vm1778_vm2, %v5844_v62, %v5854_v1  ;;  %v5864_v14 = vunpack.i.h.bf16 %v8206_v34  ;;  %v5863_v61 = vunpack.i.l.bf16 %v8206_v34 }
 0x1dc   :  { %v5857_v2 = vpop.permute.xlu0 %5856  ;;  %v5358_v29 = vpack.c.bf16 %v1820_v25, %v1789_v59  ;;  %4985 = vmatmul.mubr.msk.f32.gmra.mrb[18].mxu0 %vm1939_vm5, %v7990_v55  ;;  %v11262_v59 = vld [vmem:[#allocation21_spill] sm:$0xff]  ;;  %v11264_v34 = vpack.c.bf16 %v7761_v12, %v7765_v38  ;;  %v11266_v12 = vld [vmem:[#allocation7_spill] sm:$0xff] }
 0x1dd   :  { %v5859_v56 = vunpack.i.h.bf16 %v5857_v2  ;;  %v5858_v15 = vunpack.i.l.bf16 %v5857_v2  ;;  %2384 = vmatprep.mubr.f32.mxu0 %v11219_v17  ;;  %v11263_v25 = vmax.f32 %v11262_v59, 0.0  ;;  %v11267_v38 = vpack.c.bf16 %v11265_v46, %v11266_v12 }
 0x1de   :  { %5359 = vmatprep.subr.bf16.mxu1 %v5358_v29 }
 0x1df   :  { %v1421_v5 = vsel %vm361_vm1, %v5848_v4, %v5858_v15  ;;  %v1452_v62 = vsel %vm361_vm1, %v5849_v20, %v5859_v56  ;;  %5361 = vmatpush1.bf16.msra.mxu1 %v5354_v16  ;;  %v1790_v16 = vsel %vm1778_vm2, %v5853_v35, %v5863_v61  ;;  %v1791_v20 = vsel %vm1778_vm2, %v5863_v61, %v5864_v14 }
 0x1e0   :  { %v8223_v18 = vmax.f32 %v11261_v22, %v1421_v5  ;;  %v8227_v37 = vmax.f32 %v11263_v25, %v1452_v62  ;;  %v5872_v2 = vpop.permute.xlu0 %5871  ;;  %5363 = vmatprep.subr.bf16.mxu1 %v11264_v34  ;;  %4986 = vmatmul.mubr.msk.f32.gmra.mrb[20].mxu0 %vm1939_vm5, %v8011_v0 }
 0x1e1   :  { %v5874_v4 = vunpack.i.h.bf16 %v5872_v2  ;;  %v5873_v49 = vunpack.i.l.bf16 %v5872_v2  ;;  %2390 = vmatprep.mubr.f32.mxu0 %v11219_v17 }
 0x1e2   :  { %v5950_v5 = vpack.i.bf16 %v8227_v37, %v8223_v18 }
 0x1e3   :  { %5365 = vmatpush1.bf16.msra.mxu1 %v11267_v38  ;;  %v1821_v22 = vsel %vm1778_vm2, %v5854_v1, %v5873_v49  ;;  %v1822_v59 = vsel %vm1778_vm2, %v5873_v49, %v5874_v4 }
 0x1e4   :  { %v5877_v25 = vpop.permute.xlu0 %5876  ;;  %5951 = vrot.lane.b32.xlu1 %v5950_v5, %s6301_s0  ;;  %v5366_v35 = vpack.c.bf16 %v1821_v22, %v1790_v16  ;;  %v5370_v61 = vpack.c.bf16 %v1822_v59, %v1791_v20  ;;  %4987 = vmatmul.mubr.msk.f32.gmra.mrb[22].mxu0 %vm1939_vm5, %v8030_v40  ;;  %v11268_v16 = vmax.f32 %v7757_v53, 0.0  ;;  %v11269_v5 = vmax.f32 %v7818_v23, 0.0 }
 0x1e5   :  { %v5879_v2 = vunpack.i.h.bf16 %v5877_v25  ;;  %v5878_v34 = vunpack.i.l.bf16 %v5877_v25  ;;  %2550 = vmatprep.mubr.f32.mxu0 %v11219_v17  ;;  %v11272_v53 = vmax.f32 %v7855_v24, 0.0 }
 0x1e6   :  { %v5867_v50 = vpop.permute.xlu1 %5866  ;;  %5367 = vmatprep.subr.bf16.mxu1 %v5366_v35  ;;  %5371 = vmatprep.subr.bf16.mxu0 %v5370_v61 }
 0x1e7   :  { %v5869_v62 = vunpack.i.h.bf16 %v5867_v50  ;;  %v5868_v46 = vunpack.i.l.bf16 %v5867_v50  ;;  %v1453_v1 = vsel %vm361_vm1, %v5859_v56, %v5878_v34  ;;  %v1454_v49 = vsel %vm361_vm1, %v5878_v34, %v5879_v2  ;;  %5369 = vmatpush1.bf16.msra.mxu1 %v5358_v29  ;;  %5373 = vmatpush1.bf16.msra.mxu0 %v5366_v35 }
 0x1e8   :  { %v8254_v20 = vmax.f32 %v11268_v16, %v1453_v1  ;;  %v8258_v12 = vmax.f32 %v11269_v5, %v1454_v49  ;;  %v8262_v22 = vpop.permute.xlu0 %5886  ;;  %v11270_v56 = vpack.c.bf16 %v7806_v7, %v7782_v63  ;;  %v11271_v29 = vmax.f32 %v7747_v36, 0.0 }
 0x1e9   :  { %v1422_v38 = vsel %vm361_vm1, %v5858_v15, %v5868_v46  ;;  %v1423_v50 = vsel %vm361_vm1, %v5868_v46, %v5869_v62  ;;  %v5889_v23 = vunpack.i.h.bf16 %v8262_v22  ;;  %v5888_v15 = vunpack.i.l.bf16 %v8262_v22 }
 0x1ea   :  { %5375 = vmatprep.subr.bf16.mxu0 %v11270_v56  ;;  %v8269_v59 = vmax.f32 %v11271_v29, %v1422_v38  ;;  %v8273_v25 = vmax.f32 %v11272_v53, %v1423_v50  ;;  %v5882_v35 = vpop.permute.xlu1 %5881  ;;  %4988 = vmatmul.mubr.msk.f32.vlgmr.msra.gmra.mrb[16].mxu1 %vm1939_vm5, %v7959_v10  ;;  %v5960_v63 = vpack.i.bf16 %v8258_v12, %v8254_v20 }
 0x1eb   :  { %v5884_v34 = vunpack.i.h.bf16 %v5882_v35  ;;  %v5883_v46 = vunpack.i.l.bf16 %v5882_v35  ;;  %v11273_v36 = vpack.c.bf16 %v7802_v19, %v7778_v39  ;;  %2467 = vmatprep.mubr.f32.mxu1 %v11219_v17  ;;  %v11282_v22 = vpack.c.bf16 %v7916_v11, %v7928_v13 }
 0x1ec   :  { %v5955_v7 = vpack.i.bf16 %v8273_v25, %v8269_v59  ;;  %v5470_v24 = vpack.c.bf16 %v8258_v12, %v8273_v25  ;;  %v5472_v1 = vpack.c.bf16 %v8254_v20, %v8269_v59  ;;  %5961 = vrot.lane.b32.xlu1 %v5960_v63, %s6301_s0  ;;  %v11275_v63 = vmax.f32 %v7867_v28, 0.0 }
 0x1ed   :  { %5377 = vmatpush1.bf16.msra.mxu0 %v11273_v36  ;;  %v1792_v49 = vsel %vm1778_vm2, %v5864_v14, %v5883_v46  ;;  %v1823_v16 = vsel %vm1778_vm2, %v5874_v4, %v5884_v34  ;;  %v1793_v39 = vsel %vm1778_vm2, %v5883_v46, %v5888_v15  ;;  %v1824_v19 = vsel %vm1778_vm2, %v5884_v34, %v5889_v23 }
 0x1ee   :  { %v5892_v5 = vpop.permute.xlu1 %5891  ;;  %5956 = vrot.lane.b32.xlu0 %v5955_v7, %s6301_s0  ;;  %v5378_v38 = vpack.c.bf16 %v1823_v16, %v1792_v49  ;;  %v5382_v50 = vpack.c.bf16 %v1824_v19, %v1793_v39  ;;  %4989 = vmatmul.mubr.msk.f32.gmra.mrb[18].mxu1 %vm1939_vm5, %v7990_v55  ;;  %v11274_v34 = vmax.f32 %v7830_v47, 0.0  ;;  %v11276_v7 = vmax.f32 %v7862_v41, 0.0  ;;  %v1918_v39 = vld [vmem:[%s10689_s4 + $0x18] sm:$0xff]  ;;  %v1917_v19 = vld [vmem:[%s10689_s4 + $0x10] sm:$0xff] }
 0x1ef   :  { %v5894_v56 = vunpack.i.h.bf16 %v5892_v5  ;;  %v5893_v29 = vunpack.i.l.bf16 %v5892_v5  ;;  %2473 = vmatprep.mubr.f32.mxu1 %v11219_v17 }
 0x1f0   :  { %5379 = vmatprep.subr.bf16.mxu0 %v5378_v38  ;;  %5383 = vmatprep.subr.bf16.mxu1 %v5382_v50 }
 0x1f1   :  { %v1455_v14 = vsel %vm361_vm1, %v5879_v2, %v5894_v56  ;;  %v1521_v4 = vsel %vm361_vm1, %v5894_v56, 0.0  ;;  %v1520_v53 = vsel %vm361_vm1, %v5893_v29, 0.0  ;;  %v1424_v35 = vsel %vm361_vm1, %v5869_v62, %v5893_v29  ;;  %5381 = vmatpush1.bf16.msra.mxu0 %v5370_v61  ;;  %5385 = vmatpush1.bf16.msra.mxu1 %v5378_v38  ;;  %v1916_v61 = vld [vmem:[%s10689_s4 + $0x8] sm:$0xff] }
 0x1f2   :  { %v8309_v46 = vmax.f32 %v11274_v34, %v1455_v14  ;;  %v8313_v36 = vmax.f32 %v11275_v63, %v1521_v4  ;;  %v8317_v49 = vmax.f32 %v11276_v7, %v1520_v53  ;;  %v11277_v2 = vmax.f32 %v7858_v60, 0.0  ;;  %4990 = vmatmul.mubr.msk.f32.gmra.mrb[20].mxu1 %vm1939_vm5, %v8011_v0 }
 0x1f3   :  { %v11278_v62 = vpack.c.bf16 %v7852_v31, %v7848_v54  ;;  %v11279_v54 = vld [vmem:[#allocation6_spill] sm:$0xff]  ;;  %2479 = vmatprep.mubr.f32.mxu1 %v11219_v17 }
 0x1f4   :  { %v8321_v16 = vmax.f32 %v11277_v2, %v1424_v35  ;;  %v5970_v47 = vpack.i.bf16 %v8313_v36, %v8317_v49  ;;  %4992 = vmatmul.mubr.msk.f32.vlgmr.msra.gmra.mrb[24].mxu0 %vm1939_vm5, %v7959_v10  ;;  %v5482_v41 = vpack.c.bf16 %v8313_v36, %v8317_v49  ;;  %v11280_v31 = vpack.c.bf16 %v7838_v43, %v11279_v54  ;;  %v1915_v43 = vld [vmem:[%s10689_s4] sm:$0xff] }
 0x1f5   :  { %5387 = vmatprep.subr.bf16.mxu1 %v11278_v62  ;;  %2556 = vmatprep.mubr.f32.mxu0 %v11219_v17  ;;  %v11281_v62 = vpack.c.bf16 %v7920_v48, %v7932_v58 }
 0x1f6   :  { %v5965_v60 = vpack.i.bf16 %v8309_v46, %v8321_v16  ;;  %5389 = vmatpush1.bf16.msra.mxu1 %v11280_v31  ;;  %v5484_v28 = vpack.c.bf16 %v8309_v46, %v8321_v16  ;;  %5971 = vrot.lane.b32.xlu1 %v5970_v47, %s6301_s0 }
 0x1f7   :  { %4991 = vmatmul.mubr.msk.f32.gmra.mrb[22].mxu1 %vm1939_vm5, %v8030_v40 }
 0x1f8   :  { %5966 = vrot.lane.b32.xlu0 %v5965_v60, %s6301_s0  ;;  %4993 = vmatmul.mubr.msk.f32.gmra.mrb[26].mxu0 %vm1939_vm5, %v7990_v55 }
 0x1f9   :  { %2562 = vmatprep.mubr.f32.mxu0 %v11219_v17  ;;  %2639 = vmatprep.mubr.f32.mxu1 %v11219_v17 }
 0x1fa   :  { %1926 = vperm.xlu1 %5654, %v1916_v61  }
 0x1fc   :  { %1921 = vperm.xlu0 %5652, %v1915_v43   ;;  %4994 = vmatmul.mubr.msk.f32.gmra.mrb[28].mxu0 %vm1939_vm5, %v8011_v0 }
 0x1fd   :  { %2568 = vmatprep.mubr.f32.mxu0 %v11219_v17 }
 0x1fe   :  { %1936 = vperm.xlu1 %5654, %v1918_v39   ;;  %v11283_v39 = vpack.c.bf16 %v7977_v33, %v7981_v42 }
 0x200   :  { %1931 = vperm.xlu0 %5652, %v1917_v19   ;;  %4995 = vmatmul.mubr.msk.f32.gmra.mrb[30].mxu0 %vm1939_vm5, %v8030_v40 }
 0x201   :  { %2728 = vmatprep.mubr.f32.mxu0 %v11219_v17 }
 0x212   :  { %v5902_v5 = vpop.permute.xlu1 %5901 }
 0x213   :  { %v5904_v38 = vunpack.i.h.bf16 %v5902_v5  ;;  %v5903_v56 = vunpack.i.l.bf16 %v5902_v5 }
 0x214   :  { %v5897_v29 = vpop.permute.xlu0 %5896 }
 0x215   :  { %v5899_v14 = vunpack.i.h.bf16 %v5897_v29  ;;  %v5898_v4 = vunpack.i.l.bf16 %v5897_v29  ;;  %v1825_v53 = vsel %vm1778_vm2, %v5889_v23, %v5903_v56  ;;  %v1826_v35 = vsel %vm1778_vm2, %v5903_v56, %v5904_v38 }
 0x217   :  { %v1794_v34 = vsel %vm1778_vm2, %v5888_v15, %v5898_v4  ;;  %v1795_v63 = vsel %vm1778_vm2, %v5898_v4, %v5899_v14 }
 0x218   :  { %v5390_v7 = vpack.c.bf16 %v1825_v53, %v1794_v34  ;;  %v5394_v2 = vpack.c.bf16 %v1826_v35, %v1795_v63 }
 0x21a   :  { %5391 = vmatprep.subr.bf16.mxu1 %v5390_v7  ;;  %5395 = vmatprep.subr.bf16.mxu0 %v5394_v2 }
 0x21b   :  { %5393 = vmatpush1.bf16.msra.mxu1 %v5382_v50  ;;  %5397 = vmatpush1.bf16.msra.mxu0 %v5390_v7 }
 0x21c   :  { %5399 = vmatprep.subr.bf16.mxu0 %v11281_v62 }
 0x21e   :  { %4996 = vmatmul.mubr.msk.f32.vlgmr.msra.gmra.mrb[24].mxu1 %vm1939_vm5, %v7959_v10 }
 0x21f   :  { %5401 = vmatpush1.bf16.msra.mxu0 %v11282_v22  ;;  %2645 = vmatprep.mubr.f32.mxu1 %v11219_v17 }
 0x221   :  { %v5907_v23 = vpop.permute.xlu0 %5906 }
 0x222   :  { %v5909_v15 = vunpack.i.h.bf16 %v5907_v23  ;;  %v5908_v47 = vunpack.i.l.bf16 %v5907_v23  ;;  %4997 = vmatmul.mubr.msk.f32.gmra.mrb[26].mxu1 %vm1939_vm5, %v7990_v55 }
 0x223   :  { %2651 = vmatprep.mubr.f32.mxu1 %v11219_v17  ;;  %v5912_v50 = vpop.permute.xlu1 %5911 }
 0x224   :  { %v1796_v48 = vsel %vm1778_vm2, %v5899_v14, %v5908_v47  ;;  %v1827_v58 = vsel %vm1778_vm2, %v5904_v38, %v5909_v15  ;;  %v5914_v60 = vunpack.i.h.bf16 %v5912_v50  ;;  %v5913_v54 = vunpack.i.l.bf16 %v5912_v50 }
 0x225   :  { %v5402_v31 = vpack.c.bf16 %v1827_v58, %v1796_v48  ;;  %v11284_v14 = vpack.c.bf16 %v7963_v44, %v7967_v27  ;;  %v11287_v58 = vpack.c.bf16 %v8092_v52, %v8096_v8 }
 0x226   :  { %4998 = vmatmul.mubr.msk.f32.gmra.mrb[28].mxu1 %vm1939_vm5, %v8011_v0  ;;  %v1797_v11 = vsel %vm1778_vm2, %v5908_v47, %v5913_v54  ;;  %v1828_v13 = vsel %vm1778_vm2, %v5909_v15, %v5914_v60 }
 0x227   :  { %5403 = vmatprep.subr.bf16.mxu0 %v5402_v31  ;;  %2657 = vmatprep.mubr.f32.mxu1 %v11219_v17  ;;  %v5406_v61 = vpack.c.bf16 %v1828_v13, %v1797_v11  ;;  %v11289_v11 = vld [vmem:[#allocation25_spill] sm:$0xff] }
 0x228   :  { %5405 = vmatpush1.bf16.msra.mxu0 %v5394_v2  ;;  %v11285_v2 = vpack.c.bf16 %v8040_v6, %v8025_v32  ;;  %v11286_v32 = vpack.c.bf16 %v8036_v30, %v8021_v26 }
 0x229   :  { %5407 = vmatprep.subr.bf16.mxu1 %v5406_v61 }
 0x22a   :  { %4999 = vmatmul.mubr.msk.f32.gmra.mrb[30].mxu1 %vm1939_vm5, %v8030_v40 }
 0x22b   :  { %5409 = vmatpush1.bf16.msra.mxu1 %v5402_v31  ;;  %5000 = vmatmul.mubr.msk.f32.vlgmr.msra.gmra.mrb[32].mxu0 %vm1939_vm5, %v7959_v10  ;;  %v11288_v31 = vld [vmem:[#allocation22_spill] sm:$0xff] }
 0x22c   :  { %v5917_v43 = vpop.permute.xlu0 %5916  ;;  %5411 = vmatprep.subr.bf16.mxu1 %v11283_v39  ;;  %2734 = vmatprep.mubr.f32.mxu0 %v11219_v17  ;;  %v11290_v13 = vpack.c.bf16 %v11288_v31, %v11289_v11 }
 0x22d   :  { %v5919_v19 = vunpack.i.h.bf16 %v5917_v43  ;;  %v5918_v5 = vunpack.i.l.bf16 %v5917_v43  ;;  %2817 = vmatprep.mubr.f32.mxu1 %v11219_v17 }
 0x22f   :  { %v5922_v38 = vpop.permute.xlu1 %5921  ;;  %5413 = vmatpush1.bf16.msra.mxu1 %v11284_v14  ;;  %5001 = vmatmul.mubr.msk.f32.gmra.mrb[34].mxu0 %vm1939_vm5, %v7990_v55  ;;  %v1798_v4 = vsel %vm1778_vm2, %v5913_v54, %v5918_v5  ;;  %v1799_v33 = vsel %vm1778_vm2, %v5918_v5, %v5919_v19 }
 0x230   :  { %v5924_v56 = vunpack.i.h.bf16 %v5922_v38  ;;  %v5923_v29 = vunpack.i.l.bf16 %v5922_v38  ;;  %2740 = vmatprep.mubr.f32.mxu0 %v11219_v17 }
 0x232   :  { %v1829_v42 = vsel %vm1778_vm2, %v5914_v60, %v5923_v29  ;;  %v1830_v53 = vsel %vm1778_vm2, %v5923_v29, %v5924_v56 }
 0x233   :  { %v5414_v35 = vpack.c.bf16 %v1829_v42, %v1798_v4  ;;  %v5418_v34 = vpack.c.bf16 %v1830_v53, %v1799_v33  ;;  %5002 = vmatmul.mubr.msk.f32.gmra.mrb[36].mxu0 %vm1939_vm5, %v8011_v0  ;;  %v11292_v33 = vpack.c.bf16 %v8148_v21, %v8140_v3 }
 0x234   :  { %2746 = vmatprep.mubr.f32.mxu0 %v11219_v17 }
 0x235   :  { %5415 = vmatprep.subr.bf16.mxu1 %v5414_v35  ;;  %5419 = vmatprep.subr.bf16.mxu0 %v5418_v34 }
 0x236   :  { %5417 = vmatpush1.bf16.msra.mxu1 %v5406_v61  ;;  %5421 = vmatpush1.bf16.msra.mxu0 %v5414_v35  ;;  %v5927_v44 = vpop.permute.xlu0 %5926 }
 0x237   :  { %v5929_v63 = vunpack.i.h.bf16 %v5927_v44  ;;  %v5928_v7 = vunpack.i.l.bf16 %v5927_v44  ;;  %5423 = vmatprep.subr.bf16.mxu0 %v11285_v2  ;;  %5003 = vmatmul.mubr.msk.f32.gmra.mrb[38].mxu0 %vm1939_vm5, %v8030_v40 }
 0x238   :  { %v5932_v27 = vpop.permute.xlu1 %5931  ;;  %2906 = vmatprep.mubr.f32.mxu0 %v11219_v17 }
 0x239   :  { %v5934_v62 = vunpack.i.h.bf16 %v5932_v27  ;;  %v5933_v22 = vunpack.i.l.bf16 %v5932_v27  ;;  %5004 = vmatmul.mubr.msk.f32.vlgmr.msra.gmra.mrb[32].mxu1 %vm1939_vm5, %v7959_v10  ;;  %v1800_v23 = vsel %vm1778_vm2, %v5919_v19, %v5928_v7  ;;  %v1831_v15 = vsel %vm1778_vm2, %v5924_v56, %v5929_v63 }
 0x23a   :  { %5425 = vmatpush1.bf16.msra.mxu0 %v11286_v32  ;;  %2823 = vmatprep.mubr.f32.mxu1 %v11219_v17  ;;  %v5426_v6 = vpack.c.bf16 %v1831_v15, %v1800_v23  ;;  %v11291_v56 = vpack.c.bf16 %v8152_v9, %v8144_v57  ;;  %v11294_v15 = vpack.c.bf16 %v8190_v45, %v8194_v51 }
 0x23b   :  { %v1801_v47 = vsel %vm1778_vm2, %v5928_v7, %v5933_v22  ;;  %v1832_v50 = vsel %vm1778_vm2, %v5929_v63, %v5934_v62  ;;  %v11293_v63 = vpack.c.bf16 %v8227_v37, %v8223_v18 }
 0x23c   :  { %v5430_v48 = vpack.c.bf16 %v1832_v50, %v1801_v47  ;;  %5427 = vmatprep.subr.bf16.mxu0 %v5426_v6 }
 0x23d   :  { %5005 = vmatmul.mubr.msk.f32.gmra.mrb[34].mxu1 %vm1939_vm5, %v7990_v55 }
 0x23e   :  { %5431 = vmatprep.subr.bf16.mxu1 %v5430_v48  ;;  %5429 = vmatpush1.bf16.msra.mxu0 %v5418_v34 }
 0x23f   :  { %5433 = vmatpush1.bf16.msra.mxu1 %v5426_v6  ;;  %2829 = vmatprep.mubr.f32.mxu1 %v11219_v17  ;;  %v5937_v26 = vpop.permute.xlu0 %5936 }
 0x240   :  { %5435 = vmatprep.subr.bf16.mxu1 %v11287_v58  ;;  %v5939_v60 = vunpack.i.h.bf16 %v5937_v26  ;;  %v5938_v54 = vunpack.i.l.bf16 %v5937_v26 }
 0x241   :  { %5006 = vmatmul.mubr.msk.f32.gmra.mrb[36].mxu1 %vm1939_vm5, %v8011_v0  ;;  %5008 = vmatmul.mubr.msk.f32.vlgmr.msra.gmra.mrb[40].mxu0 %vm1939_vm5, %v7959_v10 }
 0x242   :  { %2835 = vmatprep.mubr.f32.mxu1 %v11219_v17  ;;  %2912 = vmatprep.mubr.f32.mxu0 %v11219_v17  ;;  %v1802_v61 = vsel %vm1778_vm2, %v5933_v22, %v5938_v54  ;;  %v1803_v43 = vsel %vm1778_vm2, %v5938_v54, %v5939_v60 }
 0x243   :  { %v5942_v30 = vpop.permute.xlu1 %5941  ;;  %5437 = vmatpush1.bf16.msra.mxu1 %v11290_v13 }
 0x244   :  { %v5944_v52 = vunpack.i.h.bf16 %v5942_v30  ;;  %v5943_v8 = vunpack.i.l.bf16 %v5942_v30 }
 0x245   :  { %5007 = vmatmul.mubr.msk.f32.gmra.mrb[38].mxu1 %vm1939_vm5, %v8030_v40  ;;  %5009 = vmatmul.mubr.msk.f32.gmra.mrb[42].mxu0 %vm1939_vm5, %v7990_v55 }
 0x246   :  { %v1833_v39 = vsel %vm1778_vm2, %v5934_v62, %v5943_v8  ;;  %v1834_v19 = vsel %vm1778_vm2, %v5943_v8, %v5944_v52  ;;  %2918 = vmatprep.mubr.f32.mxu0 %v11219_v17  ;;  %2995 = vmatprep.mubr.f32.mxu1 %v11219_v17 }
 0x247   :  { %v5438_v5 = vpack.c.bf16 %v1833_v39, %v1802_v61  ;;  %v5442_v38 = vpack.c.bf16 %v1834_v19, %v1803_v43 }
 0x249   :  { %5439 = vmatprep.subr.bf16.mxu1 %v5438_v5  ;;  %5443 = vmatprep.subr.bf16.mxu0 %v5442_v38 }
 0x24a   :  { %5441 = vmatpush1.bf16.msra.mxu1 %v5430_v48  ;;  %5445 = vmatpush1.bf16.msra.mxu0 %v5438_v5 }
 0x24b   :  { %5447 = vmatprep.subr.bf16.mxu0 %v11291_v56  ;;  %5010 = vmatmul.mubr.msk.f32.gmra.mrb[44].mxu0 %vm1939_vm5, %v8011_v0 }
 0x24c   :  { %v5947_v29 = vpop.permute.xlu0 %5946  ;;  %2924 = vmatprep.mubr.f32.mxu0 %v11219_v17 }
 0x24d   :  { %5012 = vmatmul.mubr.msk.f32.vlgmr.msra.gmra.mrb[40].mxu1 %vm1939_vm5, %v7959_v10  ;;  %v5949_v14 = vunpack.i.h.bf16 %v5947_v29  ;;  %v5948_v4 = vunpack.i.l.bf16 %v5947_v29 }
 0x24e   :  { %5449 = vmatpush1.bf16.msra.mxu0 %v11292_v33  ;;  %3001 = vmatprep.mubr.f32.mxu1 %v11219_v17 }
 0x24f   :  { %5011 = vmatmul.mubr.msk.f32.gmra.mrb[46].mxu0 %vm1939_vm5, %v8030_v40  ;;  %v1804_v9 = vsel %vm1778_vm2, %v5939_v60, %v5948_v4  ;;  %v1835_v57 = vsel %vm1778_vm2, %v5944_v52, %v5949_v14 }
 0x250   :  { %v5450_v42 = vpack.c.bf16 %v1835_v57, %v1804_v9  ;;  %3084 = vmatprep.mubr.f32.mxu0 %v11219_v17 }
 0x251   :  { %5013 = vmatmul.mubr.msk.f32.gmra.mrb[42].mxu1 %vm1939_vm5, %v7990_v55 }
 0x252   :  { %3007 = vmatprep.mubr.f32.mxu1 %v11219_v17  ;;  %5451 = vmatprep.subr.bf16.mxu0 %v5450_v42 }
 0x253   :  { %5453 = vmatpush1.bf16.msra.mxu0 %v5442_v38 }
 0x255   :  { %5014 = vmatmul.mubr.msk.f32.gmra.mrb[44].mxu1 %vm1939_vm5, %v8011_v0 }
 0x256   :  { %v5952_v3 = vpop.permute.xlu1 %5951  ;;  %3013 = vmatprep.mubr.f32.mxu1 %v11219_v17  ;;  %5016 = vmatmul.mubr.msk.f32.vlgmr.msra.gmra.mrb[48].mxu0 %vm1939_vm5, %v7959_v10 }
 0x257   :  { %v5954_v21 = vunpack.i.h.bf16 %v5952_v3  ;;  %v5953_v53 = vunpack.i.l.bf16 %v5952_v3  ;;  %3090 = vmatprep.mubr.f32.mxu0 %v11219_v17 }
 0x259   :  { %5015 = vmatmul.mubr.msk.f32.gmra.mrb[46].mxu1 %vm1939_vm5, %v8030_v40  ;;  %v1805_v35 = vsel %vm1778_vm2, %v5948_v4, %v5953_v53  ;;  %v1836_v34 = vsel %vm1778_vm2, %v5949_v14, %v5954_v21 }
 0x25a   :  { %v5454_v44 = vpack.c.bf16 %v1836_v34, %v1805_v35  ;;  %5017 = vmatmul.mubr.msk.f32.gmra.mrb[50].mxu0 %vm1939_vm5, %v7990_v55  ;;  %3173 = vmatprep.mubr.f32.mxu1 %v11219_v17 }
 0x25b   :  { %3096 = vmatprep.mubr.f32.mxu0 %v11219_v17 }
 0x25c   :  { %5455 = vmatprep.subr.bf16.mxu1 %v5454_v44 }
 0x25d   :  { %5457 = vmatpush1.bf16.msra.mxu1 %v5450_v42 }
 0x25e   :  { %v5962_v27 = vpop.permute.xlu1 %5961  ;;  %5459 = vmatprep.subr.bf16.mxu1 %v11293_v63  ;;  %5018 = vmatmul.mubr.msk.f32.gmra.mrb[52].mxu0 %vm1939_vm5, %v8011_v0 }
 0x25f   :  { %v5964_v7 = vunpack.i.h.bf16 %v5962_v27  ;;  %v5963_v2 = vunpack.i.l.bf16 %v5962_v27  ;;  %3102 = vmatprep.mubr.f32.mxu0 %v11219_v17 }
 0x260   :  { %v5957_v62 = vpop.permute.xlu0 %5956 }
 0x261   :  { %v5959_v22 = vunpack.i.h.bf16 %v5957_v62  ;;  %v5958_v23 = vunpack.i.l.bf16 %v5957_v62  ;;  %5461 = vmatpush1.bf16.msra.mxu1 %v11294_v15  ;;  %v1837_v32 = vsel %vm1778_vm2, %v5954_v21, %v5963_v2  ;;  %v1838_v6 = vsel %vm1778_vm2, %v5963_v2, %v5964_v7 }
 0x262   :  { %5019 = vmatmul.mubr.msk.f32.gmra.mrb[54].mxu0 %vm1939_vm5, %v8030_v40 }
 0x263   :  { %v1806_v37 = vsel %vm1778_vm2, %v5953_v53, %v5958_v23  ;;  %v1807_v18 = vsel %vm1778_vm2, %v5958_v23, %v5959_v22  ;;  %3262 = vmatprep.mubr.f32.mxu0 %v11219_v17 }
 0x264   :  { %v5462_v47 = vpack.c.bf16 %v1837_v32, %v1806_v37  ;;  %v5466_v50 = vpack.c.bf16 %v1838_v6, %v1807_v18 }
 0x266   :  { %5463 = vmatprep.subr.bf16.mxu1 %v5462_v47  ;;  %5467 = vmatprep.subr.bf16.mxu0 %v5466_v50 }
 0x267   :  { %5465 = vmatpush1.bf16.msra.mxu1 %v5454_v44  ;;  %5469 = vmatpush1.bf16.msra.mxu0 %v5462_v47 }
 0x268   :  { %v5972_v45 = vpop.permute.xlu1 %5971  ;;  %5471 = vmatprep.subr.bf16.mxu0 %v5470_v24 }
 0x269   :  { %v5974_v48 = vunpack.i.h.bf16 %v5972_v45  ;;  %v5973_v58 = vunpack.i.l.bf16 %v5972_v45 }
 0x26a   :  { %v5967_v51 = vpop.permute.xlu0 %5966  ;;  %5020 = vmatmul.mubr.msk.f32.vlgmr.msra.gmra.mrb[48].mxu1 %vm1939_vm5, %v7959_v10 }
 0x26b   :  { %v5969_v26 = vunpack.i.h.bf16 %v5967_v51  ;;  %v5968_v30 = vunpack.i.l.bf16 %v5967_v51  ;;  %5473 = vmatpush1.bf16.msra.mxu0 %v5472_v1  ;;  %3179 = vmatprep.mubr.f32.mxu1 %v11219_v17  ;;  %v5486_v20 = vpack.c.bf16 %v5974_v48, %v5973_v58 }
 0x26d   :  { %v1808_v60 = vsel %vm1778_vm2, %v5959_v22, %v5968_v30  ;;  %v1839_v54 = vsel %vm1778_vm2, %v5964_v7, %v5969_v26  ;;  %v1809_v12 = vsel %vm1778_vm2, %v5968_v30, %v5973_v58  ;;  %v1840_v25 = vsel %vm1778_vm2, %v5969_v26, %v5974_v48 }
 0x26e   :  { %v5474_v31 = vpack.c.bf16 %v1839_v54, %v1808_v60  ;;  %v5478_v24 = vpack.c.bf16 %v1840_v25, %v1809_v12  ;;  %5021 = vmatmul.mubr.msk.f32.gmra.mrb[50].mxu1 %vm1939_vm5, %v7990_v55 }
 0x26f   :  { %3185 = vmatprep.mubr.f32.mxu1 %v11219_v17 }
 0x270   :  { %5475 = vmatprep.subr.bf16.mxu0 %v5474_v31  ;;  %5479 = vmatprep.subr.bf16.mxu1 %v5478_v24 }
 0x271   :  { %5477 = vmatpush1.bf16.msra.mxu0 %v5466_v50  ;;  %5481 = vmatpush1.bf16.msra.mxu1 %v5474_v31 }
 0x272   :  { %5483 = vmatprep.subr.bf16.mxu1 %v5482_v41  ;;  %5022 = vmatmul.mubr.msk.f32.gmra.mrb[52].mxu1 %vm1939_vm5, %v8011_v0 }
 0x273   :  { %3191 = vmatprep.mubr.f32.mxu1 %v11219_v17 }
 0x274   :  { %5024 = vmatmul.mubr.msk.f32.vlgmr.msra.gmra.mrb[56].mxu0 %vm1939_vm5, %v7959_v10  ;;  %v6295_v10 = vld [vmem:[%s10688_s3] sm:$0xff] }
 0x275   :  { %3268 = vmatprep.mubr.f32.mxu0 %v11219_v17  ;;  %5485 = vmatpush1.bf16.msra.mxu1 %v5484_v28 }
 0x276   :  { %5488 = vmatprep.subr.msk.bf16.mxu1 %vm5487_vm6, %v5486_v20  ;;  %5023 = vmatmul.mubr.msk.f32.gmra.mrb[54].mxu1 %vm1939_vm5, %v8030_v40 }
 0x277   :  { %3351 = vmatprep.mubr.f32.mxu1 %v11219_v17 }
 0x278   :  { %5025 = vmatmul.mubr.msk.f32.gmra.mrb[58].mxu0 %vm1939_vm5, %v7990_v55 }
 0x279   :  { %3274 = vmatprep.mubr.f32.mxu0 %v11219_v17  ;;  %5490 = vmatpush1.bf16.msra.mxu1 %v5478_v24  ;;  %v8593_v56 = vpop.permute.xlu1 %1926 }
 0x27b   :  { %v8559_v59 = vpop.permute.xlu0 %1921 }
 0x27c   :  { %5026 = vmatmul.mubr.msk.f32.gmra.mrb[60].mxu0 %vm1939_vm5, %v8011_v0  ;;  %5030 = vmatmul.mubr.msk.f32.vlgmr.msra.gmra.mrb[56].mxu1 %vm1939_vm5, %v6295_v10 }
 0x27d   :  { %3280 = vmatprep.mubr.f32.mxu0 %v11219_v17  ;;  %3357 = vmatprep.mubr.f32.mxu1 %v11219_v17  ;;  %v8625_v22 = vpop.permute.xlu1 %1936 }
 0x280   :  { %5027 = vmatmul.mubr.msk.f32.gmra.mrb[62].mxu0 %vm1939_vm5, %v8030_v40  ;;  %5031 = vmatmul.mubr.msk.f32.gmra.mrb[58].mxu1 %vm1939_vm5, %v7990_v55  ;;  %v2018_v1 = vpop.f32.mrb[0].mxu0 }
 0x281   :  { %3363 = vmatprep.mubr.f32.mxu1 %v11219_v17  ;;  %v8565_v46 = vadd.f32 %v2018_v1, %v8559_v59  ;;  %v2020_v36 = vpop.f32.mrb[1].mxu0 }
 0x282   :  { %v8568_v49 = vadd.f32 %v2020_v36, %v8559_v59 }
 0x283   :  { %v10859_v16 = vmax.f32 %v8565_v46, 0.0 }
 0x284   :  { %5032 = vmatmul.mubr.msk.f32.gmra.mrb[60].mxu1 %vm1939_vm5, %v8011_v0  ;;  %v10854_v55 = vmax.f32 %v8568_v49, 0.0  ;;  %v2024_v41 = vpop.f32.mrb[2].mxu0  ;;  %v8578_v0 = vpop.permute.xlu0 %1931 }
 0x285   :  { %3369 = vmatprep.mubr.f32.mxu1 %v11219_v17  ;;  %v2026_v28 = vpop.f32.mrb[3].mxu0  ;;  %v8600_v14 = vadd.f32 %v2024_v41, %v8593_v56 }
 0x286   :  { %v5975_v17 = vpack.i.bf16 %v10854_v55, %v10859_v16  ;;  %v8603_v33 = vadd.f32 %v2026_v28, %v8593_v56 }
 0x287   :  { %v10858_v21 = vmax.f32 %v8600_v14, 0.0 }
 0x288   :  { %5033 = vmatmul.mubr.msk.f32.gmra.mrb[62].mxu1 %vm1939_vm5, %v8030_v40  ;;  %v2030_v11 = vpop.f32.mrb[4].mxu0  ;;  %5976 = vrot.lane.b32.xlu0 %v5975_v17, %s6301_s0  ;;  %v10853_v34 = vmax.f32 %v8603_v33, 0.0 }
 0x289   :  { %v8582_v13 = vadd.f32 %v2030_v11, %v8578_v0  ;;  %v2032_v52 = vpop.f32.mrb[5].mxu0 }
 0x28a   :  { %v8585_v40 = vadd.f32 %v2032_v52, %v8578_v0  ;;  %v5985_v18 = vpack.i.bf16 %v10853_v34, %v10858_v21 }
 0x28b   :  { %v10857_v8 = vmax.f32 %v8582_v13, 0.0 }
 0x28c   :  { %v10828_v61 = vmax.f32 %v8585_v40, 0.0  ;;  %v2036_v43 = vpop.f32.mrb[6].mxu0 }
 0x28d   :  { %v2038_v19 = vpop.f32.mrb[7].mxu0  ;;  %v8652_v30 = vadd.f32 %v2036_v43, %v8625_v22 }
 0x28e   :  { %v2107_v39 = vpop.f32.mrb[0].mxu1  ;;  %v5995_v5 = vpack.i.bf16 %v10828_v61, %v10857_v8  ;;  %v8655_v60 = vadd.f32 %v2038_v19, %v8625_v22 }
 0x28f   :  { %v2109_v38 = vpop.f32.mrb[1].mxu1  ;;  %v8596_v29 = vadd.f32 %v2107_v39, %v8559_v59  ;;  %v10849_v1 = vmax.f32 %v8652_v30, 0.0 }
 0x290   :  { %5996 = vrot.lane.b32.xlu0 %v5995_v5, %s6301_s0  ;;  %v8628_v23 = vadd.f32 %v2109_v38, %v8559_v59  ;;  %v10833_v36 = vmax.f32 %v8655_v60, 0.0 }
 0x291   :  { %v10834_v42 = vmax.f32 %v8596_v29, 0.0 }
 0x292   :  { %v2113_v4 = vpop.f32.mrb[2].mxu1  ;;  %11296 = vst [vmem:[#allocation40_spill] sm:$0xff] %v8628_v23  ;;  %v10822_v58 = vmax.f32 %v8628_v23, 0.0 }
 0x293   :  { %v8606_v9 = vadd.f32 %v2113_v4, %v8593_v56  ;;  %v2115_v57 = vpop.f32.mrb[3].mxu1  ;;  %v6005_v4 = vpack.i.bf16 %v10833_v36, %v10849_v1 }
 0x294   :  { %v8617_v27 = vadd.f32 %v2115_v57, %v8593_v56 }
 0x295   :  { %v10835_v3 = vmax.f32 %v8606_v9, 0.0 }
 0x296   :  { %v2119_v53 = vpop.f32.mrb[4].mxu1  ;;  %v2196_v35 = vpop.f32.mrb[8].mxu0  ;;  %11295 = vst [vmem:[#allocation39_spill] sm:$0xff] %v8617_v27  ;;  %v10823_v47 = vmax.f32 %v8617_v27, 0.0 }
 0x297   :  { %v5980_v44 = vpack.i.bf16 %v10835_v3, %v10834_v42  ;;  %v8620_v63 = vadd.f32 %v2196_v35, %v8559_v59  ;;  %v2121_v7 = vpop.f32.mrb[5].mxu1  ;;  %v2198_v2 = vpop.f32.mrb[9].mxu0  ;;  %v8647_v26 = vadd.f32 %v2119_v53, %v8578_v0 }
 0x298   :  { %v8623_v62 = vadd.f32 %v2198_v2, %v8559_v59  ;;  %v5990_v54 = vpack.i.bf16 %v10823_v47, %v10822_v58  ;;  %v8677_v52 = vadd.f32 %v2121_v7, %v8578_v0 }
 0x299   :  { %v10852_v15 = vmax.f32 %v8620_v63, 0.0  ;;  %5981 = vrot.lane.b32.xlu1 %v5980_v44, %s6301_s0  ;;  %v10827_v25 = vmax.f32 %v8647_v26, 0.0 }
 0x29a   :  { %v10841_v32 = vmax.f32 %v8623_v62, 0.0  ;;  %v2125_v6 = vpop.f32.mrb[6].mxu1  ;;  %v2202_v37 = vpop.f32.mrb[10].mxu0  ;;  %11298 = vst [vmem:[#allocation24_spill] sm:$0xff] %v8677_v52 }
 0x29b   :  { %v8639_v50 = vadd.f32 %v2125_v6, %v8625_v22  ;;  %v2127_v45 = vpop.f32.mrb[7].mxu1  ;;  %v2204_v51 = vpop.f32.mrb[11].mxu0  ;;  %v8680_v43 = vadd.f32 %v2202_v37, %v8593_v56  ;;  %v10825_v6 = vmax.f32 %v8677_v52, 0.0 }
 0x29c   :  { %v6015_v48 = vpack.i.bf16 %v10841_v32, %v10852_v15  ;;  %v8671_v28 = vadd.f32 %v2127_v45, %v8625_v22  ;;  %v8692_v53 = vadd.f32 %v2204_v51, %v8593_v56 }
 0x29d   :  { %5986 = vrot.lane.b32.xlu1 %v5985_v18, %s6301_s0  ;;  %v10826_v31 = vmax.f32 %v8639_v50, 0.0  ;;  %v10848_v37 = vmax.f32 %v8680_v43, 0.0 }
 0x29e   :  { %6016 = vrot.lane.b32.xlu0 %v6015_v48, %s6301_s0  ;;  %v2208_v12 = vpop.f32.mrb[12].mxu0  ;;  %11297 = vst [vmem:[#allocation41_spill] sm:$0xff] %v8671_v28  ;;  %v10824_v57 = vmax.f32 %v8671_v28, 0.0 }
 0x29f   :  { %v2210_v20 = vpop.f32.mrb[13].mxu0  ;;  %v6000_v41 = vpack.i.bf16 %v10826_v31, %v10827_v25  ;;  %v8706_v45 = vadd.f32 %v2208_v12, %v8578_v0  ;;  %v10838_v12 = vmax.f32 %v8692_v53, 0.0 }
 0x2a0   :  { %v2285_v24 = vpop.f32.mrb[8].mxu1  ;;  %v8709_v51 = vadd.f32 %v2210_v20, %v8578_v0 }
 0x2a1   :  { %5991 = vrot.lane.b32.xlu1 %v5990_v54, %s6301_s0  ;;  %v2287_v10 = vpop.f32.mrb[9].mxu1  ;;  %v8674_v17 = vadd.f32 %v2285_v24, %v8559_v59  ;;  %v10845_v47 = vmax.f32 %v8706_v45, 0.0 }
 0x2a2   :  { %v2214_v11 = vpop.f32.mrb[14].mxu0  ;;  %v8699_v7 = vadd.f32 %v2287_v10, %v8559_v59 }
 0x2a3   :  { %v2216_v19 = vpop.f32.mrb[15].mxu0  ;;  %v10832_v44 = vmax.f32 %v8674_v17, 0.0 }
 0x2a4   :  { %v2291_v39 = vpop.f32.mrb[10].mxu1  ;;  %11300 = vst [vmem:[#allocation26_spill] sm:$0xff] %v8699_v7  ;;  %v8725_v20 = vadd.f32 %v2216_v19, %v8625_v22 }
 0x2a5   :  { %6001 = vrot.lane.b32.xlu1 %v6000_v41, %s6301_s0  ;;  %v8684_v5 = vadd.f32 %v2291_v39, %v8593_v56  ;;  %v2293_v38 = vpop.f32.mrb[11].mxu1  ;;  %v6010_v41 = vpack.i.bf16 %v10824_v57, %v10825_v6  ;;  %v8722_v39 = vadd.f32 %v2214_v11, %v8625_v22  ;;  %v10837_v57 = vmax.f32 %v8709_v51, 0.0 }
 0x2a6   :  { %v8695_v35 = vadd.f32 %v2293_v38, %v8593_v56  ;;  %v10836_v25 = vmax.f32 %v8725_v20, 0.0 }
 0x2a7   :  { %v10829_v2 = vmax.f32 %v8684_v5, 0.0 }
 0x2a8   :  { %11299 = vst [vmem:[#allocation42_spill] sm:$0xff] %v8695_v35  ;;  %v2297_v18 = vpop.f32.mrb[12].mxu1  ;;  %v10831_v54 = vmax.f32 %v8695_v35, 0.0 }
 0x2a9   :  { %6006 = vrot.lane.b32.xlu1 %v6005_v4, %s6301_s0  ;;  %v6020_v48 = vpack.i.bf16 %v10829_v2, %v10832_v44  ;;  %v2299_v24 = vpop.f32.mrb[13].mxu1  ;;  %v10830_v4 = vmax.f32 %v8699_v7, 0.0  ;;  %v8746_v2 = vadd.f32 %v2297_v18, %v8578_v0 }
 0x2ab   :  { %v2374_v10 = vpop.f32.mrb[16].mxu0  ;;  %6021 = vrot.lane.b32.xlu0 %v6020_v48, %s6301_s0  ;;  %v6030_v11 = vpack.i.bf16 %v10831_v54, %v10830_v4  ;;  %v6025_v48 = vpack.i.bf16 %v10838_v12, %v10848_v37 }
 0x2ac   :  { %v2376_v38 = vpop.f32.mrb[17].mxu0  ;;  %v2303_v58 = vpop.f32.mrb[14].mxu1  ;;  %v8768_v42 = vadd.f32 %v2374_v10, %v8559_v59 }
 0x2ad   :  { %6011 = vrot.lane.b32.xlu1 %v6010_v41, %s6301_s0  ;;  %v8737_v19 = vadd.f32 %v2303_v58, %v8625_v22  ;;  %v2305_v6 = vpop.f32.mrb[15].mxu1  ;;  %v10842_v41 = vmax.f32 %v8722_v39, 0.0  ;;  %v6035_v58 = vpack.i.bf16 %v10837_v57, %v10845_v47 }
 0x2ae   :  { %v8756_v54 = vadd.f32 %v2305_v6, %v8625_v22  ;;  %11303 = vst [vmem:[#allocation29_spill] sm:$0xff] %v8768_v42  ;;  %v10847_v10 = vmax.f32 %v8768_v42, 0.0 }
 0x2af   :  { %v2380_v31 = vpop.f32.mrb[18].mxu0  ;;  %6031 = vrot.lane.b32.xlu0 %v6030_v11, %s6301_s0  ;;  %v10839_v4 = vmax.f32 %v8737_v19, 0.0  ;;  %v6045_v18 = vpack.i.bf16 %v10836_v25, %v10842_v41  ;;  %v10840_v11 = vmax.f32 %v8746_v2, 0.0  ;;  %v8777_v25 = vadd.f32 %v2376_v38, %v8559_v59 }
 0x2b0   :  { %v2382_v61 = vpop.f32.mrb[19].mxu0  ;;  %11301 = vst [vmem:[#allocation28_spill] sm:$0xff] %v8756_v54  ;;  %v10844_v3 = vmax.f32 %v8756_v54, 0.0 }
 0x2b1   :  { %6026 = vrot.lane.b32.xlu1 %v6025_v48, %s6301_s0  ;;  %v8764_v48 = vadd.f32 %v2299_v24, %v8578_v0  ;;  %v6040_v6 = vpack.i.bf16 %v10839_v4, %v10840_v11  ;;  %11304 = vst [vmem:[#allocation31_spill] sm:$0xff] %v8777_v25 }
 0x2b3   :  { %v2386_v44 = vpop.f32.mrb[20].mxu0  ;;  %11302 = vst [vmem:[#allocation27_spill] sm:$0xff] %v8764_v48  ;;  %6036 = vrot.lane.b32.xlu0 %v6035_v58, %s6301_s0  ;;  %v10843_v12 = vmax.f32 %v8764_v48, 0.0 }
 0x2b4   :  { %v2388_v36 = vpop.f32.mrb[21].mxu0  ;;  %v8788_v4 = vadd.f32 %v2386_v44, %v8578_v0 }
 0x2b5   :  { %6046 = vrot.lane.b32.xlu1 %v6045_v18, %s6301_s0  ;;  %v6050_v58 = vpack.i.bf16 %v10844_v3, %v10843_v12  ;;  %v10846_v18 = vmax.f32 %v8777_v25, 0.0  ;;  %v8791_v38 = vadd.f32 %v2388_v36, %v8578_v0  ;;  %v8805_v36 = vadd.f32 %v2380_v31, %v8593_v56 }
 0x2b6   :  { %11305 = vst [vmem:[#allocation30_spill] sm:$0xff] %v8788_v4  ;;  %v10851_v41 = vmax.f32 %v8788_v4, 0.0 }
 0x2b7   :  { %v2392_v57 = vpop.f32.mrb[22].mxu0  ;;  %6041 = vrot.lane.b32.xlu0 %v6040_v6, %s6301_s0  ;;  %11306 = vst [vmem:[#allocation33_spill] sm:$0xff] %v8791_v38  ;;  %v6055_v6 = vpack.i.bf16 %v10846_v18, %v10847_v10  ;;  %v10850_v12 = vmax.f32 %v8791_v38, 0.0  ;;  %11308 = vst [vmem:[#allocation34_spill] sm:$0xff] %v8805_v36  ;;  %v10862_v31 = vmax.f32 %v8805_v36, 0.0 }
 0x2b8   :  { %v2394_v24 = vpop.f32.mrb[23].mxu0 }
 0x2b9   :  { %v6075_v10 = vpack.i.bf16 %v10850_v12, %v10851_v41 }
 0x2bb   :  { %6051 = vrot.lane.b32.xlu0 %v6050_v58, %s6301_s0  ;;  %v8808_v58 = vadd.f32 %v2382_v61, %v8593_v56 }
 0x2bd   :  { %v2463_v11 = vpop.f32.mrb[16].mxu1  ;;  %11309 = vst [vmem:[#allocation35_spill] sm:$0xff] %v8808_v58  ;;  %v10861_v61 = vmax.f32 %v8808_v58, 0.0 }
 0x2be   :  { %v2465_v32 = vpop.f32.mrb[17].mxu1  ;;  %v8801_v3 = vadd.f32 %v2463_v11, %v8559_v59 }
 0x2bf   :  { %6056 = vrot.lane.b32.xlu0 %v6055_v6, %s6301_s0 }
 0x2c0   :  { %11307 = vst [vmem:[#allocation32_spill] sm:$0xff] %v8801_v3  ;;  %v10856_v11 = vmax.f32 %v8801_v3, 0.0 }
 0x2c1   :  { %v2469_v44 = vpop.f32.mrb[18].mxu1 }
 0x2c2   :  { %v8811_v47 = vadd.f32 %v2469_v44, %v8593_v56  ;;  %v2471_v18 = vpop.f32.mrb[19].mxu1 }
 0x2c3   :  { %6076 = vrot.lane.b32.xlu0 %v6075_v10, %s6301_s0  ;;  %v8827_v44 = vadd.f32 %v2471_v18, %v8593_v56  ;;  %v8833_v10 = vadd.f32 %v2465_v32, %v8559_v59  ;;  %v6065_v18 = vpack.i.bf16 %v10861_v61, %v10862_v31  ;;  %v8859_v31 = vadd.f32 %v2392_v57, %v8625_v22 }
 0x2c4   :  { %11310 = vst [vmem:[#allocation36_spill] sm:$0xff] %v8811_v47  ;;  %v10855_v37 = vmax.f32 %v8811_v47, 0.0 }
 0x2c5   :  { %11311 = vst [vmem:[#allocation38_spill] sm:$0xff] %v8827_v44  ;;  %v2475_v1 = vpop.f32.mrb[20].mxu1  ;;  %11313 = vst [vmem:[#allocation14_spill] sm:$0xff] %v8833_v10  ;;  %v10873_v57 = vmax.f32 %v8859_v31, 0.0 }
 0x2c6   :  { %v6060_v6 = vpack.i.bf16 %v10855_v37, %v10856_v11  ;;  %v2477_v15 = vpop.f32.mrb[21].mxu1  ;;  %v8851_v37 = vadd.f32 %v2475_v1, %v8578_v0  ;;  %11318 = vst [vmem:[#allocation15_spill] sm:$0xff] %v8859_v31 }
 0x2c7   :  { %v2552_v12 = vpop.f32.mrb[24].mxu0 }
 0x2c8   :  { %v8830_v41 = vadd.f32 %v2552_v12, %v8559_v59  ;;  %v2554_v34 = vpop.f32.mrb[25].mxu0  ;;  %6061 = vrot.lane.b32.xlu1 %v6060_v6, %s6301_s0  ;;  %v10867_v12 = vmax.f32 %v8827_v44, 0.0  ;;  %v10866_v6 = vmax.f32 %v8833_v10, 0.0  ;;  %11316 = vst [vmem:[#allocation9_spill] sm:$0xff] %v8851_v37 }
 0x2c9   :  { %v8836_v55 = vadd.f32 %v2554_v34, %v8559_v59 }
 0x2ca   :  { %11312 = vst [vmem:[#allocation37_spill] sm:$0xff] %v8830_v41  ;;  %v2481_v8 = vpop.f32.mrb[22].mxu1  ;;  %v11317_v38 = vmax.f32 %v8830_v41, 0.0  ;;  %v6070_v58 = vpack.i.bf16 %v10867_v12, %v10866_v6 }
 0x2cb   :  { %11314 = vst [vmem:[#allocation12_spill] sm:$0xff] %v8836_v55  ;;  %v10868_v11 = vmax.f32 %v8836_v55, 0.0  ;;  %v2558_v21 = vpop.f32.mrb[26].mxu0  ;;  %v8847_v32 = vadd.f32 %v2481_v8, %v8625_v22  ;;  %v2483_v34 = vpop.f32.mrb[23].mxu1  ;;  %v8862_v8 = vadd.f32 %v2394_v24, %v8625_v22 }
 0x2cc   :  { %v2560_v16 = vpop.f32.mrb[27].mxu0  ;;  %6066 = vrot.lane.b32.xlu1 %v6065_v18, %s6301_s0  ;;  %v8879_v6 = vadd.f32 %v2483_v34, %v8625_v22 }
 0x2cd   :  { %11315 = vst [vmem:[#allocation8_spill] sm:$0xff] %v8847_v32  ;;  %v6095_v61 = vpack.i.bf16 %v10868_v11, %v11317_v38  ;;  %11319 = vst [vmem:[#allocation11_spill] sm:$0xff] %v8862_v8  ;;  %v10870_v1 = vmax.f32 %v8847_v32, 0.0  ;;  %v10871_v38 = vmax.f32 %v8851_v37, 0.0  ;;  %v10872_v24 = vmax.f32 %v8862_v8, 0.0 }
 0x2ce   :  { %11320 = vst [vmem:[#allocation18_spill] sm:$0xff] %v8879_v6  ;;  %v8894_v34 = vadd.f32 %v2560_v16, %v8593_v56  ;;  %v4273_v16 = vld [vmem:[%s10690_s5 + $0x8] sm:$0xff] }
 0x2cf   :  { %v2564_v25 = vpop.f32.mrb[28].mxu0  ;;  %6096 = vrot.lane.b32.xlu0 %v6095_v61, %s6301_s0  ;;  %v6080_v18 = vpack.i.bf16 %v10870_v1, %v10871_v38  ;;  %v8882_v61 = vadd.f32 %v2477_v15, %v8578_v0  ;;  %v6085_v10 = vpack.i.bf16 %v10872_v24, %v10873_v57  ;;  %v10874_v1 = vmax.f32 %v8879_v6, 0.0  ;;  %4448 = vmatprep.mubr.f32.mxu0 %v4273_v16 }
 0x2d0   :  { %v2566_v55 = vpop.f32.mrb[29].mxu0  ;;  %6071 = vrot.lane.b32.xlu1 %v6070_v58, %s6301_s0  ;;  %v8886_v58 = vadd.f32 %v2558_v21, %v8593_v56  ;;  %11323 = vst [vmem:[#allocation17_spill] sm:$0xff] %v8894_v34 }
 0x2d1   :  { %11321 = vst [vmem:[#allocation3_spill] sm:$0xff] %v8882_v61  ;;  %v10875_v38 = vmax.f32 %v8882_v61, 0.0 }
 0x2d2   :  { %11322 = vst [vmem:[#allocation16_spill] sm:$0xff] %v8886_v58  ;;  %v10878_v15 = vmax.f32 %v8886_v58, 0.0 }
 0x2d3   :  { %v2570_v12 = vpop.f32.mrb[30].mxu0  ;;  %v6090_v21 = vpack.i.bf16 %v10874_v1, %v10875_v38 }
 0x2d4   :  { %v2572_v11 = vpop.f32.mrb[31].mxu0  ;;  %6081 = vrot.lane.b32.xlu1 %v6080_v18, %s6301_s0  ;;  %v10877_v18 = vmax.f32 %v8894_v34, 0.0  ;;  %v8905_v24 = vadd.f32 %v2570_v12, %v8625_v22 }
 0x2d5   :  { %v8908_v57 = vadd.f32 %v2572_v11, %v8625_v22 }
 0x2d6   :  { %11324 = vst [vmem:[#allocation10_spill] sm:$0xff] %v8905_v24  ;;  %v10882_v1 = vmax.f32 %v8905_v24, 0.0 }
 0x2d7   :  { %11325 = vst [vmem:[#allocation13_spill] sm:$0xff] %v8908_v57  ;;  %v10881_v12 = vmax.f32 %v8908_v57, 0.0 }
 0x2d8   :  { %6086 = vrot.lane.b32.xlu1 %v6085_v10, %s6301_s0  ;;  %v6105_v10 = vpack.i.bf16 %v10877_v18, %v10878_v15 }
 0x2d9   :  { %v6125_v11 = vpack.i.bf16 %v10881_v12, %v10882_v1  ;;  %v8941_v1 = vadd.f32 %v2564_v25, %v8578_v0 }
 0x2db   :  { %11330 = vst [vmem:[#allocation5_spill] sm:$0xff] %v8941_v1  ;;  %v10897_v8 = vmax.f32 %v8941_v1, 0.0 }
 0x2dc   :  { %6091 = vrot.lane.b32.xlu1 %v6090_v21, %s6301_s0 }
 0x2e0   :  { %6106 = vrot.lane.b32.xlu1 %v6105_v10, %s6301_s0 }
 0x2e4   :  { %6126 = vrot.lane.b32.xlu1 %v6125_v11, %s6301_s0 }
 0x2f1   :  { %v2641_v21 = vpop.f32.mrb[24].mxu1 }
 0x2f2   :  { %v2643_v16 = vpop.f32.mrb[25].mxu1  ;;  %v8927_v38 = vadd.f32 %v2641_v21, %v8559_v59  ;;  %v8944_v21 = vadd.f32 %v2566_v55, %v8578_v0 }
 0x2f3   :  { %v8937_v44 = vadd.f32 %v2643_v16, %v8559_v59 }
 0x2f4   :  { %11326 = vst [vmem:[#allocation4_spill] sm:$0xff] %v8927_v38  ;;  %v10888_v10 = vmax.f32 %v8927_v38, 0.0  ;;  %11331 = vst [vmem:[#allocation21_spill] sm:$0xff] %v8944_v21  ;;  %v10896_v25 = vmax.f32 %v8944_v21, 0.0 }
 0x2f5   :  { %v2647_v6 = vpop.f32.mrb[26].mxu1  ;;  %11329 = vst [vmem:[#allocation20_spill] sm:$0xff] %v8937_v44  ;;  %v10893_v16 = vmax.f32 %v8937_v44, 0.0 }
 0x2f6   :  { %v8930_v18 = vadd.f32 %v2647_v6, %v8593_v56  ;;  %v2649_v15 = vpop.f32.mrb[27].mxu1 }
 0x2f7   :  { %v8933_v61 = vadd.f32 %v2649_v15, %v8593_v56 }
 0x2f8   :  { %11327 = vst [vmem:[#allocation19_spill] sm:$0xff] %v8930_v18  ;;  %v10887_v11 = vmax.f32 %v8930_v18, 0.0 }
 0x2f9   :  { %11328 = vst [vmem:[#allocation2_spill] sm:$0xff] %v8933_v61  ;;  %v2653_v12 = vpop.f32.mrb[28].mxu1  ;;  %v10892_v15 = vmax.f32 %v8933_v61, 0.0 }
 0x2fa   :  { %v6100_v6 = vpack.i.bf16 %v10887_v11, %v10888_v10  ;;  %v2655_v32 = vpop.f32.mrb[29].mxu1  ;;  %v8963_v57 = vadd.f32 %v2653_v12, %v8578_v0 }
 0x2fb   :  { %v6110_v55 = vpack.i.bf16 %v10892_v15, %v10893_v16  ;;  %v8976_v34 = vadd.f32 %v2655_v32, %v8578_v0 }
 0x2fc   :  { %6101 = vrot.lane.b32.xlu0 %v6100_v6, %s6301_s0  ;;  %11333 = vst [vmem:[#allocation7_spill] sm:$0xff] %v8963_v57  ;;  %v6115_v6 = vpack.i.bf16 %v10896_v25, %v10897_v8  ;;  %v10901_v61 = vmax.f32 %v8963_v57, 0.0 }
 0x2fd   :  { %v2659_v37 = vpop.f32.mrb[30].mxu1  ;;  %11335 = vst [vmem:[#allocation22_spill] sm:$0xff] %v8976_v34  ;;  %v10906_v21 = vmax.f32 %v8976_v34, 0.0 }
 0x2fe   :  { %v8960_v18 = vadd.f32 %v2659_v37, %v8625_v22  ;;  %v2730_v11 = vpop.f32.mrb[32].mxu0  ;;  %v2661_v10 = vpop.f32.mrb[31].mxu1 }
 0x2ff   :  { %v2732_v38 = vpop.f32.mrb[33].mxu0  ;;  %v8972_v15 = vadd.f32 %v2661_v10, %v8625_v22  ;;  %v8989_v24 = vadd.f32 %v2730_v11, %v8559_v59 }
 0x300   :  { %11332 = vst [vmem:[#allocation23_spill] sm:$0xff] %v8960_v18  ;;  %6111 = vrot.lane.b32.xlu0 %v6110_v55, %s6301_s0  ;;  %v10900_v44 = vmax.f32 %v8960_v18, 0.0  ;;  %v9004_v1 = vadd.f32 %v2732_v38, %v8559_v59 }
 0x301   :  { %11334 = vst [vmem:[#allocation6_spill] sm:$0xff] %v8972_v15  ;;  %v10905_v55 = vmax.f32 %v8972_v15, 0.0  ;;  %11337 = vst [vmem:[#allocation43_spill] sm:$0xff] %v8989_v24  ;;  %v10912_v11 = vmax.f32 %v8989_v24, 0.0 }
 0x302   :  { %v2736_v37 = vpop.f32.mrb[34].mxu0  ;;  %v6120_v12 = vpack.i.bf16 %v10900_v44, %v10901_v61  ;;  %11339 = vst [vmem:[#allocation45_spill] sm:$0xff] %v9004_v1  ;;  %v10917_v38 = vmax.f32 %v9004_v1, 0.0 }
 0x303   :  { %v2738_v16 = vpop.f32.mrb[35].mxu0  ;;  %v8985_v25 = vadd.f32 %v2736_v37, %v8593_v56  ;;  %v6130_v32 = vpack.i.bf16 %v10905_v55, %v10906_v21 }
 0x304   :  { %6116 = vrot.lane.b32.xlu0 %v6115_v6, %s6301_s0  ;;  %v8998_v44 = vadd.f32 %v2738_v16, %v8593_v56 }
 0x305   :  { %11336 = vst [vmem:[#allocation25_spill] sm:$0xff] %v8985_v25  ;;  %v10911_v6 = vmax.f32 %v8985_v25, 0.0 }
 0x306   :  { %v2742_v10 = vpop.f32.mrb[36].mxu0  ;;  %11338 = vst [vmem:[#allocation44_spill] sm:$0xff] %v8998_v44  ;;  %v10918_v55 = vmax.f32 %v8998_v44, 0.0 }
 0x307   :  { %v2744_v8 = vpop.f32.mrb[37].mxu0  ;;  %v6135_v16 = vpack.i.bf16 %v10911_v6, %v10912_v11  ;;  %v9029_v6 = vpop.permute.xlu0 %5976  ;;  %v9036_v11 = vadd.f32 %v2742_v10, %v8578_v0 }
 0x308   :  { %6121 = vrot.lane.b32.xlu0 %v6120_v12, %s6301_s0  ;;  %v5979_v3 = vunpack.i.h.bf16 %v9029_v6 }
 0x309   :  { %11345 = vst [vmem:[#allocation51_spill] sm:$0xff] %v9036_v11  ;;  %v10930_v41 = vmax.f32 %v9036_v11, 0.0  ;;  %v5978_v11 = vunpack.i.l.bf16 %v9029_v6 }
 0x30a   :  { %v2748_v61 = vpop.f32.mrb[38].mxu0 }
 0x30b   :  { %v9000_v37 = vpop.permute.xlu1 %5981  ;;  %v2750_v57 = vpop.f32.mrb[39].mxu0  ;;  %v9021_v31 = vadd.f32 %v2748_v61, %v8625_v22 }
 0x30c   :  { %v2819_v18 = vpop.f32.mrb[32].mxu1  ;;  %6131 = vrot.lane.b32.xlu0 %v6130_v32, %s6301_s0  ;;  %v9053_v44 = vpop.permute.xlu0 %5996 }
 0x30d   :  { %v9006_v12 = vpop.f32.mrb[33].mxu1  ;;  %v9015_v21 = vadd.f32 %v2819_v18, %v8559_v59  ;;  %11342 = vst [vmem:[#allocation48_spill] sm:$0xff] %v9021_v31  ;;  %v6145_v18 = vpack.i.bf16 %v10918_v55, %v10917_v38  ;;  %v5998_v54 = vunpack.i.l.bf16 %v9053_v44 }
 0x30e   :  { %11340 = vst [vmem:[#allocation46_spill] sm:$0xff] %v9006_v12 }
 0x30f   :  { %11341 = vst [vmem:[#allocation47_spill] sm:$0xff] %v9015_v21  ;;  %v9017_v15 = vpop.permute.xlu1 %5986  ;;  %v10923_v61 = vmax.f32 %v9015_v21, 0.0  ;;  %v11352_v21 = vmax.f32 %v9021_v31, 0.0 }
 0x310   :  { %v2825_v34 = vpop.f32.mrb[34].mxu1  ;;  %6136 = vrot.lane.b32.xlu0 %v6135_v16, %s6301_s0 }
 0x311   :  { %v9024_v32 = vadd.f32 %v2825_v34, %v8593_v56  ;;  %v9026_v24 = vpop.f32.mrb[35].mxu1 }
 0x312   :  { %11344 = vst [vmem:[#allocation50_spill] sm:$0xff] %v9026_v24 }
 0x313   :  { %11343 = vst [vmem:[#allocation49_spill] sm:$0xff] %v9024_v32  ;;  %v10922_v25 = vmax.f32 %v9024_v32, 0.0  ;;  %v9040_v34 = vpop.permute.xlu1 %5991 }
 0x314   :  { %11346 = vst [vmem:[#allocation52_spill] sm:$0xff] %v9040_v34  ;;  %v2831_v4 = vpop.f32.mrb[36].mxu1  ;;  %v2908_v58 = vpop.f32.mrb[40].mxu0  ;;  %6146 = vrot.lane.b32.xlu0 %v6145_v18, %s6301_s0 }
 0x315   :  { %v6140_v1 = vpack.i.bf16 %v10922_v25, %v10923_v61  ;;  %v9048_v38 = vadd.f32 %v2908_v58, %v8559_v59  ;;  %v9050_v10 = vpop.f32.mrb[37].mxu1  ;;  %v2910_v55 = vpop.f32.mrb[41].mxu0  ;;  %v9057_v42 = vadd.f32 %v2831_v4, %v8578_v0  ;;  %v9063_v25 = vadd.f32 %v2750_v57, %v8625_v22 }
 0x316   :  { %11348 = vst [vmem:[#allocation54_spill] sm:$0xff] %v9050_v10  ;;  %v9067_v61 = vadd.f32 %v2910_v55, %v8559_v59  ;;  %v6150_v4 = vpack.i.bf16 %v11352_v21, %v10930_v41  ;;  %v9079_v57 = vadd.f32 %v2744_v8, %v8578_v0  ;;  %v9081_v58 = vpop.permute.xlu0 %6016 }
 0x317   :  { %11347 = vst [vmem:[#allocation53_spill] sm:$0xff] %v9048_v38  ;;  %11349 = vst [vmem:[#allocation55_spill] sm:$0xff] %v9057_v42  ;;  %6141 = vrot.lane.b32.xlu1 %v6140_v1, %s6301_s0  ;;  %v9060_v16 = vpop.permute.xlu1 %6001  ;;  %v10937_v31 = vmax.f32 %v9057_v42, 0.0  ;;  %v11357_v8 = vmax.f32 %v9048_v38, 0.0 }
 0x318   :  { %11350 = vst [vmem:[#allocation56_spill] sm:$0xff] %v9063_v25  ;;  %11351 = vst [vmem:[#allocation57_spill] sm:$0xff] %v9067_v61  ;;  %v2837_v18 = vpop.f32.mrb[38].mxu1  ;;  %v2914_v32 = vpop.f32.mrb[42].mxu0  ;;  %v10935_v55 = vmax.f32 %v9067_v61, 0.0  ;;  %v11360_v42 = vmax.f32 %v9079_v57, 0.0 }
 0x319   :  { %v9074_v10 = vadd.f32 %v2837_v18, %v8625_v22  ;;  %v9076_v1 = vpop.f32.mrb[39].mxu1  ;;  %v2916_v47 = vpop.f32.mrb[43].mxu0  ;;  %11355 = vst [vmem:[#allocation60_spill] sm:$0xff] %v9079_v57  ;;  %11356 = vst [vmem:[#allocation61_spill] sm:$0xff] %v9081_v58  ;;  %v9101_v36 = vadd.f32 %v2914_v32, %v8593_v56 }
 0x31a   :  { %11354 = vst [vmem:[#allocation59_spill] sm:$0xff] %v9076_v1  ;;  %v6165_v1 = vpack.i.bf16 %v10935_v55, %v11357_v8  ;;  %v9104_v48 = vadd.f32 %v2916_v47, %v8593_v56  ;;  %v3888_v8 = vsel %vm1778_vm2, %v5978_v11, %v5979_v3  ;;  %v5989_v55 = vunpack.i.h.bf16 %v9017_v15 }
 0x31b   :  { %11353 = vst [vmem:[#allocation58_spill] sm:$0xff] %v9074_v10  ;;  %v10936_v21 = vmax.f32 %v9074_v10, 0.0  ;;  %6151 = vrot.lane.b32.xlu1 %v6150_v4, %s6301_s0  ;;  %v9089_v18 = vpop.permute.xlu1 %6006  ;;  %11358 = vst [vmem:[#allocation62_spill] sm:$0xff] %v9101_v36  ;;  %v5983_v10 = vunpack.i.l.bf16 %v9000_v37 }
 0x31c   :  { %11359 = vst [vmem:[#allocation63_spill] sm:$0xff] %v9104_v48  ;;  %6166 = vrot.lane.b32.xlu0 %v6165_v1, %s6301_s0  ;;  %v11361_v1 = vmax.f32 %v9063_v25, 0.0 }
 0x31d   :  { %v6155_v6 = vpack.i.bf16 %v10936_v21, %v10937_v31  ;;  %v9107_v41 = vpop.permute.xlu0 %6021  ;;  %v5988_v21 = vunpack.i.l.bf16 %v9017_v15  ;;  %v4275_v15 = vld [vmem:[%s10690_s5 + $0x18] sm:$0xff]  ;;  %v3889_v25 = vsel %vm1778_vm2, %v5979_v3, %v5983_v10  ;;  %v11373_v3 = vmax.f32 %v8600_v14, 0.0 }
 0x31e   :  { %v2920_v4 = vpop.f32.mrb[44].mxu0  ;;  %v6160_v11 = vpack.i.bf16 %v11361_v1, %v11360_v42  ;;  %4553 = vmatprep.mubr.f32.mxu1 %v4275_v15  ;;  %v5984_v42 = vunpack.i.h.bf16 %v9000_v37  ;;  %v11367_v37 = vunpack.i.h.bf16 %v9053_v44 }
 0x31f   :  { %v2922_v38 = vpop.f32.mrb[45].mxu0  ;;  %6156 = vrot.lane.b32.xlu1 %v6155_v6, %s6301_s0  ;;  %v9114_v32 = vpop.permute.xlu1 %6011  ;;  %v9131_v47 = vadd.f32 %v2920_v4, %v8578_v0  ;;  %v3919_v6 = vsel %vm1778_vm2, %v5988_v21, %v5989_v55 }
 0x320   :  { %v2997_v31 = vpop.f32.mrb[40].mxu1  ;;  %v9134_v52 = vadd.f32 %v2922_v38, %v8578_v0  ;;  %v11366_v38 = vmax.f32 %v8565_v46, 0.0  ;;  %v3950_v1 = vsel %vm1778_vm2, %v5998_v54, %v11367_v37  ;;  %v3920_v12 = vsel %vm1778_vm2, %v5989_v55, %v5984_v42 }
 0x321   :  { %v9123_v61 = vpop.f32.mrb[41].mxu1  ;;  %11363 = vst [vmem:[#allocation65_spill] sm:$0xff] %v9131_v47  ;;  %v9143_v28 = vadd.f32 %v2997_v31, %v8559_v59  ;;  %v11370_v31 = vmax.f32 %v9101_v36, 0.0  ;;  %v9170_v54 = vmax.f32 %v11373_v3, %v3919_v6  ;;  %v11374_v55 = vunpack.i.h.bf16 %v9081_v58 }
 0x322   :  { %11362 = vst [vmem:[#allocation64_spill] sm:$0xff] %v9123_v61  ;;  %11364 = vst [vmem:[#allocation66_spill] sm:$0xff] %v9134_v52  ;;  %v2926_v57 = vpop.f32.mrb[46].mxu0  ;;  %v9139_v61 = vpop.permute.xlu0 %6031  ;;  %v9148_v15 = vmax.f32 %v11366_v38, %v3888_v8  ;;  %v11375_v37 = vunpack.i.l.bf16 %v9081_v58  ;;  %v11377_v46 = vmax.f32 %v8582_v13, 0.0  ;;  %v11380_v6 = vmax.f32 %v8603_v33, 0.0 }
 0x323   :  { %v2928_v24 = vpop.f32.mrb[47].mxu0  ;;  %11365 = vst [vmem:[#allocation67_spill] sm:$0xff] %v9143_v28  ;;  %6161 = vrot.lane.b32.xlu1 %v6160_v11, %s6301_s0  ;;  %v9157_v21 = vpop.permute.xlu1 %6026  ;;  %v11371_v11 = vmax.f32 %v9104_v48, 0.0  ;;  %v11382_v13 = vmax.f32 %v9134_v52, 0.0  ;;  %v11385_v8 = vmax.f32 %v8620_v63, 0.0 }
 0x324   :  { %v3003_v4 = vpop.f32.mrb[42].mxu1  ;;  %11369 = vst [vmem:[#allocation69_spill] sm:$0xff] %v9157_v21  ;;  %v3892_v36 = vsel %vm1778_vm2, %v11375_v37, %v11374_v55  ;;  %v9188_v55 = vmax.f32 %v11377_v46, %v3950_v1  ;;  %v11378_v37 = vmax.f32 %v8568_v49, 0.0  ;;  %v6029_v48 = vunpack.i.h.bf16 %v9157_v21 }
 0x325   :  { %v9155_v23 = vpop.f32.mrb[43].mxu1  ;;  %v6175_v7 = vpack.i.bf16 %v11371_v11, %v11370_v31  ;;  %v9166_v38 = vadd.f32 %v3003_v4, %v8593_v56  ;;  %v6008_v4 = vunpack.i.l.bf16 %v9089_v18  ;;  %v9200_v27 = vmax.f32 %v11380_v6, %v3920_v12 }
 0x326   :  { %11368 = vst [vmem:[#allocation68_spill] sm:$0xff] %v9155_v23  ;;  %v9179_v11 = vpop.permute.xlu0 %6036  ;;  %v9192_v31 = vmax.f32 %v11378_v37, %v3889_v25  ;;  %v11383_v49 = vmax.f32 %v9143_v28, 0.0  ;;  %v4148_v35 = vmax.f32 %v11385_v8, %v3892_v36  ;;  %v9218_v12 = vadd.f32 %v2926_v57, %v8625_v22 }
 0x327   :  { %11372 = vst [vmem:[#allocation70_spill] sm:$0xff] %v9166_v38  ;;  %11376 = vst [vmem:[#allocation71_spill] sm:$0xff] %v9179_v11  ;;  %6176 = vrot.lane.b32.xlu1 %v6175_v7, %s6301_s0  ;;  %v11381_v7 = vmax.f32 %v9131_v47, 0.0  ;;  %v11384_v25 = vmax.f32 %v9166_v38, 0.0  ;;  %v9221_v6 = vadd.f32 %v2928_v24, %v8625_v22  ;;  %v11389_v36 = vunpack.i.h.bf16 %v9089_v18 }
 0x328   :  { %v3009_v3 = vpop.f32.mrb[44].mxu1  ;;  %v11394_v38 = vmax.f32 %v8652_v30, 0.0 }
 0x329   :  { %v9196_v23 = vpop.f32.mrb[45].mxu1  ;;  %v3086_v14 = vpop.f32.mrb[48].mxu0  ;;  %v6180_v1 = vpack.i.bf16 %v11382_v13, %v11381_v7  ;;  %v6170_v46 = vpack.i.bf16 %v11384_v25, %v11383_v49  ;;  %v5493_v13 = vpack.c.bf16 %v9170_v54, %v9148_v15  ;;  %v11388_v49 = vunpack.i.l.bf16 %v9040_v34 }
 0x32a   :  { %11379 = vst [vmem:[#allocation72_spill] sm:$0xff] %v9196_v23  ;;  %v3088_v37 = vpop.f32.mrb[49].mxu0  ;;  %v11386_v23 = vunpack.i.h.bf16 %v9040_v34  ;;  %v9223_v7 = vpop.permute.xlu1 %6046  ;;  %v11391_v15 = vunpack.i.l.bf16 %v9157_v21  ;;  %v6039_v54 = vunpack.i.h.bf16 %v9179_v11 }
 0x32b   :  { %11387 = vst [vmem:[#allocation73_spill] sm:$0xff] %v9223_v7  ;;  %v9230_v63 = vsel %vm1778_vm2, %v5983_v10, %v11388_v49  ;;  %6171 = vrot.lane.b32.xlu0 %v6170_v46, %s6301_s0  ;;  %v9240_v24 = vpop.permute.xlu0 %6041  ;;  %6181 = vrot.lane.b32.xlu1 %v6180_v1, %s6301_s0  ;;  %v6049_v46 = vunpack.i.h.bf16 %v9223_v7  ;;  %v9256_v1 = vadd.f32 %v3086_v14, %v8559_v59  ;;  %v11397_v47 = vunpack.i.l.bf16 %v9223_v7 }
 0x32c   :  { %v9215_v33 = vsel %vm1778_vm2, %v5984_v42, %v11386_v23  ;;  %v3981_v23 = vsel %vm1778_vm2, %v6008_v4, %v11389_v36  ;;  %v9237_v42 = vadd.f32 %v3009_v3, %v8578_v0  ;;  %v3015_v8 = vpop.f32.mrb[46].mxu1  ;;  %v3923_v10 = vsel %vm1778_vm2, %v11391_v15, %v6029_v48 }
 0x32d   :  { %v9249_v25 = vadd.f32 %v3015_v8, %v8625_v22  ;;  %v9251_v3 = vpop.f32.mrb[47].mxu1  ;;  %v3092_v49 = vpop.f32.mrb[50].mxu0  ;;  %v9259_v57 = vadd.f32 %v3088_v37, %v8559_v59  ;;  %v4240_v4 = vmax.f32 %v11394_v38, %v3981_v23  ;;  %v6023_v8 = vunpack.i.l.bf16 %v9107_v41 }
 0x32e   :  { %11390 = vst [vmem:[#allocation74_spill] sm:$0xff] %v9237_v42  ;;  %11393 = vst [vmem:[#allocation76_spill] sm:$0xff] %v9251_v3  ;;  %v3094_v15 = vpop.f32.mrb[51].mxu0  ;;  %v11395_v37 = vunpack.i.l.bf16 %v9179_v11  ;;  %v11396_v23 = vmax.f32 %v8680_v43, 0.0  ;;  %v3985_v36 = vsel %vm1778_vm2, %v11397_v47, %v6049_v46  ;;  %v11398_v14 = vmax.f32 %v9237_v42, 0.0 }
 0x32f   :  { %11392 = vst [vmem:[#allocation75_spill] sm:$0xff] %v9249_v25  ;;  %v10963_v38 = vmax.f32 %v9259_v57, 0.0  ;;  %v11399_v3 = vmax.f32 %v9249_v25, 0.0  ;;  %v9285_v11 = vadd.f32 %v3092_v49, %v8593_v56  ;;  %v11400_v43 = vunpack.i.h.bf16 %v9081_v58 }
 0x330   :  { %v3954_v34 = vsel %vm1778_vm2, %v11395_v37, %v6039_v54  ;;  %v4180_v28 = vmax.f32 %v11396_v23, %v3923_v10  ;;  %v9288_v37 = vadd.f32 %v3094_v15, %v8593_v56  ;;  %v11401_v47 = vmax.f32 %v9256_v1, 0.0 }
 0x331   :  { %v3098_v52 = vpop.f32.mrb[52].mxu0  ;;  %v6185_v21 = vpack.i.bf16 %v11399_v3, %v11398_v14  ;;  %v3893_v10 = vsel %vm1778_vm2, %v11400_v43, %v6023_v8  ;;  %v11402_v49 = vmax.f32 %v9218_v12, 0.0  ;;  %v11403_v15 = vmax.f32 %v9221_v6, 0.0 }
 0x332   :  { %v3100_v30 = vpop.f32.mrb[53].mxu0  ;;  %v6195_v42 = vpack.i.bf16 %v10963_v38, %v11401_v47  ;;  %v5491_v25 = vpack.c.bf16 %v4180_v28, %v4148_v35  ;;  %v11404_v7 = vunpack.i.h.bf16 %v9107_v41  ;;  %v11405_v43 = vunpack.i.h.bf16 %v9240_v24 }
 0x333   :  { %v6190_v14 = vpack.i.bf16 %v11403_v15, %v11402_v49  ;;  %6186 = vrot.lane.b32.xlu0 %v6185_v21, %s6301_s0  ;;  %v6004_v47 = vunpack.i.h.bf16 %v9060_v16  ;;  %v11406_v28 = vunpack.i.l.bf16 %v9240_v24  ;;  %v11407_v38 = vmax.f32 %v8706_v45, 0.0 }
 0x334   :  { %v3924_v58 = vsel %vm1778_vm2, %v6029_v48, %v11404_v7  ;;  %v3986_v23 = vsel %vm1778_vm2, %v6049_v46, %v11405_v43  ;;  %5492 = vmatprep.subr.bf16.mxu0 %v5491_v25  ;;  %v11408_v15 = vmax.f32 %v8722_v39, 0.0  ;;  %6196 = vrot.lane.b32.xlu1 %v6195_v42, %s6301_s0  ;;  %v9321_v7 = vpop.permute.xlu0 %6051  ;;  %v10968_v21 = vmax.f32 %v9285_v11, 0.0 }
 0x335   :  { %v3955_v35 = vsel %vm1778_vm2, %v6039_v54, %v11406_v28  ;;  %v4212_v49 = vmax.f32 %v11407_v38, %v3954_v34  ;;  %v9319_v48 = vpop.f32.mrb[54].mxu0  ;;  %5494 = vmatpush3.bf16.msra.mxu0 %v5493_v13  ;;  %v9326_v54 = vadd.f32 %v3098_v52, %v8578_v0  ;;  %v9329_v45 = vadd.f32 %v3100_v30, %v8578_v0 }
 0x336   :  { %v4244_v3 = vmax.f32 %v11408_v15, %v3985_v36  ;;  %v3106_v34 = vpop.f32.mrb[55].mxu0  ;;  %v6003_v39 = vunpack.i.l.bf16 %v9060_v16  ;;  %v11410_v42 = vunpack.i.h.bf16 %v9089_v18  ;;  %v5497_v38 = vpack.c.bf16 %v4240_v4, %v9188_v55 }
 0x337   :  { %11409 = vst [vmem:[#allocation77_spill] sm:$0xff] %v9329_v45  ;;  %v11411_v13 = vunpack.i.l.bf16 %v9139_v61  ;;  %v11412_v52 = vunpack.i.h.bf16 %v9139_v61  ;;  %v11413_v28 = vunpack.i.h.bf16 %v9107_v41  ;;  %v11414_v15 = vmax.f32 %v8623_v62, 0.0  ;;  %6191 = vrot.lane.b32.xlu0 %v6190_v14, %s6301_s0 }
 0x338   :  { %v3982_v25 = vsel %vm1778_vm2, %v11410_v42, %v6004_v47  ;;  %v5495_v36 = vpack.c.bf16 %v4244_v3, %v4212_v49  ;;  %v11415_v18 = vmax.f32 %v8692_v53, 0.0  ;;  %v6054_v55 = vunpack.i.h.bf16 %v9321_v7 }
 0x339   :  { %v3894_v43 = vsel %vm1778_vm2, %v6023_v8, %v11411_v13  ;;  %v3925_v30 = vsel %vm1778_vm2, %v11413_v28, %v11412_v52  ;;  %v4149_v16 = vmax.f32 %v11414_v15, %v3893_v10  ;;  %v6053_v4 = vunpack.i.l.bf16 %v9321_v7 }
 0x33a   :  { %v4181_v46 = vmax.f32 %v11415_v18, %v3924_v58  ;;  %5496 = vmatprep.subr.bf16.mxu0 %v5495_v36  ;;  %v11416_v8 = vmax.f32 %v8709_v51, 0.0  ;;  %v11417_v41 = vmax.f32 %v8725_v20, 0.0  ;;  %v11418_v62 = vmax.f32 %v9288_v37, 0.0  ;;  %v9361_v42 = vpop.permute.xlu1 %6061 }
 0x33b   :  { %v10967_v53 = vmax.f32 %v9326_v54, 0.0  ;;  %5498 = vmatpush3.bf16.msra.mxu0 %v5497_v38  ;;  %v10966_v58 = vmax.f32 %v9329_v45, 0.0  ;;  %v11419_v51 = vmax.f32 %v8606_v9, 0.0  ;;  %v11420_v20 = vmax.f32 %v8596_v29, 0.0 }
 0x33c   :  { %v4213_v3 = vmax.f32 %v11416_v8, %v3955_v35  ;;  %v4245_v49 = vmax.f32 %v11417_v41, %v3986_v23  ;;  %v6205_v10 = vpack.i.bf16 %v11418_v62, %v10968_v21  ;;  %v5499_v14 = vpack.c.bf16 %v4181_v46, %v4149_v16 }
 0x33d   :  { %v9366_v35 = vmax.f32 %v11419_v51, %v9215_v33  ;;  %v9371_v23 = vmax.f32 %v11420_v20, %v9230_v63  ;;  %v11421_v36 = vunpack.i.h.bf16 %v9053_v44  ;;  %v11422_v38 = vmax.f32 %v8655_v60, 0.0  ;;  %v3175_v9 = vpop.f32.mrb[48].mxu1 }
 0x33e   :  { %v6014_v46 = vunpack.i.h.bf16 %v9114_v32  ;;  %v6013_v28 = vunpack.i.l.bf16 %v9114_v32  ;;  %5500 = vmatprep.subr.bf16.mxu0 %v5499_v14  ;;  %v5501_v33 = vpack.c.bf16 %v9200_v27, %v9192_v31  ;;  %6206 = vrot.lane.b32.xlu0 %v6205_v10, %s6301_s0  ;;  %v9383_v29 = vpop.f32.mrb[49].mxu1  ;;  %v5503_v63 = vpack.c.bf16 %v4245_v49, %v4213_v3  ;;  %v11462_v32 = vld [vmem:[#allocation41_spill] sm:$0xff] }
 0x33f   :  { %v3951_v13 = vsel %vm1778_vm2, %v11421_v36, %v6003_v39  ;;  %v4241_v52 = vmax.f32 %v11422_v38, %v3982_v25  ;;  %v11423_v44 = vmax.f32 %v8674_v17, 0.0  ;;  %v11424_v60 = vmax.f32 %v8684_v5, 0.0  ;;  %v9407_v5 = vpop.permute.xlu0 %6056 }
 0x340   :  { %v11425_v16 = vmax.f32 %v8585_v40, 0.0  ;;  %v11426_v8 = vunpack.i.l.bf16 %v9240_v24  ;;  %v11427_v31 = vunpack.i.h.bf16 %v9240_v24  ;;  %v6210_v17 = vpack.i.bf16 %v10966_v58, %v10967_v53  ;;  %5502 = vmatpush3.bf16.msra.mxu0 %v5501_v33  ;;  %v9405_v40 = vpop.permute.xlu1 %6066  ;;  %v11446_v58 = vld [vmem:[#allocation39_spill] sm:$0xff] }
 0x341   :  { %v4150_v15 = vmax.f32 %v11423_v44, %v3894_v43  ;;  %v4182_v25 = vmax.f32 %v11424_v60, %v3925_v30  ;;  %v9410_v43 = vadd.f32 %v3175_v9, %v8559_v59  ;;  %5504 = vmatprep.subr.bf16.mxu0 %v5503_v63  ;;  %v5509_v30 = vpack.c.bf16 %v9366_v35, %v9371_v23  ;;  %v3181_v62 = vpop.f32.mrb[50].mxu1 }
 0x342   :  { %v4209_v18 = vmax.f32 %v11425_v16, %v3951_v13  ;;  %v3956_v27 = vsel %vm1778_vm2, %v11426_v8, %v6053_v4  ;;  %v3987_v3 = vsel %vm1778_vm2, %v11427_v31, %v6054_v55  ;;  %v3952_v24 = vsel %vm1778_vm2, %v6003_v39, %v6013_v28  ;;  %6211 = vrot.lane.b32.xlu0 %v6210_v17, %s6301_s0  ;;  %v9425_v51 = vpop.f32.mrb[51].mxu1 }
 0x343   :  { %11428 = vst [vmem:[#allocation78_spill] sm:$0xff] %v9410_v43  ;;  %v3983_v41 = vsel %vm1778_vm2, %v6004_v47, %v6014_v46  ;;  %v6068_v49 = vunpack.i.l.bf16 %v9405_v40  ;;  %v9423_v14 = vadd.f32 %v3181_v62, %v8593_v56  ;;  %v5507_v35 = vpack.c.bf16 %v4182_v25, %v4150_v15 }
 0x344   :  { %v5505_v10 = vpack.c.bf16 %v4241_v52, %v4209_v18  ;;  %v11430_v20 = vmax.f32 %v8746_v2, 0.0  ;;  %v11431_v39 = vmax.f32 %v8737_v19, 0.0  ;;  %v6058_v47 = vunpack.i.l.bf16 %v9407_v5  ;;  %v9440_v9 = vpop.permute.xlu1 %6071 }
 0x345   :  { %11429 = vst [vmem:[#allocation79_spill] sm:$0xff] %v9423_v14  ;;  %v10976_v13 = vunpack.i.l.bf16 %v9361_v42  ;;  %v9435_v38 = vadd.f32 %v9319_v48, %v8625_v22  ;;  %v9438_v52 = vadd.f32 %v3106_v34, %v8625_v22  ;;  %v10965_v2 = vmax.f32 %v9410_v43, 0.0  ;;  %v9456_v18 = vpop.f32.mrb[52].mxu1 }
 0x346   :  { %v4214_v23 = vmax.f32 %v11430_v20, %v3956_v27  ;;  %v4246_v36 = vmax.f32 %v11431_v39, %v3987_v3  ;;  %5506 = vmatpush3.bf16.msra.mxu0 %v5505_v10  ;;  %v10964_v33 = vmax.f32 %v9423_v14, 0.0  ;;  %v10970_v19 = vunpack.i.h.bf16 %v9440_v9  ;;  %v11436_v27 = vld [vmem:[#allocation69_spill] sm:$0xff]  ;;  %v11438_v3 = vld [vmem:[#allocation52_spill] sm:$0xff]  ;;  %v9481_v39 = vpop.permute.xlu0 %6076 }
 0x347   :  { %11432 = vst [vmem:[#allocation80_spill] sm:$0xff] %v9438_v52  ;;  %5508 = vmatprep.subr.bf16.mxu0 %v5507_v35  ;;  %v10969_v63 = vunpack.i.l.bf16 %v9440_v9  ;;  %v11433_v44 = vmax.f32 %v8647_v26, 0.0  ;;  %v11434_v48 = vmax.f32 %v8639_v50, 0.0  ;;  %v10971_v34 = vunpack.i.h.bf16 %v9361_v42  ;;  %v3264_v8 = vpop.f32.mrb[56].mxu0 }
 0x348   :  { %v11435_v25 = vunpack.i.h.bf16 %v9139_v61  ;;  %v11437_v31 = vunpack.i.l.bf16 %v11436_v27  ;;  %v11439_v17 = vunpack.i.h.bf16 %v11438_v3  ;;  %v6200_v50 = vpack.i.bf16 %v10964_v33, %v10965_v2  ;;  %v3266_v62 = vpop.f32.mrb[57].mxu0 }
 0x349   :  { %v4210_v15 = vmax.f32 %v11433_v44, %v3952_v24  ;;  %v4242_v60 = vmax.f32 %v11434_v48, %v3983_v41  ;;  %v9472_v24 = vsel %vm1778_vm2, %v10976_v13, %v10969_v63  ;;  %v9474_v41 = vpop.f32.mrb[53].mxu1  ;;  %v5511_v10 = vpack.c.bf16 %v4246_v36, %v4214_v23  ;;  %v9492_v23 = vpop.permute.xlu1 %6081  ;;  %v11441_v36 = vld [vmem:[#allocation61_spill] sm:$0xff] }
 0x34a   :  { %v3926_v16 = vsel %vm1778_vm2, %v11435_v25, %v6068_v49  ;;  %v3922_v26 = vsel %vm1778_vm2, %v11439_v17, %v11437_v31  ;;  %v11440_v35 = vunpack.i.l.bf16 %v9139_v61  ;;  %v10973_v44 = vmax.f32 %v9435_v38, 0.0  ;;  %5510 = vmatpush3.bf16.msra.mxu0 %v5509_v30  ;;  %6201 = vrot.lane.b32.xlu1 %v6200_v50, %s6301_s0  ;;  %v9525_v50 = vpop.permute.xlu0 %6096 }
 0x34b   :  { %v10972_v48 = vmax.f32 %v9438_v52, 0.0  ;;  %v9490_v25 = vsel %vm1778_vm2, %v10971_v34, %v10970_v19  ;;  %v11442_v61 = vunpack.i.l.bf16 %v11441_v36  ;;  %v11443_v27 = vunpack.i.l.bf16 %v11438_v3  ;;  %5512 = vmatprep.subr.bf16.mxu0 %v5511_v10  ;;  %v3193_v36 = vpop.f32.mrb[54].mxu1  ;;  %v3270_v63 = vpop.f32.mrb[58].mxu0  ;;  %v11451_v34 = vld [vmem:[#allocation40_spill] sm:$0xff] }
 0x34c   :  { %v3895_v20 = vsel %vm1778_vm2, %v11440_v35, %v6058_v47  ;;  %v9500_v17 = vadd.f32 %v3264_v8, %v8559_v59  ;;  %v11444_v35 = vld [vmem:[#allocation42_spill] sm:$0xff]  ;;  %v11447_v53 = vmax.f32 %v11446_v58, 0.0  ;;  %v9507_v30 = vadd.f32 %v3266_v62, %v8559_v59  ;;  %v9510_v19 = vpop.f32.mrb[55].mxu1 }
 0x34d   :  { %v3891_v31 = vsel %vm1778_vm2, %v11443_v27, %v11442_v61  ;;  %v11445_v33 = vmax.f32 %v11444_v35, 0.0  ;;  %v5513_v3 = vpack.c.bf16 %v4242_v60, %v4210_v15  ;;  %v3272_v61 = vpop.f32.mrb[59].mxu0  ;;  %v11449_v8 = vld [vmem:[#allocation26_spill] sm:$0xff]  ;;  %v11452_v35 = vmax.f32 %v11451_v34, 0.0  ;;  %v9522_v15 = vpop.permute.xlu1 %6086 }
 0x34e   :  { %v4179_v21 = vmax.f32 %v11447_v53, %v3922_v26  ;;  %11448 = vst [vmem:[#allocation69_spill] sm:$0xff] %v9507_v30  ;;  %v11450_v27 = vmax.f32 %v11449_v8, 0.0  ;;  %v6215_v53 = vpack.i.bf16 %v10972_v48, %v10973_v44  ;;  %v10975_v58 = vmax.f32 %v9500_v17, 0.0 }
 0x34f   :  { %v4183_v2 = vmax.f32 %v11445_v33, %v3926_v16  ;;  %v4147_v33 = vmax.f32 %v11452_v35, %v3891_v31  ;;  %v10974_v16 = vmax.f32 %v9507_v30, 0.0  ;;  %5514 = vmatpush3.bf16.msra.mxu0 %v5513_v3  ;;  %v10979_v26 = vunpack.i.l.bf16 %v9481_v39  ;;  %v3276_v34 = vpop.f32.mrb[60].mxu0  ;;  %v11455_v35 = vld [vmem:[#allocation46_spill] sm:$0xff] }
 0x350   :  { %v4151_v10 = vmax.f32 %v11450_v27, %v3895_v20  ;;  %6216 = vrot.lane.b32.xlu1 %v6215_v53, %s6301_s0  ;;  %v11453_v20 = vld [vmem:[#allocation71_spill] sm:$0xff]  ;;  %v10978_v27 = vunpack.i.h.bf16 %v9407_v5  ;;  %v10977_v3 = vunpack.i.l.bf16 %v9522_v15  ;;  %v9537_v48 = vadd.f32 %v11455_v35, %v8559_v59  ;;  %v11456_v53 = vld [vmem:[#allocation73_spill] sm:$0xff]  ;;  %v11479_v30 = vld [vmem:[#allocation34_spill] sm:$0xff] }
 0x351   :  { %v5517_v62 = vpack.c.bf16 %v4179_v21, %v4147_v33  ;;  %v11454_v31 = vunpack.i.l.bf16 %v11453_v20  ;;  %v11457_v44 = vunpack.i.l.bf16 %v11456_v53  ;;  %v10980_v33 = vunpack.i.h.bf16 %v9405_v40  ;;  %v9551_v20 = vpop.permute.xlu1 %6091  ;;  %v11459_v53 = vld [vmem:[#allocation24_spill] sm:$0xff] }
 0x352   :  { %v5515_v60 = vpack.c.bf16 %v4183_v2, %v4151_v10  ;;  %v3353_v2 = vpop.f32.mrb[56].mxu1  ;;  %v3278_v10 = vpop.f32.mrb[61].mxu0  ;;  %v3896_v7 = vsel %vm1778_vm2, %v6058_v47, %v10978_v27  ;;  %v11470_v27 = vunpack.i.l.bf16 %v9525_v50  ;;  %v9621_v43 = vadd.f32 %v9456_v18, %v8578_v0 }
 0x353   :  { %v3953_v8 = vsel %vm1778_vm2, %v6013_v28, %v11454_v31  ;;  %v3984_v21 = vsel %vm1778_vm2, %v6014_v46, %v11457_v44  ;;  %v6220_v28 = vpack.i.bf16 %v10974_v16, %v10975_v58  ;;  %v11458_v31 = vld [vmem:[#allocation50_spill] sm:$0xff]  ;;  %v3988_v44 = vsel %vm1778_vm2, %v6054_v55, %v10977_v3  ;;  %v3282_v46 = vpop.f32.mrb[62].mxu0 }
 0x354   :  { %5516 = vmatprep.subr.bf16.mxu0 %v5515_v60  ;;  %v9549_v60 = vpop.f32.mrb[57].mxu1  ;;  %v9555_v35 = vadd.f32 %v11458_v31, %v8593_v56  ;;  %v3957_v31 = vsel %vm1778_vm2, %v6053_v4, %v10979_v26  ;;  %v9572_v58 = vadd.f32 %v3270_v63, %v8593_v56  ;;  %v9575_v13 = vadd.f32 %v3353_v2, %v8559_v59  ;;  %v3284_v2 = vpop.f32.mrb[63].mxu0 }
 0x355   :  { %5518 = vmatpush3.bf16.msra.mxu0 %v5517_v62  ;;  %v11460_v62 = vmax.f32 %v11459_v53, 0.0  ;;  %6221 = vrot.lane.b32.xlu1 %v6220_v28, %s6301_s0  ;;  %v11463_v55 = vmax.f32 %v11462_v32, 0.0  ;;  %v9586_v4 = vadd.f32 %v3272_v61, %v8593_v56  ;;  %v9589_v63 = vadd.f32 %v3282_v46, %v8625_v22  ;;  %v9604_v61 = vpop.permute.xlu1 %6106  ;;  %v11467_v46 = vld [vmem:[#allocation28_spill] sm:$0xff]  ;;  %11474 = vst [vmem:[#allocation40_spill] sm:$0xff] %v9621_v43 }
 0x356   :  { %11461 = vst [vmem:[#allocation52_spill] sm:$0xff] %v9575_v13  ;;  %v9600_v32 = vadd.f32 %v3284_v2, %v8625_v22  ;;  %v11468_v53 = vmax.f32 %v11467_v46, 0.0  ;;  %v11472_v2 = vld [vmem:[#allocation27_spill] sm:$0xff]  ;;  %v10989_v46 = vmax.f32 %v9575_v13, 0.0  ;;  %v9634_v18 = vadd.f32 %v3278_v10, %v8578_v0 }
 0x357   :  { %v4211_v16 = vmax.f32 %v11460_v62, %v3953_v8  ;;  %v4243_v3 = vmax.f32 %v11463_v55, %v3984_v21  ;;  %11464 = vst [vmem:[#allocation61_spill] sm:$0xff] %v9589_v63  ;;  %v3359_v8 = vpop.f32.mrb[58].mxu1  ;;  %v3927_v21 = vsel %vm1778_vm2, %v6068_v49, %v10980_v33  ;;  %v11469_v55 = vunpack.i.h.bf16 %v9525_v50 }
 0x358   :  { %v9597_v28 = vadd.f32 %v3359_v8, %v8593_v56  ;;  %11466 = vst [vmem:[#allocation39_spill] sm:$0xff] %v9600_v32  ;;  %v9602_v47 = vpop.f32.mrb[59].mxu1  ;;  %v4247_v62 = vmax.f32 %v11468_v53, %v3988_v44  ;;  %v9614_v49 = vadd.f32 %v3193_v36, %v8625_v22  ;;  %v11473_v33 = vmax.f32 %v11472_v2, 0.0  ;;  %v11483_v36 = vld [vmem:[#allocation36_spill] sm:$0xff] }
 0x359   :  { %v3900_v26 = vsel %vm1778_vm2, %v11470_v27, %v11469_v55  ;;  %v3365_v2 = vpop.f32.mrb[60].mxu1  ;;  %v11475_v55 = vmax.f32 %v9589_v63, 0.0  ;;  %v11476_v8 = vmax.f32 %v9600_v32, 0.0  ;;  %v11478_v10 = vunpack.i.l.bf16 %v9604_v61 }
 0x35a   :  { %11465 = vst [vmem:[#allocation42_spill] sm:$0xff] %v9597_v28  ;;  %11471 = vst [vmem:[#allocation26_spill] sm:$0xff] %v9614_v49  ;;  %v4215_v14 = vmax.f32 %v11473_v33, %v3957_v31  ;;  %v10988_v53 = vmax.f32 %v9597_v28, 0.0  ;;  %v9631_v33 = vadd.f32 %v3276_v34, %v8578_v0  ;;  %v9640_v27 = vpop.f32.mrb[61].mxu1  ;;  %v11477_v34 = vunpack.i.h.bf16 %v9604_v61 }
 0x35b   :  { %v6245_v52 = vpack.i.bf16 %v11476_v8, %v11475_v55  ;;  %v5521_v13 = vpack.c.bf16 %v4243_v3, %v4211_v16  ;;  %v11480_v28 = vmax.f32 %v11479_v30, 0.0  ;;  %v11484_v63 = vmax.f32 %v11483_v36, 0.0  ;;  %v11485_v8 = vld [vmem:[#allocation29_spill] sm:$0xff]  ;;  %v4272_v30 = vld [vmem:[%s10690_s5] sm:$0xff] }
 0x35c   :  { %v6225_v31 = vpack.i.bf16 %v10988_v53, %v10989_v46  ;;  %v5519_v44 = vpack.c.bf16 %v4247_v62, %v4215_v14  ;;  %v3931_v45 = vsel %vm1778_vm2, %v11478_v10, %v11477_v34  ;;  %v11481_v14 = vld [vmem:[#allocation32_spill] sm:$0xff]  ;;  %v11486_v55 = vmax.f32 %v11485_v8, 0.0  ;;  %v11487_v3 = vld [vmem:[#allocation37_spill] sm:$0xff] }
 0x35d   :  { %v4184_v53 = vmax.f32 %v11480_v28, %v3927_v21  ;;  %v11482_v62 = vmax.f32 %v11481_v14, 0.0  ;;  %v9662_v32 = vmax.f32 %v11484_v63, %v9490_v25  ;;  %v10992_v16 = vmax.f32 %v9621_v43, 0.0  ;;  %6246 = vrot.lane.b32.xlu1 %v6245_v52, %s6301_s0  ;;  %v11489_v63 = vld [vmem:[#allocation16_spill] sm:$0xff]  ;;  %v4281_v52 = vld [vmem:[%s10690_s5 + $0x48] sm:$0xff] }
 0x35e   :  { %5520 = vmatprep.subr.bf16.mxu0 %v5519_v44  ;;  %6226 = vrot.lane.b32.xlu0 %v6225_v31, %s6301_s0  ;;  %v4152_v34 = vmax.f32 %v11486_v55, %v3896_v7  ;;  %v11488_v21 = vmax.f32 %v11487_v3, 0.0  ;;  %v11490_v28 = vmax.f32 %v11489_v63, 0.0  ;;  %v11491_v36 = vmax.f32 %v9572_v58, 0.0 }
 0x35f   :  { %v9657_v46 = vmax.f32 %v11482_v62, %v9472_v24  ;;  %5522 = vmatpush3.bf16.msra.mxu0 %v5521_v13  ;;  %v3371_v24 = vpop.f32.mrb[62].mxu1  ;;  %v11492_v7 = vmax.f32 %v9586_v4, 0.0  ;;  %v11012_v13 = vmax.f32 %v9631_v33, 0.0  ;;  %v11009_v10 = vmax.f32 %v9634_v18, 0.0 }
 0x360   :  { %v4156_v25 = vmax.f32 %v11488_v21, %v3900_v26  ;;  %v4188_v44 = vmax.f32 %v11490_v28, %v3931_v45  ;;  %v9683_v14 = vadd.f32 %v3371_v24, %v8625_v22  ;;  %v9685_v62 = vpop.f32.mrb[63].mxu1  ;;  %v9692_v45 = vadd.f32 %v9425_v51, %v8593_v56  ;;  %v4280_v28 = vld [vmem:[%s10690_s5 + $0x40] sm:$0xff] }
 0x361   :  { %v6230_v31 = vpack.i.bf16 %v11492_v7, %v11491_v36  ;;  %v11494_v26 = vmax.f32 %v9614_v49, 0.0  ;;  %v11010_v3 = vmax.f32 %v9555_v35, 0.0  ;;  %v9700_v24 = vadd.f32 %v3365_v2, %v8578_v0  ;;  %v11498_v36 = vld [vmem:[#allocation59_spill] sm:$0xff]  ;;  %v4340_v49 = vld [vmem:[%s10691_s6 + $0x20] sm:$0xff] }
 0x362   :  { %11493 = vst [vmem:[#allocation71_spill] sm:$0xff] %v9683_v14  ;;  %v5523_v55 = vpack.c.bf16 %v4188_v44, %v4156_v25  ;;  %4449 = vmatmul.mubr.f32.vlgmr.msra.gmra.mrb[64].mxu0 %v4272_v30  ;;  %v5525_v21 = vpack.c.bf16 %v4184_v53, %v4152_v34  ;;  %v11011_v51 = vmax.f32 %v9537_v48, 0.0  ;;  %v11496_v25 = vld [vmem:[#allocation68_spill] sm:$0xff]  ;;  %v9715_v2 = vadd.f32 %v9383_v29, %v8559_v59  ;;  %v4289_v30 = vld [vmem:[%s10690_s5 + $0x88] sm:$0xff] }
 0x363   :  { %v6250_v8 = vpack.i.bf16 %v11494_v26, %v10992_v16  ;;  %11495 = vst [vmem:[#allocation46_spill] sm:$0xff] %v9700_v24  ;;  %6231 = vrot.lane.b32.xlu0 %v6230_v31, %s6301_s0  ;;  %4453 = vmatprep.mubr.f32.mxu0 %v4281_v52  ;;  %v9711_v44 = vadd.f32 %v11496_v25, %v8593_v56  ;;  %v10993_v34 = vmax.f32 %v9683_v14, 0.0  ;;  %v11499_v31 = vld [vmem:[#allocation64_spill] sm:$0xff]  ;;  %v10995_v26 = vmax.f32 %v9692_v45, 0.0  ;;  %v4288_v25 = vld [vmem:[%s10690_s5 + $0x80] sm:$0xff] }
 0x364   :  { %5524 = vmatprep.subr.bf16.mxu1 %v5523_v55  ;;  %v6235_v53 = vpack.i.bf16 %v11009_v10, %v11012_v13  ;;  %v9728_v7 = vadd.f32 %v11498_v36, %v8625_v22  ;;  %v6260_v29 = vpack.i.bf16 %v11010_v3, %v11011_v51  ;;  %v9736_v52 = vadd.f32 %v11499_v31, %v8559_v59  ;;  %v11501_v55 = vld [vmem:[#allocation54_spill] sm:$0xff] }
 0x365   :  { %11497 = vst [vmem:[#allocation73_spill] sm:$0xff] %v9711_v44  ;;  %6251 = vrot.lane.b32.xlu1 %v6250_v8, %s6301_s0  ;;  %5526 = vmatpush3.bf16.msra.mxu1 %v5525_v21  ;;  %v10994_v8 = vmax.f32 %v9700_v24, 0.0  ;;  %v9743_v21 = vadd.f32 %v11501_v55, %v8578_v0  ;;  %v10997_v36 = vmax.f32 %v9711_v44, 0.0  ;;  %v10996_v31 = vmax.f32 %v9715_v2, 0.0  ;;  %v11521_v24 = vld [vmem:[#allocation15_spill] sm:$0xff] }
 0x366   :  { %11500 = vst [vmem:[#allocation50_spill] sm:$0xff] %v9736_v52  ;;  %4454 = vmatmul.mubr.f32.gmra.mrb[66].mxu0 %v4280_v28  ;;  %v9752_v16 = vadd.f32 %v9602_v47, %v8593_v56  ;;  %v10998_v55 = vmax.f32 %v9736_v52, 0.0  ;;  %v9770_v47 = vadd.f32 %v9510_v19, %v8625_v22  ;;  %v11512_v3 = vunpack.i.l.bf16 %v9522_v15 }
 0x367   :  { %6236 = vrot.lane.b32.xlu0 %v6235_v53, %s6301_s0  ;;  %4458 = vmatprep.mubr.f32.mxu0 %v4289_v30  ;;  %v6240_v28 = vpack.i.bf16 %v10993_v34, %v10994_v8  ;;  %v4297_v53 = vld [vmem:[%s10690_s5 + $0xc8] sm:$0xff]  ;;  %v10999_v30 = vmax.f32 %v9728_v7, 0.0  ;;  %v6270_v56 = vpack.i.bf16 %v10995_v26, %v10996_v31  ;;  %v11000_v34 = vmax.f32 %v9743_v21, 0.0  ;;  %v4296_v8 = vld [vmem:[%s10690_s5 + $0xc0] sm:$0xff]  ;;  %v11504_v26 = vld [vmem:[#allocation76_spill] sm:$0xff] }
 0x368   :  { %11502 = vst [vmem:[#allocation24_spill] sm:$0xff] %v9770_v47  ;;  %v6255_v19 = vpack.i.bf16 %v10997_v36, %v10998_v55  ;;  %v9787_v31 = vadd.f32 %v11504_v26, %v8625_v22  ;;  %v11507_v26 = vld [vmem:[#allocation72_spill] sm:$0xff]  ;;  %v6084_v14 = vunpack.i.h.bf16 %v9492_v23  ;;  %v11522_v44 = vmax.f32 %v11521_v24, 0.0 }
 0x369   :  { %6261 = vrot.lane.b32.xlu1 %v6260_v29, %s6301_s0  ;;  %v9774_v29 = vadd.f32 %v9549_v60, %v8559_v59  ;;  %v9791_v59 = vadd.f32 %v9474_v41, %v8578_v0  ;;  %v11008_v60 = vmax.f32 %v9752_v16, 0.0  ;;  %v11002_v41 = vmax.f32 %v9770_v47, 0.0 }
 0x36a   :  { %4459 = vmatmul.mubr.f32.gmra.mrb[68].mxu0 %v4288_v25  ;;  %11505 = vst [vmem:[#allocation28_spill] sm:$0xff] %v9787_v31  ;;  %v4305_v25 = vld [vmem:[%s10690_s5 + $0x108] sm:$0xff]  ;;  %v11004_v55 = vmax.f32 %v9787_v31, 0.0  ;;  %v11516_v47 = vunpack.i.h.bf16 %v9407_v5  ;;  %v6083_v31 = vunpack.i.l.bf16 %v9492_v23  ;;  %v11528_v23 = vld [vmem:[#allocation12_spill] sm:$0xff] }
 0x36b   :  { %11503 = vst [vmem:[#allocation41_spill] sm:$0xff] %v9774_v29  ;;  %6241 = vrot.lane.b32.xlu0 %v6240_v28, %s6301_s0  ;;  %4463 = vmatprep.mubr.f32.mxu0 %v4297_v53  ;;  %11506 = vst [vmem:[#allocation27_spill] sm:$0xff] %v9791_v59  ;;  %v6280_v28 = vpack.i.bf16 %v10999_v30, %v11000_v34  ;;  %v9804_v53 = vadd.f32 %v11507_v26, %v8578_v0  ;;  %v11001_v36 = vmax.f32 %v9774_v29, 0.0 }
 0x36c   :  { %v11003_v30 = vmax.f32 %v9791_v59, 0.0  ;;  %v9820_v34 = vadd.f32 %v9685_v62, %v8625_v22  ;;  %v4312_v22 = vld [vmem:[%s10690_s5 + $0x140] sm:$0xff] }
 0x36d   :  { %6271 = vrot.lane.b32.xlu1 %v6270_v56, %s6301_s0  ;;  %11508 = vst [vmem:[#allocation34_spill] sm:$0xff] %v9804_v53  ;;  %v4304_v56 = vld [vmem:[%s10690_s5 + $0x100] sm:$0xff]  ;;  %v6265_v26 = vpack.i.bf16 %v11008_v60, %v11001_v36  ;;  %v9833_v36 = vadd.f32 %v9640_v27, %v8578_v0  ;;  %v4321_v0 = vld [vmem:[%s10690_s5 + $0x188] sm:$0xff] }
 0x36e   :  { %4464 = vmatmul.mubr.f32.gmra.mrb[70].mxu0 %v4296_v8  ;;  %11509 = vst [vmem:[#allocation32_spill] sm:$0xff] %v9820_v34  ;;  %v4313_v8 = vld [vmem:[%s10690_s5 + $0x148] sm:$0xff] }
 0x36f   :  { %6256 = vrot.lane.b32.xlu0 %v6255_v19, %s6301_s0  ;;  %4468 = vmatprep.mubr.f32.mxu0 %v4305_v25  ;;  %v11005_v19 = vmax.f32 %v9804_v53, 0.0  ;;  %v6290_v25 = vpack.i.bf16 %v11002_v41, %v11003_v30  ;;  %11510 = vst [vmem:[#allocation36_spill] sm:$0xff] %v9833_v36  ;;  %v4337_v27 = vld [vmem:[%s10691_s6 + $0x8] sm:$0xff]  ;;  %v6089_v30 = vunpack.i.h.bf16 %v9522_v15  ;;  %v11514_v15 = vunpack.i.h.bf16 %v9525_v50 }
 0x371   :  { %6281 = vrot.lane.b32.xlu1 %v6280_v28, %s6301_s0  ;;  %v6275_v62 = vpack.i.bf16 %v11004_v55, %v11005_v19  ;;  %v11007_v28 = vmax.f32 %v9820_v34, 0.0  ;;  %v3989_v51 = vsel %vm1778_vm2, %v11512_v3, %v6089_v30 }
 0x372   :  { %4469 = vmatmul.mubr.f32.gmra.mrb[72].mxu0 %v4304_v56  ;;  %v11006_v56 = vmax.f32 %v9833_v36, 0.0  ;;  %v11517_v36 = vld [vmem:[#allocation30_spill] sm:$0xff]  ;;  %v4248_v5 = vmax.f32 %v11522_v44, %v3989_v51  ;;  %v11530_v51 = vld [vmem:[#allocation17_spill] sm:$0xff] }
 0x373   :  { %6266 = vrot.lane.b32.xlu0 %v6265_v26, %s6301_s0  ;;  %4473 = vmatprep.mubr.f32.mxu0 %v4313_v8  ;;  %v9853_v26 = vpop.permute.xlu0 %6101  ;;  %v9855_v8 = vpop.permute.xlu1 %6126  ;;  %v11531_v44 = vmax.f32 %v11530_v51, 0.0 }
 0x374   :  { %v6285_v41 = vpack.i.bf16 %v11007_v28, %v11006_v56  ;;  %v6129_v55 = vunpack.i.h.bf16 %v9855_v8  ;;  %v11013_v19 = vunpack.i.l.bf16 %v9855_v8  ;;  %v4328_v56 = vld [vmem:[%s10690_s5 + $0x1c0] sm:$0xff]  ;;  %v6104_v60 = vunpack.i.h.bf16 %v9853_v26 }
 0x375   :  { %6291 = vrot.lane.b32.xlu1 %v6290_v25, %s6301_s0  ;;  %v4320_v25 = vld [vmem:[%s10690_s5 + $0x180] sm:$0xff]  ;;  %v6103_v10 = vunpack.i.l.bf16 %v9853_v26 }
 0x376   :  { %4474 = vmatmul.mubr.f32.gmra.mrb[74].mxu0 %v4312_v22  ;;  %v4329_v22 = vld [vmem:[%s10690_s5 + $0x1c8] sm:$0xff]  ;;  %v4336_v28 = vld [vmem:[%s10691_s6] sm:$0xff]  ;;  %v3993_v13 = vsel %vm1778_vm2, %v11013_v19, %v6129_v55  ;;  %v11520_v19 = vunpack.i.h.bf16 %v9405_v40 }
 0x377   :  { %6276 = vrot.lane.b32.xlu0 %v6275_v62, %s6301_s0  ;;  %4478 = vmatprep.mubr.f32.mxu0 %v4321_v0  ;;  %v6079_v62 = vunpack.i.h.bf16 %v9481_v39  ;;  %v4339_v0 = vld [vmem:[%s10691_s6 + $0x18] sm:$0xff]  ;;  %v3901_v3 = vsel %vm1778_vm2, %v11514_v15, %v6103_v10  ;;  %v11519_v15 = vunpack.i.h.bf16 %v9361_v42 }
 0x379   :  { %4351 = vperm.xlu1 %5654, %v4337_v27   ;;  %v9875_v27 = vpop.permute.xlu0 %6111  ;;  %v3928_v53 = vsel %vm1778_vm2, %v11520_v19, %v11519_v15  ;;  %v11529_v15 = vmax.f32 %v11528_v23, 0.0 }
 0x37a   :  { %4479 = vmatmul.mubr.f32.gmra.mrb[76].mxu0 %v4320_v25  ;;  %v11511_v25 = vunpack.i.l.bf16 %v9481_v39  ;;  %v4338_v39 = vld [vmem:[%s10691_s6 + $0x10] sm:$0xff] }
 0x37b   :  { %6286 = vrot.lane.b32.xlu0 %v6285_v41, %s6301_s0  ;;  %4483 = vmatprep.mubr.f32.mxu0 %v4329_v22  ;;  %v4341_v22 = vld [vmem:[%s10691_s6 + $0x28] sm:$0xff]  ;;  %v4157_v24 = vmax.f32 %v11529_v15, %v3901_v3  ;;  %v3959_v3 = vsel %vm1778_vm2, %v6079_v62, %v6083_v31  ;;  %v3990_v15 = vsel %vm1778_vm2, %v6089_v30, %v6084_v14  ;;  %v4342_v30 = vld [vmem:[%s10691_s6 + $0x30] sm:$0xff] }
 0x37c   :  { %v3958_v41 = vsel %vm1778_vm2, %v11511_v25, %v6079_v62 }
 0x37d   :  { %4361 = vperm.xlu1 %5654, %v4339_v0   ;;  %v9897_v26 = vpop.permute.xlu0 %6116  ;;  %v11513_v0 = vunpack.i.h.bf16 %v9604_v61 }
 0x37e   :  { %4484 = vmatmul.mubr.f32.gmra.mrb[78].mxu0 %v4328_v56  ;;  %v6119_v63 = vunpack.i.h.bf16 %v9897_v26  ;;  %v11515_v56 = vunpack.i.l.bf16 %v9361_v42  ;;  %v11524_v42 = vld [vmem:[#allocation5_spill] sm:$0xff] }
 0x37f   :  { %4346 = vperm.xlu0 %5652, %v4336_v28   ;;  %v3932_v25 = vsel %vm1778_vm2, %v11513_v0, %v6104_v60  ;;  %v4277_v28 = vld [vmem:[%s10690_s5 + $0x28] sm:$0xff]  ;;  %v11518_v0 = vmax.f32 %v11517_v36, 0.0  ;;  %v4343_v36 = vld [vmem:[%s10691_s6 + $0x38] sm:$0xff] }
 0x380   :  { %v3897_v59 = vsel %vm1778_vm2, %v11516_v47, %v11515_v56  ;;  %4658 = vmatprep.mubr.f32.mxu0 %v4277_v28  ;;  %v11523_v47 = vunpack.i.l.bf16 %v9897_v26  ;;  %v11525_v28 = vmax.f32 %v11524_v42, 0.0  ;;  %v11526_v56 = vld [vmem:[#allocation10_spill] sm:$0xff]  ;;  %v4189_v52 = vmax.f32 %v11531_v44, %v3932_v25 }
 0x381   :  { %v4216_v34 = vmax.f32 %v11518_v0, %v3958_v41  ;;  %4371 = vperm.xlu1 %5654, %v4341_v22   ;;  %v6122_v22 = vpop.permute.xlu0 %6121  ;;  %v11527_v19 = vmax.f32 %v11526_v56, 0.0 }
 0x382   :  { %v3962_v41 = vsel %vm1778_vm2, %v11523_v47, %v6119_v63  ;;  %v6114_v47 = vunpack.i.h.bf16 %v9875_v27  ;;  %v6124_v43 = vunpack.i.h.bf16 %v6122_v22  ;;  %v6123_v42 = vunpack.i.l.bf16 %v6122_v22 }
 0x383   :  { %4356 = vperm.xlu0 %5652, %v4338_v39   ;;  %v4220_v40 = vmax.f32 %v11525_v28, %v3962_v41  ;;  %v4252_v0 = vmax.f32 %v11527_v19, %v3993_v13  ;;  %v6113_v39 = vunpack.i.l.bf16 %v9875_v27  ;;  %v11532_v41 = vld [vmem:[#allocation31_spill] sm:$0xff]  ;;  %v5529_v29 = vpack.c.bf16 %v4248_v5, %v4216_v34 }
 0x384   :  { %v11533_v28 = vmax.f32 %v11532_v41, 0.0  ;;  %v11534_v13 = vld [vmem:[#allocation35_spill] sm:$0xff]  ;;  %v3994_v51 = vsel %vm1778_vm2, %v6129_v55, %v6124_v43  ;;  %v3963_v44 = vsel %vm1778_vm2, %v6119_v63, %v6123_v42  ;;  %v5531_v22 = vpack.c.bf16 %v4189_v52, %v4157_v24  ;;  %v11536_v41 = vld [vmem:[#allocation21_spill] sm:$0xff] }
 0x385   :  { %v11535_v19 = vmax.f32 %v11534_v13, 0.0  ;;  %4381 = vperm.xlu1 %5654, %v4343_v36   ;;  %v5527_v25 = vpack.c.bf16 %v4252_v0, %v4220_v40  ;;  %v6132_v27 = vpop.permute.xlu0 %6131  ;;  %v11538_v13 = vld [vmem:[#allocation13_spill] sm:$0xff]  ;;  %v3902_v62 = vsel %vm1778_vm2, %v6103_v10, %v6113_v39  ;;  %v3933_v36 = vsel %vm1778_vm2, %v6104_v60, %v6114_v47  ;;  %v11542_v5 = vld [vmem:[#allocation11_spill] sm:$0xff] }
 0x386   :  { %v4153_v56 = vmax.f32 %v11533_v28, %v3897_v59  ;;  %v11537_v59 = vmax.f32 %v11536_v41, 0.0  ;;  %v6134_v63 = vunpack.i.h.bf16 %v6132_v27  ;;  %v6133_v34 = vunpack.i.l.bf16 %v6132_v27 }
 0x387   :  { %v4185_v23 = vmax.f32 %v11535_v19, %v3928_v53  ;;  %4366 = vperm.xlu0 %5652, %v4340_v49   ;;  %5528 = vmatprep.subr.bf16.mxu1 %v5527_v25  ;;  %v11539_v53 = vmax.f32 %v11538_v13, 0.0  ;;  %v11540_v49 = vld [vmem:[#allocation33_spill] sm:$0xff]  ;;  %v11543_v40 = vmax.f32 %v11542_v5, 0.0  ;;  %v6093_v24 = vunpack.i.l.bf16 %v9551_v20 }
 0x388   :  { %v4221_v28 = vmax.f32 %v11537_v59, %v3963_v44  ;;  %5530 = vmatpush3.bf16.msra.mxu1 %v5529_v29  ;;  %v11541_v52 = vmax.f32 %v11540_v49, 0.0  ;;  %v6094_v10 = vunpack.i.h.bf16 %v9551_v20  ;;  %v11544_v44 = vld [vmem:[#allocation4_spill] sm:$0xff]  ;;  %v11546_v29 = vld [vmem:[#allocation19_spill] sm:$0xff]  ;;  %v3995_v13 = vsel %vm1778_vm2, %v6124_v43, %v6134_v63 }
 0x389   :  { %v4253_v19 = vmax.f32 %v11539_v53, %v3994_v51  ;;  %5532 = vmatprep.subr.bf16.mxu1 %v5531_v22  ;;  %v4249_v0 = vmax.f32 %v11543_v40, %v3990_v15  ;;  %v5533_v25 = vpack.c.bf16 %v4185_v23, %v4153_v56  ;;  %v9971_v60 = vpop.permute.xlu0 %6136  ;;  %v11545_v41 = vmax.f32 %v11544_v44, 0.0  ;;  %v9989_v5 = vpop.permute.xlu1 %6141  ;;  %v11552_v40 = vld [vmem:[#allocation9_spill] sm:$0xff] }
 0x38a   :  { %v4217_v55 = vmax.f32 %v11541_v52, %v3959_v3  ;;  %v11547_v22 = vmax.f32 %v11546_v29, 0.0  ;;  %v3964_v3 = vsel %vm1778_vm2, %v6123_v42, %v6133_v34  ;;  %v6139_v15 = vunpack.i.h.bf16 %v9971_v60  ;;  %v11560_v29 = vld [vmem:[#allocation2_spill] sm:$0xff] }
 0x38b   :  { %4376 = vperm.xlu0 %5652, %v4342_v30   ;;  %v5535_v51 = vpack.c.bf16 %v4253_v19, %v4221_v28  ;;  %v4158_v27 = vmax.f32 %v11545_v41, %v3902_v62  ;;  %v6138_v56 = vunpack.i.l.bf16 %v9971_v60  ;;  %v3960_v20 = vsel %vm1778_vm2, %v6083_v31, %v6093_v24  ;;  %v11548_v19 = vld [vmem:[#allocation7_spill] sm:$0xff] }
 0x38c   :  { %v4190_v59 = vmax.f32 %v11547_v22, %v3933_v36  ;;  %5534 = vmatpush3.bf16.msra.mxu1 %v5533_v25  ;;  %v5537_v23 = vpack.c.bf16 %v4249_v0, %v4217_v55  ;;  %v3991_v28 = vsel %vm1778_vm2, %v6084_v14, %v6094_v10  ;;  %v11549_v62 = vmax.f32 %v11548_v19, 0.0  ;;  %v11550_v36 = vld [vmem:[#allocation23_spill] sm:$0xff]  ;;  %v11554_v0 = vld [vmem:[#allocation8_spill] sm:$0xff] }
 0x38d   :  { %5536 = vmatprep.subr.bf16.mxu1 %v5535_v51  ;;  %v11551_v49 = vmax.f32 %v11550_v36, 0.0  ;;  %v3903_v43 = vsel %vm1778_vm2, %v6113_v39, %v6138_v56  ;;  %v3934_v52 = vsel %vm1778_vm2, %v6114_v47, %v6139_v15  ;;  %v11553_v31 = vmax.f32 %v11552_v40, 0.0  ;;  %v11558_v39 = vld [vmem:[#allocation20_spill] sm:$0xff] }
 0x38e   :  { %v5539_v53 = vpack.c.bf16 %v4190_v59, %v4158_v27  ;;  %v4222_v30 = vmax.f32 %v11549_v62, %v3964_v3  ;;  %v11555_v14 = vmax.f32 %v11554_v0, 0.0  ;;  %v11556_v60 = vunpack.i.l.bf16 %v9604_v61 }
 0x38f   :  { %v4254_v42 = vmax.f32 %v11551_v49, %v3995_v13  ;;  %v4218_v55 = vmax.f32 %v11553_v31, %v3960_v20  ;;  %v11557_v51 = vunpack.i.h.bf16 %v9440_v9  ;;  %v11559_v27 = vmax.f32 %v11558_v39, 0.0  ;;  %v11568_v49 = vld [vmem:[#allocation14_spill] sm:$0xff] }
 0x390   :  { %5538 = vmatpush3.bf16.msra.mxu1 %v5537_v23  ;;  %v4250_v25 = vmax.f32 %v11555_v14, %v3991_v28  ;;  %v11561_v22 = vmax.f32 %v11560_v29, 0.0  ;;  %v11562_v3 = vpack.c.bf16 %v9662_v32, %v9657_v46  ;;  %v11563_v13 = vunpack.i.l.bf16 %v9525_v50  ;;  %v10012_v23 = vpop.permute.xlu1 %6151  ;;  %v10014_v28 = vpop.permute.xlu0 %6146 }
 0x391   :  { %5540 = vmatprep.subr.bf16.mxu1 %v5539_v53  ;;  %v3930_v44 = vsel %vm1778_vm2, %v11557_v51, %v11556_v60  ;;  %v5543_v41 = vpack.c.bf16 %v4254_v42, %v4222_v30  ;;  %v4159_v47 = vmax.f32 %v11559_v27, %v3903_v43  ;;  %v11564_v20 = vunpack.i.l.bf16 %v9440_v9  ;;  %v11565_v53 = vld [vmem:[#allocation38_spill] sm:$0xff] }
 0x392   :  { %v4191_v59 = vmax.f32 %v11561_v22, %v3934_v52  ;;  %v11566_v19 = vmax.f32 %v11565_v53, 0.0  ;;  %v6154_v30 = vunpack.i.h.bf16 %v10012_v23  ;;  %v6153_v36 = vunpack.i.l.bf16 %v10012_v23 }
 0x393   :  { %v3899_v61 = vsel %vm1778_vm2, %v11564_v20, %v11563_v13  ;;  %v5545_v32 = vpack.c.bf16 %v4250_v25, %v4218_v55  ;;  %v11567_v46 = vunpack.i.l.bf16 %v9897_v26  ;;  %v11569_v42 = vmax.f32 %v11568_v49, 0.0  ;;  %v11573_v25 = vld [vmem:[#allocation6_spill] sm:$0xff] }
 0x394   :  { %5542 = vmatpush3.bf16.msra.mxu1 %v11562_v3  ;;  %v4187_v62 = vmax.f32 %v11566_v19, %v3930_v44  ;;  %v5547_v9 = vpack.c.bf16 %v4191_v59, %v4159_v47  ;;  %v3965_v52 = vsel %vm1778_vm2, %v6133_v34, %v6153_v36  ;;  %v3996_v40 = vsel %vm1778_vm2, %v6134_v63, %v6154_v30  ;;  %v10034_v26 = vpop.permute.xlu1 %6156  ;;  %v11575_v44 = vld [vmem:[#allocation3_spill] sm:$0xff]  ;;  %v10042_v27 = vpop.permute.xlu0 %6166  ;;  %v11577_v47 = vld [vmem:[#allocation18_spill] sm:$0xff] }
 0x395   :  { %5544 = vmatprep.subr.bf16.mxu1 %v5543_v41  ;;  %v3961_v50 = vsel %vm1778_vm2, %v6093_v24, %v11567_v46  ;;  %v4155_v43 = vmax.f32 %v11569_v42, %v3899_v61  ;;  %v11570_v31 = vunpack.i.l.bf16 %v9855_v8  ;;  %v11571_v24 = vld [vmem:[#allocation22_spill] sm:$0xff]  ;;  %v11574_v60 = vmax.f32 %v11573_v25, 0.0  ;;  %v4274_v61 = vld [vmem:[%s10690_s5 + $0x10] sm:$0xff]  ;;  %v11581_v42 = vld [vmem:[#allocation25_spill] sm:$0xff] }
 0x396   :  { %v11572_v0 = vmax.f32 %v11571_v24, 0.0  ;;  %v11576_v34 = vmax.f32 %v11575_v44, 0.0  ;;  %v11578_v8 = vmax.f32 %v11577_v47, 0.0  ;;  %v6148_v22 = vunpack.i.l.bf16 %v10014_v28 }
 0x397   :  { %v3992_v55 = vsel %vm1778_vm2, %v6094_v10, %v11570_v31  ;;  %v4255_v51 = vmax.f32 %v11574_v60, %v3996_v40  ;;  %v5549_v39 = vpack.c.bf16 %v4187_v62, %v4155_v43  ;;  %v6149_v10 = vunpack.i.h.bf16 %v10014_v28  ;;  %v4283_v28 = vld [vmem:[%s10690_s5 + $0x58] sm:$0xff]  ;;  %v4282_v40 = vld [vmem:[%s10690_s5 + $0x50] sm:$0xff] }
 0x398   :  { %5546 = vmatpush3.bf16.msra.mxu1 %v5545_v32  ;;  %v4223_v14 = vmax.f32 %v11572_v0, %v3965_v52  ;;  %v4219_v41 = vmax.f32 %v11576_v34, %v3961_v50  ;;  %v4251_v29 = vmax.f32 %v11578_v8, %v3992_v55  ;;  %v10048_v59 = vpop.permute.xlu1 %6161  ;;  %v6169_v3 = vunpack.i.h.bf16 %v10042_v27  ;;  %v11583_v31 = vld [vmem:[#allocation53_spill] sm:$0xff]  ;;  %v11585_v0 = vld [vmem:[#allocation62_spill] sm:$0xff]  ;;  %v4290_v34 = vld [vmem:[%s10690_s5 + $0x90] sm:$0xff] }
 0x399   :  { %5548 = vmatprep.subr.bf16.mxu1 %v5547_v9  ;;  %v11045_v13 = vunpack.i.l.bf16 %v10042_v27  ;;  %v3904_v53 = vsel %vm1778_vm2, %v6138_v56, %v6148_v22  ;;  %v3935_v19 = vsel %vm1778_vm2, %v6139_v15, %v6149_v10  ;;  %v11579_v9 = vld [vmem:[#allocation43_spill] sm:$0xff]  ;;  %v11582_v15 = vmax.f32 %v11581_v42, 0.0  ;;  %v4291_v60 = vld [vmem:[%s10690_s5 + $0x98] sm:$0xff]  ;;  %v4298_v8 = vld [vmem:[%s10690_s5 + $0xd0] sm:$0xff] }
 0x39a   :  { %v5551_v63 = vpack.c.bf16 %v4255_v51, %v4223_v14  ;;  %v5553_v20 = vpack.c.bf16 %v4251_v29, %v4219_v41  ;;  %v11580_v49 = vmax.f32 %v11579_v9, 0.0  ;;  %v11584_v55 = vmax.f32 %v11583_v31, 0.0 }
 0x39b   :  { %v3908_v32 = vsel %vm1778_vm2, %v11045_v13, %v6169_v3  ;;  %v4192_v43 = vmax.f32 %v11582_v15, %v3935_v19  ;;  %v11586_v14 = vmax.f32 %v11585_v0, 0.0  ;;  %v6163_v47 = vunpack.i.l.bf16 %v10048_v59 }
 0x39c   :  { %5550 = vmatpush3.bf16.msra.mxu1 %v5549_v39  ;;  %v10057_v62 = vpop.permute.xlu1 %6176  ;;  %v4160_v56 = vmax.f32 %v11580_v49, %v3904_v53  ;;  %v4164_v24 = vmax.f32 %v11584_v55, %v3908_v32  ;;  %v4299_v39 = vld [vmem:[%s10690_s5 + $0xd8] sm:$0xff]  ;;  %v6164_v29 = vunpack.i.h.bf16 %v10048_v59  ;;  %v4306_v59 = vld [vmem:[%s10690_s5 + $0x110] sm:$0xff]  ;;  %v6144_v49 = vunpack.i.h.bf16 %v9989_v5  ;;  %v11587_v55 = vld [vmem:[#allocation51_spill] sm:$0xff] }
 0x39d   :  { %5552 = vmatprep.subr.bf16.mxu1 %v5551_v63  ;;  %v6179_v46 = vunpack.i.h.bf16 %v10057_v62  ;;  %v11043_v50 = vunpack.i.l.bf16 %v10057_v62  ;;  %v10087_v41 = vpop.permute.xlu0 %6171  ;;  %v4307_v53 = vld [vmem:[%s10690_s5 + $0x118] sm:$0xff]  ;;  %v3966_v9 = vsel %vm1778_vm2, %v6153_v36, %v6163_v47 }
 0x39e   :  { %v5557_v44 = vpack.c.bf16 %v4192_v43, %v4160_v56  ;;  %v11037_v19 = vunpack.i.l.bf16 %v10087_v41  ;;  %v6143_v56 = vunpack.i.l.bf16 %v9989_v5  ;;  %v3997_v42 = vsel %vm1778_vm2, %v6154_v30, %v6164_v29  ;;  %v4315_v36 = vld [vmem:[%s10690_s5 + $0x158] sm:$0xff] }
 0x39f   :  { %v3939_v52 = vsel %vm1778_vm2, %v11043_v50, %v6179_v46  ;;  %v11615_v50 = vmax.f32 %v9326_v54, 0.0  ;;  %v11618_v54 = vmax.f32 %v9586_v4, 0.0 }
 0x3a0   :  { %5554 = vmatpush3.bf16.msra.mxu1 %v5553_v20  ;;  %v4196_v25 = vmax.f32 %v11586_v14, %v3939_v52  ;;  %v10092_v63 = vpop.permute.xlu1 %6181  ;;  %v11034_v20 = vunpack.i.h.bf16 %v10087_v41  ;;  %v3909_v52 = vsel %vm1778_vm2, %v6169_v3, %v11037_v19  ;;  %v3905_v31 = vsel %vm1778_vm2, %v6148_v22, %v6143_v56  ;;  %v11589_v3 = vld [vmem:[#allocation48_spill] sm:$0xff]  ;;  %v11591_v22 = vld [vmem:[#allocation65_spill] sm:$0xff] }
 0x3a1   :  { %v11032_v32 = vunpack.i.l.bf16 %v10092_v63  ;;  %v11590_v14 = vmax.f32 %v11589_v3, 0.0 }
 0x3a2   :  { %v5555_v51 = vpack.c.bf16 %v4196_v25, %v4164_v24  ;;  %v3940_v15 = vsel %vm1778_vm2, %v6179_v46, %v11034_v20  ;;  %v3936_v46 = vsel %vm1778_vm2, %v6149_v10, %v6144_v49  ;;  %v11588_v24 = vmax.f32 %v11587_v55, 0.0  ;;  %v4314_v10 = vld [vmem:[%s10690_s5 + $0x150] sm:$0xff]  ;;  %v11596_v55 = vld [vmem:[#allocation63_spill] sm:$0xff] }
 0x3a3   :  { %4554 = vmatmul.mubr.f32.vlgmr.msra.gmra.mrb[64].mxu1 %v4274_v61  ;;  %v4256_v25 = vmax.f32 %v11590_v14, %v3997_v42 }
 0x3a4   :  { %4558 = vmatprep.mubr.f32.mxu1 %v4283_v28  ;;  %5556 = vmatprep.subr.bf16.mxu0 %v5555_v51  ;;  %v6184_v28 = vunpack.i.h.bf16 %v10092_v63  ;;  %v4224_v0 = vmax.f32 %v11588_v24, %v3966_v9  ;;  %v11594_v9 = vld [vmem:[#allocation57_spill] sm:$0xff]  ;;  %v11597_v24 = vmax.f32 %v11596_v55, 0.0 }
 0x3a5   :  { %5558 = vmatpush3.bf16.msra.mxu0 %v5557_v44  ;;  %v10100_v61 = vpop.permute.xlu0 %6186 }
 0x3a6   :  { %v3970_v23 = vsel %vm1778_vm2, %v11032_v32, %v6184_v28  ;;  %v11028_v51 = vunpack.i.l.bf16 %v10100_v61  ;;  %v4197_v3 = vmax.f32 %v11597_v24, %v3940_v15  ;;  %v5561_v55 = vpack.c.bf16 %v4256_v25, %v4224_v0  ;;  %v11603_v0 = vld [vmem:[#allocation66_spill] sm:$0xff] }
 0x3a7   :  { %4559 = vmatmul.mubr.f32.gmra.mrb[66].mxu1 %v4282_v40  ;;  %v11604_v25 = vmax.f32 %v11603_v0, 0.0  ;;  %v11611_v32 = vmax.f32 %v9259_v57, 0.0 }
 0x3a8   :  { %4563 = vmatprep.mubr.f32.mxu1 %v4291_v60  ;;  %v11027_v60 = vunpack.i.h.bf16 %v10100_v61 }
 0x3a9   :  { %v10122_v43 = vpop.permute.xlu0 %6191 }
 0x3aa   :  { %v6194_v30 = vunpack.i.h.bf16 %v10122_v43  ;;  %v11029_v40 = vunpack.i.l.bf16 %v10122_v43 }
 0x3ab   :  { %4564 = vmatmul.mubr.f32.gmra.mrb[68].mxu1 %v4290_v34  ;;  %v11592_v34 = vmax.f32 %v11591_v22, 0.0  ;;  %v11031_v22 = vunpack.i.h.bf16 %v10034_v26 }
 0x3ac   :  { %4568 = vmatprep.mubr.f32.mxu1 %v4299_v39  ;;  %v4001_v44 = vsel %vm1778_vm2, %v11029_v40, %v6194_v30  ;;  %v4002_v14 = vsel %vm1778_vm2, %v6194_v30, %v11027_v60  ;;  %v4322_v30 = vld [vmem:[%s10690_s5 + $0x190] sm:$0xff] }
 0x3ad   :  { %v4228_v39 = vmax.f32 %v11592_v34, %v3970_v23  ;;  %v11033_v23 = vunpack.i.l.bf16 %v10034_v26 }
 0x3af   :  { %4569 = vmatmul.mubr.f32.gmra.mrb[70].mxu1 %v4298_v8  ;;  %v11593_v8 = vmax.f32 %v9218_v12, 0.0 }
 0x3b0   :  { %4573 = vmatprep.mubr.f32.mxu1 %v4307_v53 }
 0x3b1   :  { %v4260_v53 = vmax.f32 %v11593_v8, %v4001_v44  ;;  %v11598_v44 = vld [vmem:[#allocation44_spill] sm:$0xff]  ;;  %v11600_v8 = vld [vmem:[#allocation45_spill] sm:$0xff] }
 0x3b2   :  { %v11599_v34 = vmax.f32 %v11598_v44, 0.0 }
 0x3b3   :  { %4574 = vmatmul.mubr.f32.gmra.mrb[72].mxu1 %v4306_v59  ;;  %v11595_v59 = vmax.f32 %v11594_v9, 0.0  ;;  %v5559_v12 = vpack.c.bf16 %v4260_v53, %v4228_v39  ;;  %v11601_v9 = vmax.f32 %v11600_v8, 0.0  ;;  %v11602_v39 = vmax.f32 %v9221_v6, 0.0  ;;  %v4330_v6 = vld [vmem:[%s10690_s5 + $0x1d0] sm:$0xff]  ;;  %v10202_v8 = vpop.permute.xlu1 %6196 }
 0x3b4   :  { %4578 = vmatprep.mubr.f32.mxu1 %v4315_v36  ;;  %v4323_v36 = vld [vmem:[%s10690_s5 + $0x198] sm:$0xff] }
 0x3b5   :  { %v4165_v42 = vmax.f32 %v11595_v59, %v3909_v52  ;;  %v4193_v52 = vmax.f32 %v11599_v34, %v3936_v46  ;;  %v4161_v15 = vmax.f32 %v11601_v9, %v3905_v31  ;;  %v3971_v59 = vsel %vm1778_vm2, %v6184_v28, %v11028_v51  ;;  %5560 = vmatprep.subr.bf16.mxu0 %v5559_v12  ;;  %v4331_v28 = vld [vmem:[%s10690_s5 + $0x1d8] sm:$0xff]  ;;  %v11607_v34 = vld [vmem:[#allocation56_spill] sm:$0xff] }
 0x3b6   :  { %v3998_v46 = vsel %vm1778_vm2, %v6164_v29, %v11031_v22  ;;  %v4261_v53 = vmax.f32 %v11602_v39, %v4002_v14  ;;  %5562 = vmatpush3.bf16.msra.mxu0 %v5561_v55  ;;  %v4229_v24 = vmax.f32 %v11604_v25, %v3971_v59  ;;  %v11608_v29 = vmax.f32 %v11607_v34, 0.0  ;;  %v4279_v14 = vld [vmem:[%s10690_s5 + $0x38] sm:$0xff] }
 0x3b7   :  { %4579 = vmatmul.mubr.f32.gmra.mrb[74].mxu1 %v4314_v10  ;;  %v3967_v10 = vsel %vm1778_vm2, %v6163_v47, %v11033_v23  ;;  %v5563_v31 = vpack.c.bf16 %v4197_v3, %v4165_v42  ;;  %v11605_v47 = vld [vmem:[#allocation60_spill] sm:$0xff]  ;;  %v5565_v42 = vpack.c.bf16 %v4193_v52, %v4161_v15  ;;  %v10206_v52 = vpop.permute.xlu0 %6206 }
 0x3b8   :  { %4583 = vmatprep.mubr.f32.mxu1 %v4323_v36  ;;  %v11606_v36 = vmax.f32 %v11605_v47, 0.0  ;;  %v4257_v12 = vmax.f32 %v11608_v29, %v3998_v46  ;;  %v5567_v3 = vpack.c.bf16 %v4261_v53, %v4229_v24  ;;  %v11035_v46 = vunpack.i.l.bf16 %v10202_v8 }
 0x3b9   :  { %5564 = vmatprep.subr.bf16.mxu0 %v5563_v31  ;;  %v6209_v31 = vunpack.i.h.bf16 %v10206_v52  ;;  %v11030_v39 = vunpack.i.l.bf16 %v10206_v52 }
 0x3ba   :  { %v4225_v44 = vmax.f32 %v11606_v36, %v3967_v10  ;;  %5566 = vmatpush3.bf16.msra.mxu0 %v5565_v42  ;;  %v6199_v10 = vunpack.i.h.bf16 %v10202_v8 }
 0x3bb   :  { %4584 = vmatmul.mubr.f32.gmra.mrb[76].mxu1 %v4322_v30  ;;  %5568 = vmatprep.subr.bf16.mxu0 %v5567_v3  ;;  %v10210_v55 = vpop.permute.xlu0 %6211  ;;  %v3943_v29 = vsel %vm1778_vm2, %v11030_v39, %v6209_v31  ;;  %v11610_v39 = vmax.f32 %v9285_v11, 0.0 }
 0x3bc   :  { %4588 = vmatprep.mubr.f32.mxu1 %v4331_v28  ;;  %v5569_v9 = vpack.c.bf16 %v4257_v12, %v4225_v44  ;;  %v10204_v59 = vpop.permute.xlu1 %6201  ;;  %v3912_v36 = vsel %vm1778_vm2, %v11035_v46, %v6199_v10  ;;  %v6214_v44 = vunpack.i.h.bf16 %v10210_v55  ;;  %v11036_v34 = vunpack.i.l.bf16 %v10210_v55 }
 0x3bd   :  { %v11042_v53 = vunpack.i.l.bf16 %v10204_v59  ;;  %v11039_v28 = vunpack.i.h.bf16 %v10204_v59 }
 0x3be   :  { %5570 = vmatpush3.bf16.msra.mxu0 %v5569_v9  ;;  %v11609_v9 = vmax.f32 %v9256_v1, 0.0  ;;  %v3974_v22 = vsel %vm1778_vm2, %v11036_v34, %v6214_v44 }
 0x3bf   :  { %4589 = vmatmul.mubr.f32.gmra.mrb[78].mxu1 %v4330_v6  ;;  %v3913_v12 = vsel %vm1778_vm2, %v6199_v10, %v11042_v53  ;;  %v3944_v42 = vsel %vm1778_vm2, %v6209_v31, %v11039_v28  ;;  %v4200_v31 = vmax.f32 %v11610_v39, %v3943_v29 }
 0x3c0   :  { %4763 = vmatprep.mubr.f32.mxu1 %v4279_v14  ;;  %v4168_v60 = vmax.f32 %v11609_v9, %v3912_v36  ;;  %v10258_v23 = vmax.f32 %v11611_v32, %v3913_v12  ;;  %v11612_v9 = vmax.f32 %v9288_v37, 0.0  ;;  %v11613_v37 = vmax.f32 %v9500_v17, 0.0 }
 0x3c2   :  { %v10208_v15 = vpop.permute.xlu1 %6216  ;;  %v10265_v20 = vmax.f32 %v11612_v9, %v3944_v42  ;;  %v11614_v42 = vmax.f32 %v9572_v58, 0.0  ;;  %v5589_v58 = vpack.c.bf16 %v4200_v31, %v4168_v60  ;;  %v11617_v60 = vmax.f32 %v9631_v33, 0.0 }
 0x3c3   :  { %v6219_v6 = vunpack.i.h.bf16 %v10208_v15  ;;  %v11040_v3 = vunpack.i.l.bf16 %v10208_v15 }
 0x3c5   :  { %v4005_v57 = vsel %vm1778_vm2, %v11040_v3, %v6219_v6 }
 0x3c7   :  { %v10212_v30 = vpop.permute.xlu1 %6221 }
 0x3c8   :  { %v6224_v25 = vunpack.i.h.bf16 %v10212_v30  ;;  %v11041_v24 = vunpack.i.l.bf16 %v10212_v30 }
 0x3ca   :  { %v3916_v51 = vsel %vm1778_vm2, %v11041_v24, %v6224_v25 }
 0x3cb   :  { %v4172_v12 = vmax.f32 %v11613_v37, %v3916_v51 }
 0x3cf   :  { %v10224_v47 = vpop.permute.xlu1 %6246 }
 0x3d0   :  { %v10220_v0 = vpop.permute.xlu0 %6226  ;;  %v6249_v46 = vunpack.i.h.bf16 %v10224_v47  ;;  %v11046_v11 = vunpack.i.l.bf16 %v10224_v47 }
 0x3d1   :  { %v11044_v1 = vunpack.i.l.bf16 %v10220_v0  ;;  %v6229_v32 = vunpack.i.h.bf16 %v10220_v0 }
 0x3d3   :  { %v3917_v3 = vsel %vm1778_vm2, %v6224_v25, %v11044_v1  ;;  %v4232_v25 = vmax.f32 %v11615_v50, %v3974_v22  ;;  %v11616_v1 = vmax.f32 %v9435_v38, 0.0  ;;  %v5597_v38 = vpack.c.bf16 %v10265_v20, %v10258_v23 }
 0x3d5   :  { %v10242_v14 = vpop.permute.xlu0 %6231  ;;  %v4264_v13 = vmax.f32 %v11616_v1, %v4005_v57  ;;  %v11619_v1 = vld [vmem:[#allocation61_spill] sm:$0xff] }
 0x3d6   :  { %v6234_v40 = vunpack.i.h.bf16 %v10242_v14  ;;  %v11038_v10 = vunpack.i.l.bf16 %v10242_v14  ;;  %v11620_v57 = vmax.f32 %v11619_v1, 0.0 }
 0x3d7   :  { %v10261_v36 = vpop.permute.xlu1 %6251 }
 0x3d8   :  { %v3947_v39 = vsel %vm1778_vm2, %v11038_v10, %v6234_v40  ;;  %v11048_v34 = vunpack.i.h.bf16 %v10261_v36  ;;  %v6253_v19 = vunpack.i.l.bf16 %v10261_v36  ;;  %v3948_v17 = vsel %vm1778_vm2, %v6234_v40, %v6229_v32 }
 0x3d9   :  { %v10276_v29 = vpop.permute.xlu0 %6236  ;;  %v4204_v9 = vmax.f32 %v11614_v42, %v3947_v39  ;;  %v4009_v39 = vsel %vm1778_vm2, %v11046_v11, %v6249_v46  ;;  %v4205_v50 = vmax.f32 %v11618_v54, %v3948_v17  ;;  %v11625_v54 = vld [vmem:[#allocation80_spill] sm:$0xff] }
 0x3da   :  { %v6239_v10 = vunpack.i.h.bf16 %v10276_v29  ;;  %v11047_v28 = vunpack.i.l.bf16 %v10276_v29  ;;  %v11626_v5 = vmax.f32 %v11625_v54, 0.0 }
 0x3db   :  { %v6262_v51 = vpop.permute.xlu1 %6261  ;;  %v5587_v37 = vpack.c.bf16 %v4204_v9, %v4172_v12  ;;  %v3975_v12 = vsel %vm1778_vm2, %v6214_v44, %v6253_v19  ;;  %v4006_v9 = vsel %vm1778_vm2, %v6219_v6, %v11048_v34  ;;  %v11621_v6 = vld [vmem:[#allocation69_spill] sm:$0xff]  ;;  %v5593_v34 = vpack.c.bf16 %v4264_v13, %v4232_v25 }
 0x3dc   :  { %v3978_v42 = vsel %vm1778_vm2, %v11047_v28, %v6239_v10  ;;  %v6264_v24 = vunpack.i.h.bf16 %v6262_v51  ;;  %v6263_v53 = vunpack.i.l.bf16 %v6262_v51  ;;  %v4268_v51 = vmax.f32 %v11620_v57, %v4009_v39 }
 0x3dd   :  { %v10302_v40 = vpop.permute.xlu0 %6241  ;;  %5588 = vmatprep.subr.bf16.mxu1 %v5587_v37  ;;  %v4236_v31 = vmax.f32 %v11617_v60, %v3978_v42  ;;  %v11622_v37 = vmax.f32 %v11621_v6, 0.0  ;;  %v11623_v42 = vld [vmem:[#allocation77_spill] sm:$0xff]  ;;  %v4265_v11 = vmax.f32 %v11626_v5, %v4006_v9  ;;  %v11627_v39 = vunpack.i.l.bf16 %v10042_v27  ;;  %v11629_v6 = vld [vmem:[#allocation47_spill] sm:$0xff] }
 0x3de   :  { %5590 = vmatpush3.bf16.msra.mxu1 %v5589_v58  ;;  %v3906_v33 = vsel %vm1778_vm2, %v6143_v56, %v6263_v53  ;;  %v3937_v22 = vsel %vm1778_vm2, %v6144_v49, %v6264_v24  ;;  %v6244_v4 = vunpack.i.h.bf16 %v10302_v40  ;;  %v6243_v17 = vunpack.i.l.bf16 %v10302_v40  ;;  %v11689_v40 = vld [vmem:[#allocation73_spill] sm:$0xff] }
 0x3df   :  { %v6272_v44 = vpop.permute.xlu1 %6271  ;;  %v4173_v58 = vmax.f32 %v11622_v37, %v3917_v3  ;;  %v11624_v60 = vmax.f32 %v11623_v42, 0.0  ;;  %v5591_v28 = vpack.c.bf16 %v4268_v51, %v4236_v31  ;;  %v3907_v1 = vsel %vm1778_vm2, %v6263_v53, %v11627_v39 }
 0x3e0   :  { %v6274_v20 = vunpack.i.h.bf16 %v6272_v44  ;;  %v6273_v23 = vunpack.i.l.bf16 %v6272_v44  ;;  %v11628_v3 = vunpack.i.l.bf16 %v10057_v62  ;;  %v11630_v37 = vmax.f32 %v11629_v6, 0.0  ;;  %v11642_v6 = vld [vmem:[#allocation78_spill] sm:$0xff] }
 0x3e1   :  { %v4233_v56 = vmax.f32 %v11624_v60, %v3975_v12  ;;  %v6257_v49 = vpop.permute.xlu0 %6256  ;;  %v5595_v42 = vpack.c.bf16 %v4205_v50, %v4173_v58  ;;  %v11631_v12 = vld [vmem:[#allocation49_spill] sm:$0xff]  ;;  %v4010_v13 = vsel %vm1778_vm2, %v6249_v46, %v6244_v4  ;;  %v3979_v27 = vsel %vm1778_vm2, %v6239_v10, %v6243_v17  ;;  %5592 = vmatprep.subr.bf16.mxu1 %v5591_v28 }
 0x3e2   :  { %v3938_v57 = vsel %vm1778_vm2, %v6264_v24, %v11628_v3  ;;  %v10340_v44 = vmax.f32 %v11630_v37, %v3906_v33  ;;  %v11632_v60 = vmax.f32 %v11631_v12, 0.0  ;;  %v11633_v62 = vunpack.i.l.bf16 %v10204_v59  ;;  %5594 = vmatpush3.bf16.msra.mxu1 %v5593_v34  ;;  %v11640_v3 = vld [vmem:[#allocation39_spill] sm:$0xff] }
 0x3e3   :  { %v6282_v24 = vpop.permute.xlu1 %6281  ;;  %v11634_v25 = vunpack.i.l.bf16 %v10212_v30  ;;  %v11635_v9 = vunpack.i.h.bf16 %v10204_v59  ;;  %v6259_v33 = vunpack.i.h.bf16 %v6257_v49  ;;  %v6258_v46 = vunpack.i.l.bf16 %v6257_v49  ;;  %5596 = vmatprep.subr.bf16.mxu1 %v5595_v42 }
 0x3e4   :  { %v10344_v54 = vmax.f32 %v11632_v60, %v3937_v22  ;;  %v3914_v53 = vsel %vm1778_vm2, %v11633_v62, %v6273_v23  ;;  %v11636_v22 = vmax.f32 %v9537_v48, 0.0  ;;  %v11637_v51 = vunpack.i.l.bf16 %v10242_v14 }
 0x3e5   :  { %v3915_v31 = vsel %vm1778_vm2, %v6273_v23, %v11634_v25  ;;  %v3945_v50 = vsel %vm1778_vm2, %v11635_v9, %v6274_v20  ;;  %v6283_v58 = vunpack.i.l.bf16 %v6282_v24  ;;  %v6267_v30 = vpop.permute.xlu0 %6266  ;;  %v5601_v5 = vpack.c.bf16 %v4265_v11, %v4233_v56  ;;  %v11645_v11 = vld [vmem:[#allocation79_spill] sm:$0xff] }
 0x3e6   :  { %v10363_v10 = vmax.f32 %v11636_v22, %v3907_v1  ;;  %v3946_v28 = vsel %vm1778_vm2, %v6274_v20, %v11637_v51  ;;  %v11638_v23 = vmax.f32 %v9555_v35, 0.0  ;;  %v6284_v39 = vunpack.i.h.bf16 %v6282_v24  ;;  %5598 = vmatpush3.bf16.msra.mxu1 %v5597_v38 }
 0x3e7   :  { %v11639_v49 = vmax.f32 %v9634_v18, 0.0  ;;  %v11641_v48 = vmax.f32 %v11640_v3, 0.0  ;;  %v11643_v37 = vmax.f32 %v11642_v6, 0.0  ;;  %v11644_v20 = vmax.f32 %v9715_v2, 0.0 }
 0x3e8   :  { %v10370_v59 = vmax.f32 %v11638_v23, %v3938_v57  ;;  %v11646_v56 = vmax.f32 %v11645_v11, 0.0  ;;  %v10388_v57 = vpop.permute.xlu1 %6291  ;;  %v5573_v18 = vpack.c.bf16 %v10344_v54, %v10340_v44  ;;  %v11647_v12 = vmax.f32 %v9692_v45, 0.0  ;;  %v11662_v11 = vld [vmem:[#allocation67_spill] sm:$0xff] }
 0x3e9   :  { %v4237_v34 = vmax.f32 %v11639_v49, %v3979_v27  ;;  %v4269_v1 = vmax.f32 %v11641_v48, %v4010_v13  ;;  %v10378_v14 = vmax.f32 %v11643_v37, %v3914_v53  ;;  %v10382_v42 = vmax.f32 %v11644_v20, %v3915_v31  ;;  %v11656_v49 = vld [vmem:[#allocation55_spill] sm:$0xff] }
 0x3ea   :  { %v10386_v35 = vmax.f32 %v11646_v56, %v3945_v50  ;;  %v10394_v60 = vmax.f32 %v11647_v12, %v3946_v28  ;;  %v11648_v13 = vunpack.i.l.bf16 %v10087_v41  ;;  %v11649_v2 = vunpack.i.l.bf16 %v10202_v8  ;;  %v6277_v50 = vpop.permute.xlu0 %6276 }
 0x3eb   :  { %v11650_v53 = vunpack.i.h.bf16 %v10087_v41  ;;  %v11651_v25 = vunpack.i.l.bf16 %v10034_v26  ;;  %v11652_v45 = vunpack.i.l.bf16 %v10092_v63  ;;  %v6269_v31 = vunpack.i.h.bf16 %v6267_v30 }
 0x3ec   :  { %v3910_v27 = vsel %vm1778_vm2, %v11648_v13, %v6258_v46  ;;  %v3911_v62 = vsel %vm1778_vm2, %v6258_v46, %v11649_v2  ;;  %v6268_v9 = vunpack.i.l.bf16 %v6267_v30  ;;  %v11653_v8 = vunpack.i.h.bf16 %v10034_v26 }
 0x3ed   :  { %v3941_v24 = vsel %vm1778_vm2, %v11650_v53, %v6259_v33  ;;  %v3968_v44 = vsel %vm1778_vm2, %v11651_v25, %v6283_v58  ;;  %v3969_v54 = vsel %vm1778_vm2, %v6283_v58, %v11652_v45  ;;  %v6293_v41 = vunpack.i.l.bf16 %v10388_v57 }
 0x3ee   :  { %v3999_v46 = vsel %vm1778_vm2, %v11653_v8, %v6284_v39  ;;  %v5599_v22 = vpack.c.bf16 %v4269_v1, %v4237_v34  ;;  %v6278_v51 = vunpack.i.l.bf16 %v6277_v50  ;;  %v11654_v38 = vunpack.i.l.bf16 %v10206_v52 }
 0x3ef   :  { %v11655_v23 = vunpack.i.l.bf16 %v10122_v43  ;;  %v4141_v58 = vsel %vm1778_vm2, %v6269_v31, 0.0  ;;  %v6294_v30 = vunpack.i.h.bf16 %v10388_v57  ;;  %v11657_v26 = vmax.f32 %v11656_v49, 0.0  ;;  %v6287_v57 = vpop.permute.xlu0 %6286  ;;  %v11677_v49 = vld [vmem:[#allocation40_spill] sm:$0xff] }
 0x3f0   :  { %v3942_v28 = vsel %vm1778_vm2, %v6259_v33, %v11654_v38  ;;  %v11658_v48 = vmax.f32 %v9743_v21, 0.0  ;;  %v4140_v34 = vsel %vm1778_vm2, %v6268_v9, 0.0  ;;  %5600 = vmatprep.subr.bf16.mxu1 %v5599_v22  ;;  %v6279_v52 = vunpack.i.h.bf16 %v6277_v50  ;;  %v11659_v33 = vld [vmem:[#allocation58_spill] sm:$0xff] }
 0x3f1   :  { %v4000_v63 = vsel %vm1778_vm2, %v6284_v39, %v11655_v23  ;;  %v4226_v3 = vmax.f32 %v11657_v26, %v3968_v44  ;;  %v11660_v1 = vmax.f32 %v11659_v33, 0.0  ;;  %v11661_v39 = vunpack.i.l.bf16 %v10220_v0  ;;  %5602 = vmatpush3.bf16.msra.mxu1 %v5601_v5  ;;  %v11667_v44 = vld [vmem:[#allocation41_spill] sm:$0xff]  ;;  %v11675_v23 = vld [vmem:[#allocation42_spill] sm:$0xff] }
 0x3f2   :  { %v10427_v6 = vmax.f32 %v11658_v48, %v3969_v54  ;;  %v3949_v20 = vsel %vm1778_vm2, %v6229_v32, %v6269_v31  ;;  %v11663_v56 = vmax.f32 %v11662_v11, 0.0  ;;  %v11664_v12 = vmax.f32 %v9728_v7, 0.0  ;;  %v11670_v54 = vld [vmem:[#allocation70_spill] sm:$0xff] }
 0x3f3   :  { %v4258_v43 = vmax.f32 %v11660_v1, %v3999_v46  ;;  %v3918_v37 = vsel %vm1778_vm2, %v11661_v39, %v6268_v9  ;;  %v11665_v2 = vmax.f32 %v9752_v16, 0.0  ;;  %v3976_v25 = vsel %vm1778_vm2, %v6253_v19, %v6293_v41  ;;  %v11673_v46 = vld [vmem:[#allocation52_spill] sm:$0xff]  ;;  %v11681_v1 = vld [vmem:[#allocation26_spill] sm:$0xff] }
 0x3f4   :  { %v4166_v21 = vmax.f32 %v11663_v56, %v3910_v27  ;;  %v10442_v13 = vmax.f32 %v11664_v12, %v4000_v63  ;;  %v11666_v0 = vunpack.i.l.bf16 %v10100_v61  ;;  %v11668_v45 = vmax.f32 %v11667_v44, 0.0 }
 0x3f5   :  { %v4207_v53 = vmax.f32 %v11665_v2, %v4141_v58  ;;  %v11669_v5 = vunpack.i.h.bf16 %v10261_v36  ;;  %v11671_v31 = vmax.f32 %v11670_v54, 0.0  ;;  %v6289_v16 = vunpack.i.h.bf16 %v6287_v57  ;;  %v11685_v2 = vld [vmem:[#allocation75_spill] sm:$0xff] }
 0x3f6   :  { %v3972_v32 = vsel %vm1778_vm2, %v11666_v0, %v6278_v51  ;;  %v4175_v27 = vmax.f32 %v11668_v45, %v4140_v34  ;;  %v11672_v50 = vunpack.i.h.bf16 %v10100_v61  ;;  %v6288_v19 = vunpack.i.l.bf16 %v6287_v57  ;;  %v11679_v34 = vld [vmem:[#allocation74_spill] sm:$0xff] }
 0x3f7   :  { %v4007_v7 = vsel %vm1778_vm2, %v11669_v5, %v6294_v30  ;;  %v4198_v9 = vmax.f32 %v11671_v31, %v3941_v24  ;;  %v11674_v22 = vmax.f32 %v11673_v46, 0.0  ;;  %v11676_v63 = vmax.f32 %v11675_v23, 0.0  ;;  %v11691_v45 = vld [vmem:[#allocation46_spill] sm:$0xff] }
 0x3f8   :  { %v4003_v8 = vsel %vm1778_vm2, %v11672_v50, %v6279_v52  ;;  %v11678_v26 = vmax.f32 %v11677_v49, 0.0  ;;  %v4011_v24 = vsel %vm1778_vm2, %v6244_v4, %v6289_v16  ;;  %v11680_v33 = vmax.f32 %v11679_v34, 0.0 }
 0x3f9   :  { %v4174_v38 = vmax.f32 %v11674_v22, %v3918_v37  ;;  %v4206_v58 = vmax.f32 %v11676_v63, %v3949_v20  ;;  %v5571_v48 = vpack.c.bf16 %v4198_v9, %v4166_v21  ;;  %v11682_v39 = vmax.f32 %v11681_v1, 0.0 }
 0x3fa   :  { %v4234_v36 = vmax.f32 %v11678_v26, %v3976_v25  ;;  %v4230_v61 = vmax.f32 %v11680_v33, %v3972_v32  ;;  %v11683_v56 = vunpack.i.l.bf16 %v10208_v15  ;;  %v3980_v20 = vsel %vm1778_vm2, %v6243_v17, %v6288_v19  ;;  %v11687_v32 = vld [vmem:[#allocation50_spill] sm:$0xff] }
 0x3fb   :  { %v4266_v11 = vmax.f32 %v11682_v39, %v4007_v7  ;;  %v5603_v57 = vpack.c.bf16 %v4206_v58, %v4174_v38  ;;  %v11684_v21 = vunpack.i.l.bf16 %v10210_v55  ;;  %5572 = vmatprep.subr.bf16.mxu0 %v5571_v48  ;;  %v5605_v4 = vpack.c.bf16 %v10386_v35, %v10378_v14  ;;  %v11693_v7 = vld [vmem:[#allocation71_spill] sm:$0xff]  ;;  %v11697_v38 = vld [vmem:[#allocation34_spill] sm:$0xff]  ;;  %v11701_v58 = vld [vmem:[#allocation32_spill] sm:$0xff] }
 0x3fc   :  { %v4004_v37 = vsel %vm1778_vm2, %v6279_v52, %v11683_v56  ;;  %v11686_v25 = vmax.f32 %v11685_v2, 0.0  ;;  %v11688_v15 = vmax.f32 %v11687_v32, 0.0  ;;  %5574 = vmatpush3.bf16.msra.mxu0 %v5573_v18  ;;  %v11690_v52 = vmax.f32 %v11689_v40, 0.0  ;;  %v4286_v56 = vld [vmem:[%s10690_s5 + $0x70] sm:$0xff]  ;;  %v4309_v2 = vld [vmem:[%s10690_s5 + $0x128] sm:$0xff]  ;;  %v4308_v32 = vld [vmem:[%s10690_s5 + $0x120] sm:$0xff] }
 0x3fd   :  { %v3973_v12 = vsel %vm1778_vm2, %v6278_v51, %v11684_v21  ;;  %5604 = vmatprep.subr.bf16.mxu1 %v5603_v57  ;;  %v11692_v5 = vmax.f32 %v11691_v45, 0.0  ;;  %v11694_v51 = vmax.f32 %v11693_v7, 0.0  ;;  %v11695_v31 = vunpack.i.l.bf16 %v10276_v29  ;;  %v4301_v57 = vld [vmem:[%s10690_s5 + $0xe8] sm:$0xff]  ;;  %v4294_v21 = vld [vmem:[%s10690_s5 + $0xb0] sm:$0xff]  ;;  %v4319_v40 = vld [vmem:[%s10690_s5 + $0x178] sm:$0xff] }
 0x3fe   :  { %v4262_v0 = vmax.f32 %v11686_v25, %v4003_v8  ;;  %v4167_v44 = vmax.f32 %v11688_v15, %v3911_v62  ;;  %v4199_v17 = vmax.f32 %v11690_v52, %v3942_v28  ;;  %v4143_v35 = vsel %vm1778_vm2, %v6289_v16, 0.0  ;;  %5606 = vmatpush3.bf16.msra.mxu1 %v5605_v4  ;;  %v11699_v16 = vld [vmem:[#allocation28_spill] sm:$0xff]  ;;  %v4300_v4 = vld [vmem:[%s10690_s5 + $0xe0] sm:$0xff]  ;;  %v4317_v15 = vld [vmem:[%s10690_s5 + $0x168] sm:$0xff] }
 0x3ff   :  { %v4238_v55 = vmax.f32 %v11692_v5, %v3980_v20  ;;  %v4270_v54 = vmax.f32 %v11694_v51, %v4011_v24  ;;  %v3977_v14 = vsel %vm1778_vm2, %v6293_v41, %v11695_v31  ;;  %v4142_v9 = vsel %vm1778_vm2, %v6288_v19, 0.0  ;;  %v11707_v24 = vld [vmem:[#allocation24_spill] sm:$0xff]  ;;  %v4292_v20 = vld [vmem:[%s10690_s5 + $0xa0] sm:$0xff]  ;;  %v4327_v5 = vld [vmem:[%s10690_s5 + $0x1b8] sm:$0xff] }
 0x400   :  { %v5575_v18 = vpack.c.bf16 %v4262_v0, %v4230_v61  ;;  %v11696_v62 = vunpack.i.l.bf16 %v10224_v47  ;;  %v5577_v50 = vpack.c.bf16 %v4258_v43, %v4226_v3  ;;  %v5585_v46 = vpack.c.bf16 %v10442_v13, %v10427_v6  ;;  %v11703_v47 = vld [vmem:[#allocation36_spill] sm:$0xff]  ;;  %v11705_v43 = vld [vmem:[#allocation27_spill] sm:$0xff]  ;;  %v4311_v0 = vld [vmem:[%s10690_s5 + $0x138] sm:$0xff] }
 0x401   :  { %v5607_v8 = vpack.c.bf16 %v4270_v54, %v4238_v55  ;;  %v5579_v22 = vpack.c.bf16 %v4199_v17, %v4167_v44  ;;  %v5609_v29 = vpack.c.bf16 %v4266_v11, %v4234_v36  ;;  %v11698_v41 = vmax.f32 %v11697_v38, 0.0  ;;  %v4293_v11 = vld [vmem:[%s10690_s5 + $0xa8] sm:$0xff]  ;;  %v4302_v25 = vld [vmem:[%s10690_s5 + $0xf0] sm:$0xff]  ;;  %v4316_v52 = vld [vmem:[%s10690_s5 + $0x160] sm:$0xff] }
 0x402   :  { %v4008_v28 = vsel %vm1778_vm2, %v6294_v30, %v11696_v62  ;;  %5576 = vmatprep.subr.bf16.mxu0 %v5575_v18  ;;  %v11700_v63 = vmax.f32 %v11699_v16, 0.0  ;;  %v11702_v49 = vmax.f32 %v11701_v58, 0.0  ;;  %v11704_v48 = vmax.f32 %v11703_v47, 0.0  ;;  %v4310_v44 = vld [vmem:[%s10690_s5 + $0x130] sm:$0xff]  ;;  %v4325_v17 = vld [vmem:[%s10690_s5 + $0x1a8] sm:$0xff]  ;;  %v4324_v55 = vld [vmem:[%s10690_s5 + $0x1a0] sm:$0xff] }
 0x403   :  { %v4231_v23 = vmax.f32 %v11698_v41, %v3973_v12  ;;  %5578 = vmatpush3.bf16.msra.mxu0 %v5577_v50  ;;  %5608 = vmatprep.subr.bf16.mxu1 %v5607_v8  ;;  %v5611_v3 = vpack.c.bf16 %v4207_v53, %v4175_v27  ;;  %v5581_v6 = vpack.c.bf16 %v10370_v59, %v10363_v10  ;;  %v11706_v13 = vmax.f32 %v11705_v43, 0.0  ;;  %v4276_v10 = vld [vmem:[%s10690_s5 + $0x20] sm:$0xff]  ;;  %v4285_v59 = vld [vmem:[%s10690_s5 + $0x68] sm:$0xff]  ;;  %v4303_v12 = vld [vmem:[%s10690_s5 + $0xf8] sm:$0xff] }
 0x404   :  { %v4263_v19 = vmax.f32 %v11700_v63, %v4004_v37  ;;  %v4271_v26 = vmax.f32 %v11702_v49, %v4143_v35  ;;  %v4239_v30 = vmax.f32 %v11704_v48, %v4142_v9  ;;  %5580 = vmatprep.subr.bf16.mxu0 %v5579_v22  ;;  %5610 = vmatpush3.bf16.msra.mxu1 %v5609_v29  ;;  %v11708_v34 = vmax.f32 %v11707_v24, 0.0  ;;  %v4284_v27 = vld [vmem:[%s10690_s5 + $0x60] sm:$0xff]  ;;  %v4295_v37 = vld [vmem:[%s10690_s5 + $0xb8] sm:$0xff]  ;;  %v4318_v45 = vld [vmem:[%s10690_s5 + $0x170] sm:$0xff] }
 0x405   :  { %5612 = vmatprep.subr.bf16.mxu1 %v5611_v3  ;;  %v4235_v36 = vmax.f32 %v11706_v13, %v3977_v14  ;;  %v5613_v1 = vpack.c.bf16 %v10394_v60, %v10382_v42  ;;  %v4278_v42 = vld [vmem:[%s10690_s5 + $0x30] sm:$0xff]  ;;  %v4287_v60 = vld [vmem:[%s10690_s5 + $0x78] sm:$0xff]  ;;  %v4333_v7 = vld [vmem:[%s10690_s5 + $0x1e8] sm:$0xff]  ;;  %v4347_v13 = vpop.permute.xlu0 %4346 }
 0x406   :  { %v4267_v33 = vmax.f32 %v11708_v34, %v4008_v28  ;;  %v5583_v61 = vpack.c.bf16 %v4263_v19, %v4231_v23  ;;  %v5615_v39 = vpack.c.bf16 %v4271_v26, %v4239_v30  ;;  %v4326_v51 = vld [vmem:[%s10690_s5 + $0x1b0] sm:$0xff]  ;;  %v4335_v54 = vld [vmem:[%s10690_s5 + $0x1f8] sm:$0xff]  ;;  %v4332_v31 = vld [vmem:[%s10690_s5 + $0x1e0] sm:$0xff] }
 0x407   :  { %5582 = vmatpush3.bf16.msra.mxu0 %v5581_v6  ;;  %v4334_v14 = vld [vmem:[%s10690_s5 + $0x1f0] sm:$0xff] }
 0x408   :  { %5584 = vmatprep.subr.bf16.mxu0 %v5583_v61  ;;  %5614 = vmatpush3.bf16.msra.mxu1 %v5613_v1  ;;  %v5617_v53 = vpack.c.bf16 %v4267_v33, %v4235_v36  ;;  %v4352_v1 = vpop.permute.xlu1 %4351 }
 0x409   :  { %5616 = vmatprep.subr.bf16.mxu1 %v5615_v39 }
 0x40b   :  { %5586 = vmatpush3.bf16.msra.mxu0 %v5585_v46 }
 0x40c   :  { %5618 = vmatpush3.bf16.msra.mxu1 %v5617_v53 }
 0x40e   :  { %4659 = vmatmul.mubr.f32.vlgmr.msra.gmra.mrb[80].mxu0 %v4276_v10 }
 0x40f   :  { %4663 = vmatprep.mubr.f32.mxu0 %v4285_v59  ;;  %4764 = vmatmul.mubr.f32.vlgmr.msra.gmra.mrb[80].mxu1 %v4278_v42  ;;  %v4812_v59 = vld [vmem:[%s10692_s7] sm:$0xff]  ;;  %v4813_v42 = vld [vmem:[%s10692_s7 + $0x8] sm:$0xff] }
 0x410   :  { %4768 = vmatprep.mubr.f32.mxu1 %v4287_v60  ;;  %v4814_v60 = vld [vmem:[%s10692_s7 + $0x10] sm:$0xff] }
 0x412   :  { %4664 = vmatmul.mubr.f32.gmra.mrb[82].mxu0 %v4284_v27 }
 0x413   :  { %4668 = vmatprep.mubr.f32.mxu0 %v4293_v11  ;;  %4769 = vmatmul.mubr.f32.gmra.mrb[82].mxu1 %v4286_v56  ;;  %v5619_v56 = vpack.c.bf16 %v4813_v42, %v4812_v59 }
 0x414   :  { %4773 = vmatprep.mubr.f32.mxu1 %v4295_v37  ;;  %v4815_v37 = vld [vmem:[%s10692_s7 + $0x18] sm:$0xff] }
 0x415   :  { %5620 = vmatprep.subr.bf16.mxu0 %v5619_v56  ;;  %5635 = vmatprep.subr.bf16.mxu1 %v5619_v56 }
 0x416   :  { %4669 = vmatmul.mubr.f32.gmra.mrb[84].mxu0 %v4292_v20  ;;  %v4357_v20 = vpop.permute.xlu0 %4356  ;;  %5639 = vmatpush3.bf16.msra.mxu1 %v5619_v56 }
 0x417   :  { %4673 = vmatprep.mubr.f32.mxu0 %v4301_v57  ;;  %4774 = vmatmul.mubr.f32.gmra.mrb[84].mxu1 %v4294_v21  ;;  %v5623_v21 = vpack.c.bf16 %v4815_v37, %v4814_v60  ;;  %v4819_v37 = vld [vmem:[%s10692_s7 + $0x38] sm:$0xff] }
 0x418   :  { %4778 = vmatprep.mubr.f32.mxu1 %v4303_v12  ;;  %v4816_v12 = vld [vmem:[%s10692_s7 + $0x20] sm:$0xff]  ;;  %5622 = vmatpush3.bf16.msra.mxu0 %v5619_v56 }
 0x419   :  { %5624 = vmatprep.subr.bf16.mxu0 %v5623_v21  ;;  %5636 = vmatprep.subr.bf16.mxu1 %v5623_v21 }
 0x41a   :  { %4674 = vmatmul.mubr.f32.gmra.mrb[86].mxu0 %v4300_v4  ;;  %v4817_v4 = vld [vmem:[%s10692_s7 + $0x28] sm:$0xff]  ;;  %5640 = vmatpush3.bf16.msra.mxu1 %v5623_v21 }
 0x41b   :  { %4678 = vmatprep.mubr.f32.mxu0 %v4309_v2  ;;  %4779 = vmatmul.mubr.f32.gmra.mrb[86].mxu1 %v4302_v25 }
 0x41c   :  { %4783 = vmatprep.mubr.f32.mxu1 %v4311_v0  ;;  %5626 = vmatpush3.bf16.msra.mxu0 %v5623_v21 }
 0x41e   :  { %4679 = vmatmul.mubr.f32.gmra.mrb[88].mxu0 %v4308_v32 }
 0x41f   :  { %4683 = vmatprep.mubr.f32.mxu0 %v4317_v15  ;;  %4784 = vmatmul.mubr.f32.gmra.mrb[88].mxu1 %v4310_v44  ;;  %v5627_v15 = vpack.c.bf16 %v4817_v4, %v4816_v12  ;;  %v4362_v44 = vpop.permute.xlu1 %4361 }
 0x420   :  { %4788 = vmatprep.mubr.f32.mxu1 %v4319_v40 }
 0x421   :  { %5628 = vmatprep.subr.bf16.mxu0 %v5627_v15  ;;  %5637 = vmatprep.subr.bf16.mxu1 %v5627_v15 }
 0x422   :  { %4684 = vmatmul.mubr.f32.gmra.mrb[90].mxu0 %v4316_v52  ;;  %5641 = vmatpush3.bf16.msra.mxu1 %v5627_v15 }
 0x423   :  { %4688 = vmatprep.mubr.f32.mxu0 %v4325_v17  ;;  %4789 = vmatmul.mubr.f32.gmra.mrb[90].mxu1 %v4318_v45 }
 0x424   :  { %4793 = vmatprep.mubr.f32.mxu1 %v4327_v5  ;;  %5630 = vmatpush3.bf16.msra.mxu0 %v5627_v15 }
 0x426   :  { %4689 = vmatmul.mubr.f32.gmra.mrb[92].mxu0 %v4324_v55  ;;  %v4367_v55 = vpop.permute.xlu0 %4366 }
 0x427   :  { %4693 = vmatprep.mubr.f32.mxu0 %v4333_v7  ;;  %4794 = vmatmul.mubr.f32.gmra.mrb[92].mxu1 %v4326_v51 }
 0x428   :  { %4798 = vmatprep.mubr.f32.mxu1 %v4335_v54 }
 0x42a   :  { %4694 = vmatmul.mubr.f32.gmra.mrb[94].mxu0 %v4332_v31 }
 0x42b   :  { %4799 = vmatmul.mubr.f32.gmra.mrb[94].mxu1 %v4334_v14 }
 0x435   :  { %v5071_v35 = vpop.f32.mrb[64].mxu0 }
 0x436   :  { %v5072_v9 = vpop.f32.mrb[65].mxu0 }
 0x437   :  { %v5073_v18 = vadd.f32 %v5072_v9, %v5071_v35  ;;  %v4372_v35 = vpop.permute.xlu1 %4371 }
 0x439   :  { %v5074_v62 = vpop.f32.mrb[66].mxu0  ;;  %v4451_v24 = vadd.f32 %v5073_v18, %v4347_v13 }
 0x43a   :  { %v5075_v28 = vpop.f32.mrb[67].mxu0 }
 0x43b   :  { %v5076_v50 = vadd.f32 %v5075_v28, %v5074_v62 }
 0x43d   :  { %v5077_v8 = vpop.f32.mrb[68].mxu0  ;;  %v4456_v53 = vadd.f32 %v5076_v50, %v4352_v1 }
 0x43e   :  { %v5078_v46 = vpop.f32.mrb[69].mxu0 }
 0x43f   :  { %v5079_v22 = vadd.f32 %v5078_v46, %v5077_v8  ;;  %v4377_v8 = vpop.permute.xlu0 %4376 }
 0x441   :  { %v5080_v29 = vpop.f32.mrb[70].mxu0  ;;  %v4461_v2 = vadd.f32 %v5079_v22, %v4357_v20 }
 0x442   :  { %v5081_v38 = vpop.f32.mrb[71].mxu0 }
 0x443   :  { %v5082_v41 = vadd.f32 %v5081_v38, %v5080_v29 }
 0x445   :  { %v5083_v23 = vpop.f32.mrb[72].mxu0  ;;  %v4466_v52 = vadd.f32 %v5082_v41, %v4362_v44 }
 0x446   :  { %v5084_v16 = vpop.f32.mrb[73].mxu0 }
 0x447   :  { %v5085_v63 = vadd.f32 %v5084_v16, %v5083_v23  ;;  %v4382_v23 = vpop.permute.xlu1 %4381 }
 0x449   :  { %v5086_v19 = vpop.f32.mrb[74].mxu0  ;;  %v4471_v51 = vadd.f32 %v5085_v63, %v4367_v55 }
 0x44a   :  { %v5087_v58 = vpop.f32.mrb[75].mxu0 }
 0x44b   :  { %v5088_v49 = vadd.f32 %v5087_v58, %v5086_v19 }
 0x44d   :  { %v5089_v26 = vpop.f32.mrb[76].mxu0  ;;  %v4476_v18 = vadd.f32 %v5088_v49, %v4372_v35 }
 0x44e   :  { %v5090_v47 = vpop.f32.mrb[77].mxu0 }
 0x44f   :  { %v10612_v48 = vadd.f32 %v5090_v47, %v5089_v26 }
 0x451   :  { %v5092_v30 = vpop.f32.mrb[78].mxu0  ;;  %v4481_v22 = vadd.f32 %v10612_v48, %v4377_v8 }
 0x452   :  { %v5093_v3 = vpop.f32.mrb[79].mxu0 }
 0x453   :  { %v10614_v6 = vadd.f32 %v5093_v3, %v5092_v30 }
 0x455   :  { %v4486_v63 = vadd.f32 %v10614_v6, %v4382_v23 }
 0x476   :  { %v5127_v43 = vpop.f32.mrb[64].mxu1 }
 0x477   :  { %v5128_v36 = vpop.f32.mrb[65].mxu1 }
 0x478   :  { %v5129_v34 = vadd.f32 %v5128_v36, %v5127_v43 }
 0x47a   :  { %v10616_v33 = vadd.f32 %v5129_v34, %v4451_v24  ;;  %v5130_v61 = vpop.f32.mrb[66].mxu1 }
 0x47b   :  { %v5131_v39 = vpop.f32.mrb[67].mxu1 }
 0x47c   :  { %v5132_v10 = vadd.f32 %v5131_v39, %v5130_v61 }
 0x47e   :  { %v10627_v27 = vadd.f32 %v5132_v10, %v4456_v53  ;;  %v5133_v11 = vpop.f32.mrb[68].mxu1 }
 0x47f   :  { %v5134_v57 = vpop.f32.mrb[69].mxu1 }
 0x480   :  { %v5135_v25 = vadd.f32 %v5134_v57, %v5133_v11 }
 0x482   :  { %v10638_v0 = vadd.f32 %v5135_v25, %v4461_v2  ;;  %v5136_v32 = vpop.f32.mrb[70].mxu1 }
 0x483   :  { %v5137_v40 = vpop.f32.mrb[71].mxu1 }
 0x484   :  { %v5138_v17 = vadd.f32 %v5137_v40, %v5136_v32 }
 0x486   :  { %v10640_v45 = vadd.f32 %v5138_v17, %v4466_v52  ;;  %v5139_v5 = vpop.f32.mrb[72].mxu1 }
 0x487   :  { %v5140_v7 = vpop.f32.mrb[73].mxu1 }
 0x488   :  { %v5141_v54 = vadd.f32 %v5140_v7, %v5139_v5 }
 0x48a   :  { %v10642_v31 = vadd.f32 %v5141_v54, %v4471_v51  ;;  %v5142_v14 = vpop.f32.mrb[74].mxu1 }
 0x48b   :  { %v5143_v9 = vpop.f32.mrb[75].mxu1 }
 0x48c   :  { %v5144_v62 = vadd.f32 %v5143_v9, %v5142_v14 }
 0x48e   :  { %v10644_v28 = vadd.f32 %v5144_v62, %v4476_v18  ;;  %v5145_v50 = vpop.f32.mrb[76].mxu1 }
 0x48f   :  { %v5146_v46 = vpop.f32.mrb[77].mxu1 }
 0x490   :  { %v5147_v29 = vadd.f32 %v5146_v46, %v5145_v50 }
 0x492   :  { %v10647_v38 = vadd.f32 %v5147_v29, %v4481_v22  ;;  %v5148_v41 = vpop.f32.mrb[78].mxu1 }
 0x493   :  { %v5149_v16 = vpop.f32.mrb[79].mxu1 }
 0x494   :  { %v5150_v19 = vadd.f32 %v5149_v16, %v5148_v41 }
 0x496   :  { %v10650_v58 = vadd.f32 %v5150_v19, %v4486_v63 }
 0x4e1   :  { %v5183_v49 = vpop.f32.mrb[80].mxu0 }
 0x4e2   :  { %v5184_v26 = vpop.f32.mrb[81].mxu0  ;;  %v5239_v47 = vpop.f32.mrb[80].mxu1 }
 0x4e3   :  { %v5185_v30 = vadd.f32 %v5184_v26, %v5183_v49  ;;  %v5240_v3 = vpop.f32.mrb[81].mxu1 }
 0x4e4   :  { %v5241_v43 = vadd.f32 %v5240_v3, %v5239_v47 }
 0x4e5   :  { %v4661_v13 = vadd.f32 %v5185_v30, %v10616_v33  ;;  %v5186_v48 = vpop.f32.mrb[82].mxu0  ;;  %v4818_v33 = vld [vmem:[%s10692_s7 + $0x30] sm:$0xff] }
 0x4e6   :  { %v5187_v36 = vpop.f32.mrb[83].mxu0  ;;  %v5242_v24 = vpop.f32.mrb[82].mxu1  ;;  %v5631_v57 = vpack.c.bf16 %v4819_v37, %v4818_v33 }
 0x4e7   :  { %v5188_v34 = vadd.f32 %v5187_v36, %v5186_v48  ;;  %v4766_v61 = vadd.f32 %v5241_v43, %v4661_v13  ;;  %v5243_v1 = vpop.f32.mrb[83].mxu1 }
 0x4e8   :  { %v5244_v39 = vadd.f32 %v5243_v1, %v5242_v24  ;;  %5632 = vmatprep.subr.bf16.mxu0 %v5631_v57  ;;  %5638 = vmatprep.subr.bf16.mxu1 %v5631_v57 }
 0x4e9   :  { %v4666_v6 = vadd.f32 %v5188_v34, %v10627_v27  ;;  %v4804_v53 = vmax.f32 %v4766_v61, 0.0  ;;  %v5189_v10 = vpop.f32.mrb[84].mxu0  ;;  %5634 = vmatpush3.bf16.msra.mxu0 %v5631_v57  ;;  %5642 = vmatpush3.bf16.msra.mxu1 %v5631_v57 }
 0x4ea   :  { %v5190_v59 = vpop.f32.mrb[85].mxu0  ;;  %v5245_v42 = vpop.f32.mrb[84].mxu1 }
 0x4eb   :  { %v5191_v60 = vadd.f32 %v5190_v59, %v5189_v10  ;;  %v4771_v11 = vadd.f32 %v5244_v39, %v4666_v6  ;;  %4827 = vxpose.xlu0.b32.start [1/8] (short) (narrow) %v4804_v53, 32  ;;  %v5246_v56 = vpop.f32.mrb[85].mxu1 }
 0x4ec   :  { %v5247_v20 = vadd.f32 %v5246_v56, %v5245_v42 }
 0x4ed   :  { %v4671_v27 = vadd.f32 %v5191_v60, %v10638_v0  ;;  %v4805_v21 = vmax.f32 %v4771_v11, 0.0  ;;  %v5192_v12 = vpop.f32.mrb[86].mxu0 }
 0x4ee   :  { %v5193_v4 = vpop.f32.mrb[87].mxu0  ;;  %v5248_v2 = vpop.f32.mrb[86].mxu1 }
 0x4ef   :  { %v5194_v25 = vadd.f32 %v5193_v4, %v5192_v12  ;;  %v4776_v32 = vadd.f32 %v5247_v20, %v4671_v27  ;;  %4828 = vxpose.xlu0.b32.cont [2/8] (short) (narrow) %v4805_v21, 32  ;;  %v5249_v15 = vpop.f32.mrb[87].mxu1 }
 0x4f0   :  { %v5250_v44 = vadd.f32 %v5249_v15, %v5248_v2 }
 0x4f1   :  { %v4676_v40 = vadd.f32 %v5194_v25, %v10640_v45  ;;  %v4806_v52 = vmax.f32 %v4776_v32, 0.0  ;;  %v5195_v17 = vpop.f32.mrb[88].mxu0 }
 0x4f2   :  { %v5196_v5 = vpop.f32.mrb[89].mxu0  ;;  %v5251_v55 = vpop.f32.mrb[88].mxu1 }
 0x4f3   :  { %v5197_v0 = vadd.f32 %v5196_v5, %v5195_v17  ;;  %v4781_v7 = vadd.f32 %v5250_v44, %v4676_v40  ;;  %4829 = vxpose.xlu0.b32.cont [3/8] (short) (narrow) %v4806_v52, 32  ;;  %v5252_v51 = vpop.f32.mrb[89].mxu1 }
 0x4f4   :  { %v5253_v54 = vadd.f32 %v5252_v51, %v5251_v55 }
 0x4f5   :  { %v4681_v14 = vadd.f32 %v5197_v0, %v10642_v31  ;;  %v4807_v35 = vmax.f32 %v4781_v7, 0.0  ;;  %v5198_v9 = vpop.f32.mrb[90].mxu0 }
 0x4f6   :  { %v5199_v18 = vpop.f32.mrb[91].mxu0  ;;  %v5254_v62 = vpop.f32.mrb[90].mxu1 }
 0x4f7   :  { %v5200_v50 = vadd.f32 %v5199_v18, %v5198_v9  ;;  %v4786_v8 = vadd.f32 %v5253_v54, %v4681_v14  ;;  %4830 = vxpose.xlu0.b32.cont [4/8] (short) (narrow) %v4807_v35, 32  ;;  %v5255_v46 = vpop.f32.mrb[91].mxu1 }
 0x4f8   :  { %v5256_v45 = vadd.f32 %v5255_v46, %v5254_v62 }
 0x4f9   :  { %v4686_v22 = vadd.f32 %v5200_v50, %v10644_v28  ;;  %v4808_v29 = vmax.f32 %v4786_v8, 0.0  ;;  %v5201_v41 = vpop.f32.mrb[92].mxu0 }
 0x4fa   :  { %v5202_v23 = vpop.f32.mrb[93].mxu0  ;;  %v5257_v16 = vpop.f32.mrb[92].mxu1 }
 0x4fb   :  { %v5203_v63 = vadd.f32 %v5202_v23, %v5201_v41  ;;  %v4791_v19 = vadd.f32 %v5256_v45, %v4686_v22  ;;  %4831 = vxpose.xlu0.b32.cont [5/8] (short) (narrow) %v4808_v29, 32  ;;  %v5258_v49 = vpop.f32.mrb[93].mxu1 }
 0x4fc   :  { %v5259_v31 = vadd.f32 %v5258_v49, %v5257_v16 }
 0x4fd   :  { %v4691_v26 = vadd.f32 %v5203_v63, %v10647_v38  ;;  %v4809_v47 = vmax.f32 %v4791_v19, 0.0  ;;  %v5204_v30 = vpop.f32.mrb[94].mxu0 }
 0x4fe   :  { %v5205_v3 = vpop.f32.mrb[95].mxu0  ;;  %v5260_v43 = vpop.f32.mrb[94].mxu1 }
 0x4ff   :  { %v5206_v13 = vadd.f32 %v5205_v3, %v5204_v30  ;;  %v4796_v48 = vadd.f32 %v5259_v31, %v4691_v26  ;;  %4832 = vxpose.xlu0.b32.cont [6/8] (short) (narrow) %v4809_v47, 32  ;;  %v5261_v36 = vpop.f32.mrb[95].mxu1 }
 0x500   :  { %v5262_v28 = vadd.f32 %v5261_v36, %v5260_v43 }
 0x501   :  { %v4696_v24 = vadd.f32 %v5206_v13, %v10650_v58  ;;  %v4810_v34 = vmax.f32 %v4796_v48, 0.0  ;;  %v5034_v58 = vld [vmem:[%s10693_s8] ss:$0 sm:$0xff] }
 0x503   :  { %v4801_v61 = vadd.f32 %v5262_v28, %v4696_v24  ;;  %4833 = vxpose.xlu0.b32.cont [7/8] (short) (narrow) %v4810_v34, 32 }
 0x505   :  { %v4811_v1 = vmax.f32 %v4801_v61, 0.0 }
 0x507   :  { %4834 = vxpose.xlu0.b32.end [8/8] (short) (narrow) %v4811_v1, 32 }
 0x56b   :  { %v4843_v39 = vpop.trf.xlu0 }
 0x56c   :  { %5291 = vmatprep.mubr.msk.f32.mxu0 %vm1778_vm2, %v4843_v39 }
 0x56f   :  { %v4844_v38 = vpop.trf.xlu0 }
 0x570   :  { %5292 = vmatmul.mubr.msk.f32.vlgmr.msra.gmra.mrb[96].mxu0 %vm1778_vm2, %v4844_v38 }
 0x573   :  { %v4845_v6 = vpop.trf.xlu0 }
 0x574   :  { %5294 = vmatprep.mubr.msk.f32.mxu1 %vm1778_vm2, %v4845_v6 }
 0x577   :  { %v4846_v53 = vpop.trf.xlu0 }
 0x578   :  { %5295 = vmatmul.mubr.msk.f32.vlgmr.msra.gmra.mrb[96].mxu1 %vm1778_vm2, %v4846_v53 }
 0x643   :  { %v5293_v10 = vpop.f32.mrb[96].mxu0 }
 0x644   :  { %v4943_v59 = vadd.f32 %v5293_v10, %v5034_v58  ;;  %v4937_v42 = vpop.f32.mrb[97].mxu0 }
 0x645   :  { %v4938_v60 = vadd.f32 %v5034_v58, %v4937_v42 }
 0x646   :  { %4957 = vst [vmem:[%s10694_s9 + $0x8] sm:$0xff] %v4943_v59 }
 0x647   :  { %4956 = vst [vmem:[%s10694_s9] sm:$0xff] %v4938_v60 }
 0x64b   :  { %v5296_v11 = vpop.f32.mrb[96].mxu1 }
 0x64c   :  { %v4953_v56 = vadd.f32 %v5296_v11, %v5034_v58  ;;  %v4947_v33 = vpop.f32.mrb[97].mxu1 }
 0x64d   :  { %v4948_v37 = vadd.f32 %v5034_v58, %v4947_v33 }
 0x64e   :  { %4959 = vst [vmem:[%s10694_s9 + $0x18] sm:$0xff] %v4953_v56 }
 0x64f   :  { %4958 = vst [vmem:[%s10694_s9 + $0x10] sm:$0xff] %v4948_v37 }

</bundles_post_ra>
